<compile_context>
chip_gen: v7x
topology: tpu7x:2x2x1
jax: 0.10.0
libtpu: 0.0.40
codegen_flags: <defaults>
</compile_context>

<pallas_src>
import jax
import jax.numpy as jnp
from jax import lax
from jax.experimental import pallas as pl
from jax.experimental.pallas import tpu as pltpu


_NEG_SLOPE = 0.2     # LeakyReLU slope used by DGL GATConv
_MASK_BIG = 1e30     # additive softmax mask sentinel


# ---------------------------------------------------------------------------
# kernel-side math
# ---------------------------------------------------------------------------
def _gat_layer(x, adj, w, al_sc, ar_sc, bias, head_mask):
    """One GATConv layer with heads stacked along the leading axis.

    x:         (N_src, F_in)   f32
    adj:       (N_dst, N_src)  f32, adj[v, u] = 1.0 iff edge u -> v
    w:         (F_in, H*D)     f32
    al_sc/ar_sc: (H, H*D)      f32, row h holds attn_l/attn_r[h] in cols h*D:(h+1)*D
    bias:      (1, H*D)        f32
    head_mask: (H, 1, H*D)     f32, head_mask[h, 0, c] = 1 iff c // D == h
    returns    (N_dst, H*D)    f32
    """
    f32, bf16 = jnp.float32, jnp.bfloat16
    heads = head_mask.shape[0]

    # feature projection (MXU, bf16 in / f32 accumulate)
    ft = jnp.dot(x.astype(bf16), w.astype(bf16), preferred_element_type=f32)  # (N, H*D)
    ftb = ft.astype(bf16)

    # all per-head attention logits in ONE lane-aligned matmul each:
    #   elT[h, u] = <attn_l[h], ft_h[u]>,   erT[h, v] = <attn_r[h], ft_h[v]>
    elT = lax.dot_general(al_sc.astype(bf16), ftb, (((1,), (1,)), ((), ())),
                          preferred_element_type=f32)            # (H, N_src)
    erT = lax.dot_general(ar_sc.astype(bf16), ftb, (((1,), (1,)), ((), ())),
                          preferred_element_type=f32)            # (H, N_dst)

    # stacked masked softmax over incoming edges (one pipeline for all heads)
    e = erT[:, :, None] + elT[:, None, :]                        # (H, N_dst, N_src)
    e = jnp.maximum(e, _NEG_SLOPE * e)                           # LeakyReLU(0.2)
    e = e + ((adj - 1.0) * _MASK_BIG)[None, :, :]                # 0 on edges, -1e30 off
    e = e - jnp.max(e, axis=-1, keepdims=True)
    p = jnp.exp(e)                                               # masked entries underflow to 0
    s = jnp.sum(p, axis=-1, keepdims=True)
    # self-loops guarantee >=1 incoming edge, so s >= 1; the clamp only guards the
    # (unused here) isolated-dst-node case.
    alpha = (p * pl.reciprocal(jnp.maximum(s, 1e-20), approx=True)).astype(bf16)

    # attention-weighted aggregation: per-head column-masked features, one batched
    # MXU matmul, then a cheap sum over heads (exactly one head is nonzero per column)
    fth = (ft[None, :, :] * head_mask).astype(bf16)              # (H, N_src, H*D)
    out3 = lax.dot_general(alpha, fth, (((2,), (1,)), ((0,), (0,))),
                           preferred_element_type=f32)           # (H, N_dst, H*D)
    out = out3[0]
    for h in range(1, heads):
        out = out + out3[h]
    return out + bias                                            # (N_dst, H*D)


def _elu(x):
    # exact expm1 identity: expm1(x) = 2*t / (1 - t), t = tanh(x/2)
    # (avoids exp(x) - 1 cancellation; tanh/div are guaranteed Pallas lowerings)
    t = jnp.tanh(0.5 * x)
    return jnp.where(x > 0.0, x, 2.0 * t / (1.0 - t))


def _gat2_kernel(x_ref, adj0_ref, adj1_ref,
                 w0_ref, al0_ref, ar0_ref, b0_ref, hm0_ref,
                 w1_ref, al1_ref, ar1_ref, b1_ref, hm1_ref,
                 out_ref):
    """Fused 2-layer GAT forward; the layer-0 output never leaves VMEM."""
    h0 = _gat_layer(x_ref[...], adj0_ref[...], w0_ref[...], al0_ref[...],
                    ar0_ref[...], b0_ref[...], hm0_ref[...])
    h0 = _elu(h0)                                    # layer-0 activation (== flatten(1))
    out_ref[...] = _gat_layer(h0, adj1_ref[...], w1_ref[...], al1_ref[...],
                              ar1_ref[...], b1_ref[...], hm1_ref[...])


# ---------------------------------------------------------------------------
# host-side wrappers
# ---------------------------------------------------------------------------
def prepare_layer_params(w, attn_l, attn_r, bias):
    """Re-layout DGL GATConv params for the kernel (scattered attn + head masks)."""
    heads, d = attn_l.shape
    hd = heads * d
    eye = jnp.eye(heads, dtype=jnp.float32)
    al_sc = (eye[:, :, None] * attn_l[:, None, :]).reshape(heads, hd)   # (H, H*D)
    ar_sc = (eye[:, :, None] * attn_r[:, None, :]).reshape(heads, hd)   # (H, H*D)
    col_head = jnp.arange(hd, dtype=jnp.int32) // d
    head_mask = (col_head[None, :] == jnp.arange(heads, dtype=jnp.int32)[:, None])
    head_mask = head_mask.astype(jnp.float32)[:, None, :]               # (H, 1, H*D)
    return (w, al_sc, ar_sc, bias, head_mask)


def gat_forward(x, adjs, params, heads, hid_size, out_size):
    """Mirrors GAT.forward over the two blocks with a single fused Pallas kernel."""
    n_dst = adjs[1].shape[0]
    p0 = prepare_layer_params(*params[0])
    p1 = prepare_layer_params(*params[1])
    vmem = pl.BlockSpec(memory_space=pltpu.MemorySpace.VMEM)
    out = pl.pallas_call(
        _gat2_kernel,
        out_shape=jax.ShapeDtypeStruct((n_dst, heads[1] * out_size), jnp.float32),
        in_specs=[vmem] * 13,
        out_specs=vmem,
    )(x, adjs[0], adjs[1], *p0, *p1)
    # layer-1 epilogue: h.view(N * heads1, out_size)
    return out.reshape(n_dst * heads[1], out_size)


def init_gat_params(key, in_size, hid_size, out_size, heads):
    """Deterministic xavier-normal-ish init (gain sqrt(2)), DGL GATConv shapes."""
    def xavier(k, shape, fan_in, fan_out):
        std = jnp.sqrt(2.0) * jnp.sqrt(2.0 / (fan_in + fan_out))
        return std * jax.random.normal(k, shape, dtype=jnp.float32)

    k = jax.random.split(key, 8)
    h0, h1 = heads
    w0 = xavier(k[0], (in_size, h0 * hid_size), in_size, h0 * hid_size)
    al0 = xavier(k[1], (h0, hid_size), hid_size, 1)
    ar0 = xavier(k[2], (h0, hid_size), hid_size, 1)
    b0 = jnp.zeros((1, h0 * hid_size), dtype=jnp.float32)
    in1 = hid_size * h0
    w1 = xavier(k[3], (in1, h1 * out_size), in1, h1 * out_size)
    al1 = xavier(k[4], (h1, out_size), out_size, 1)
    ar1 = xavier(k[5], (h1, out_size), out_size, 1)
    b1 = jnp.zeros((1, h1 * out_size), dtype=jnp.float32)
    return [(w0, al0, ar0, b0), (w1, al1, ar1, b1)]


# ---------------------------------------------------------------------------
# pure-JAX reference (per-head formulation, same bf16/f32 numerics)
# ---------------------------------------------------------------------------
def _gat_conv_ref(x, adj, w, attn_l, attn_r, bias):
    bf16, f32 = jnp.bfloat16, jnp.float32
    heads, d = attn_l.shape
    ft = jnp.dot(x.astype(bf16), w.astype(bf16), preferred_element_type=f32)
    mask = adj > 0.0
    outs = []
    for h in range(heads):
        fth = ft[:, h * d:(h + 1) * d]
        el = jnp.dot(fth.astype(bf16), attn_l[h].astype(bf16),
                     preferred_element_type=f32)                 # (N,)
        er = jnp.dot(fth.astype(bf16), attn_r[h].astype(bf16),
                     preferred_element_type=f32)                 # (N,)
        e = er[:, None] + el[None, :]
        e = jnp.where(e > 0.0, e, _NEG_SLOPE * e)
        e = jnp.where(mask, e, -_MASK_BIG)
        p = jnp.exp(e - jnp.max(e, axis=-1, keepdims=True))
        p = jnp.where(mask, p, 0.0)
        alpha = p / jnp.maximum(jnp.sum(p, axis=-1, keepdims=True), 1e-20)
        outs.append(jnp.dot(alpha.astype(bf16), fth.astype(bf16),
                            preferred_element_type=f32))
    return jnp.concatenate(outs, axis=-1) + bias


def gat_forward_ref(x, adjs, params, heads, hid_size, out_size):
    h = _gat_conv_ref(x, adjs[0], *params[0])
    h = jnp.where(h > 0.0, h, jnp.expm1(h))                      # ELU
    h = _gat_conv_ref(h, adjs[1], *params[1])
    return h.reshape(h.shape[0] * heads[1], out_size)


# ---------------------------------------------------------------------------
if __name__ == "__main__":
    # small deterministic problem
    N = 128            # nodes (same src/dst set for both blocks)
    in_size = 32
    hid_size = 8
    out_size = 8
    heads = (4, 1)

    key = jax.random.PRNGKey(0)
    kx, ka0, ka1, kp = jax.random.split(key, 4)

    x = jax.random.normal(kx, (N, in_size), dtype=jnp.float32)

    # random sparse adjacency + self loops (guarantees nonzero in-degree)
    eye = jnp.eye(N, dtype=jnp.float32)
    adj0 = (jax.random.uniform(ka0, (N, N)) < 0.3).astype(jnp.float32)
    adj0 = jnp.clip(adj0 + eye, 0.0, 1.0)
    adj1 = (jax.random.uniform(ka1, (N, N)) < 0.3).astype(jnp.float32)
    adj1 = jnp.clip(adj1 + eye, 0.0, 1.0)

    params = init_gat_params(kp, in_size, hid_size, out_size, heads)

    out = gat_forward(x, (adj0, adj1), params, heads, hid_size, out_size)
    out = jax.block_until_ready(out)

    assert out.shape == (N * heads[1], out_size), out.shape
    assert bool(jnp.all(jnp.isfinite(out)))

    # correctness check against the per-head pure-JAX reference
    ref = gat_forward_ref(x, (adj0, adj1), params, heads, hid_size, out_size)
    ref = jax.block_until_ready(ref)
    max_err = float(jnp.max(jnp.abs(out - ref)))
    assert max_err < 5e-2, f"kernel/reference mismatch: max abs err = {max_err}"

    print("KERNEL_OK")
</pallas_src>

<mosaic_0001>
module attributes {stable_mosaic.version = 11 : i64} {
  func.func @_gat2_kernel(%arg0: memref<128x32xf32, #tpu.memory_space<vmem>>, %arg1: memref<128x128xf32, #tpu.memory_space<vmem>>, %arg2: memref<128x128xf32, #tpu.memory_space<vmem>>, %arg3: memref<32x32xf32, #tpu.memory_space<vmem>>, %arg4: memref<4x32xf32, #tpu.memory_space<vmem>>, %arg5: memref<4x32xf32, #tpu.memory_space<vmem>>, %arg6: memref<1x32xf32, #tpu.memory_space<vmem>>, %arg7: memref<4x1x32xf32, #tpu.memory_space<vmem>>, %arg8: memref<32x8xf32, #tpu.memory_space<vmem>>, %arg9: memref<1x8xf32, #tpu.memory_space<vmem>>, %arg10: memref<1x8xf32, #tpu.memory_space<vmem>>, %arg11: memref<1x8xf32, #tpu.memory_space<vmem>>, %arg12: memref<1x1x8xf32, #tpu.memory_space<vmem>>, %arg13: memref<128x8xf32, #tpu.memory_space<vmem>>) attributes {dimension_semantics = [], scalar_prefetch = 0 : i64, scratch_operands = 0 : i64, tpu.core_type = #tpu.core_type<tc>} {
    %c0 = arith.constant 0 : index
    %c0_0 = arith.constant 0 : index
    %0 = vector.load %arg0[%c0, %c0_0] : memref<128x32xf32, #tpu.memory_space<vmem>>, vector<128x32xf32>
    %c0_1 = arith.constant 0 : index
    %c0_2 = arith.constant 0 : index
    %1 = vector.load %arg1[%c0_1, %c0_2] : memref<128x128xf32, #tpu.memory_space<vmem>>, vector<128x128xf32>
    %c0_3 = arith.constant 0 : index
    %c0_4 = arith.constant 0 : index
    %2 = vector.load %arg3[%c0_3, %c0_4] : memref<32x32xf32, #tpu.memory_space<vmem>>, vector<32x32xf32>
    %c0_5 = arith.constant 0 : index
    %c0_6 = arith.constant 0 : index
    %3 = vector.load %arg4[%c0_5, %c0_6] : memref<4x32xf32, #tpu.memory_space<vmem>>, vector<4x32xf32>
    %c0_7 = arith.constant 0 : index
    %c0_8 = arith.constant 0 : index
    %4 = vector.load %arg5[%c0_7, %c0_8] : memref<4x32xf32, #tpu.memory_space<vmem>>, vector<4x32xf32>
    %c0_9 = arith.constant 0 : index
    %c0_10 = arith.constant 0 : index
    %5 = vector.load %arg6[%c0_9, %c0_10] : memref<1x32xf32, #tpu.memory_space<vmem>>, vector<1x32xf32>
    %c0_11 = arith.constant 0 : index
    %c0_12 = arith.constant 0 : index
    %c0_13 = arith.constant 0 : index
    %6 = vector.load %arg7[%c0_11, %c0_12, %c0_13] : memref<4x1x32xf32, #tpu.memory_space<vmem>>, vector<4x1x32xf32>
    %7 = arith.truncf %0 : vector<128x32xf32> to vector<128x32xbf16>
    %8 = arith.truncf %2 : vector<32x32xf32> to vector<32x32xbf16>
    %cst = arith.constant dense<0.000000e+00> : vector<128x32xf32>
    %9 = tpu.matmul %7, %8, %cst {dimension_numbers = #tpu.dot_dimension_numbers<[1], [0], [0], [1], [0, 0, 1, 1], [], []>} : vector<128x32xbf16>, vector<32x32xbf16>, vector<128x32xf32> -> vector<128x32xf32>
    %10 = arith.truncf %9 : vector<128x32xf32> to vector<128x32xbf16>
    %11 = arith.truncf %3 : vector<4x32xf32> to vector<4x32xbf16>
    %cst_14 = arith.constant dense<0.000000e+00> : vector<4x128xf32>
    %12 = tpu.matmul %11, %10, %cst_14 {dimension_numbers = #tpu.dot_dimension_numbers<[1], [1], [0], [0], [0, 0, 1, 0], [], []>} : vector<4x32xbf16>, vector<128x32xbf16>, vector<4x128xf32> -> vector<4x128xf32>
    %13 = arith.truncf %4 : vector<4x32xf32> to vector<4x32xbf16>
    %cst_15 = arith.constant dense<0.000000e+00> : vector<4x128xf32>
    %14 = tpu.matmul %13, %10, %cst_15 {dimension_numbers = #tpu.dot_dimension_numbers<[1], [1], [0], [0], [0, 0, 1, 0], [], []>} : vector<4x32xbf16>, vector<128x32xbf16>, vector<4x128xf32> -> vector<4x128xf32>
    %15 = vector.shape_cast %14 : vector<4x128xf32> to vector<4x128x1xf32>
    %16 = vector.shape_cast %12 : vector<4x128xf32> to vector<4x1x128xf32>
    %17 = vector.broadcast %15 : vector<4x128x1xf32> to vector<4x128x128xf32>
    %18 = vector.broadcast %16 : vector<4x1x128xf32> to vector<4x128x128xf32>
    %19 = arith.addf %17, %18 : vector<4x128x128xf32>
    %cst_16 = arith.constant 2.000000e-01 : f32
    %20 = vector.broadcast %cst_16 : f32 to vector<4x128x128xf32>
    %21 = arith.mulf %20, %19 : vector<4x128x128xf32>
    %22 = arith.maximumf %19, %21 : vector<4x128x128xf32>
    %cst_17 = arith.constant 1.000000e+00 : f32
    %23 = vector.broadcast %cst_17 : f32 to vector<128x128xf32>
    %24 = arith.subf %1, %23 : vector<128x128xf32>
    %cst_18 = arith.constant 1.000000e+30 : f32
    %25 = vector.broadcast %cst_18 : f32 to vector<128x128xf32>
    %26 = arith.mulf %24, %25 : vector<128x128xf32>
    %27 = vector.shape_cast %26 : vector<128x128xf32> to vector<1x128x128xf32>
    %28 = vector.broadcast %27 : vector<1x128x128xf32> to vector<4x128x128xf32>
    %29 = arith.addf %22, %28 : vector<4x128x128xf32>
    %cst_19 = arith.constant dense<0xFF800000> : vector<4x128xf32>
    %30 = vector.multi_reduction <maximumf>, %29, %cst_19 [2] : vector<4x128x128xf32> to vector<4x128xf32>
    %31 = vector.shape_cast %30 : vector<4x128xf32> to vector<4x128x1xf32>
    %32 = vector.broadcast %31 : vector<4x128x1xf32> to vector<4x128x128xf32>
    %33 = arith.subf %29, %32 : vector<4x128x128xf32>
    %34 = math.exp %33 : vector<4x128x128xf32>
    %cst_20 = arith.constant dense<0.000000e+00> : vector<4x128xf32>
    %35 = vector.multi_reduction <add>, %34, %cst_20 [2] : vector<4x128x128xf32> to vector<4x128xf32>
    %36 = vector.shape_cast %35 : vector<4x128xf32> to vector<4x128x1xf32>
    %cst_21 = arith.constant 9.99999968E-21 : f32
    %37 = vector.broadcast %cst_21 : f32 to vector<4x128x1xf32>
    %38 = arith.maximumf %36, %37 : vector<4x128x1xf32>
    %39 = tpu.reciprocal %38 {approx = true} : vector<4x128x1xf32> -> vector<4x128x1xf32>
    %40 = vector.broadcast %39 : vector<4x128x1xf32> to vector<4x128x128xf32>
    %41 = arith.mulf %34, %40 : vector<4x128x128xf32>
    %42 = arith.truncf %41 : vector<4x128x128xf32> to vector<4x128x128xbf16>
    %43 = vector.shape_cast %9 : vector<128x32xf32> to vector<1x128x32xf32>
    %44 = vector.broadcast %43 : vector<1x128x32xf32> to vector<4x128x32xf32>
    %45 = vector.broadcast %6 : vector<4x1x32xf32> to vector<4x128x32xf32>
    %46 = arith.mulf %44, %45 : vector<4x128x32xf32>
    %47 = arith.truncf %46 : vector<4x128x32xf32> to vector<4x128x32xbf16>
    %cst_22 = arith.constant dense<0.000000e+00> : vector<4x128x32xf32>
    %48 = tpu.matmul %42, %47, %cst_22 {dimension_numbers = #tpu.dot_dimension_numbers<[2], [1], [1], [2], [0, 0, 0, 1, 1, 2], [0], [0]>} : vector<4x128x128xbf16>, vector<4x128x32xbf16>, vector<4x128x32xf32> -> vector<4x128x32xf32>
    %49 = vector.extract_strided_slice %48 {offsets = [0, 0, 0], sizes = [1, 128, 32], strides = [1, 1, 1]} : vector<4x128x32xf32> to vector<1x128x32xf32>
    %50 = vector.shape_cast %49 : vector<1x128x32xf32> to vector<128x32xf32>
    %51 = vector.extract_strided_slice %48 {offsets = [1, 0, 0], sizes = [1, 128, 32], strides = [1, 1, 1]} : vector<4x128x32xf32> to vector<1x128x32xf32>
    %52 = vector.shape_cast %51 : vector<1x128x32xf32> to vector<128x32xf32>
    %53 = arith.addf %50, %52 : vector<128x32xf32>
    %54 = vector.extract_strided_slice %48 {offsets = [2, 0, 0], sizes = [1, 128, 32], strides = [1, 1, 1]} : vector<4x128x32xf32> to vector<1x128x32xf32>
    %55 = vector.shape_cast %54 : vector<1x128x32xf32> to vector<128x32xf32>
    %56 = arith.addf %53, %55 : vector<128x32xf32>
    %57 = vector.extract_strided_slice %48 {offsets = [3, 0, 0], sizes = [1, 128, 32], strides = [1, 1, 1]} : vector<4x128x32xf32> to vector<1x128x32xf32>
    %58 = vector.shape_cast %57 : vector<1x128x32xf32> to vector<128x32xf32>
    %59 = arith.addf %56, %58 : vector<128x32xf32>
    %60 = vector.broadcast %5 : vector<1x32xf32> to vector<128x32xf32>
    %61 = arith.addf %59, %60 : vector<128x32xf32>
    %cst_23 = arith.constant 5.000000e-01 : f32
    %62 = vector.broadcast %cst_23 : f32 to vector<128x32xf32>
    %63 = arith.mulf %62, %61 : vector<128x32xf32>
    %64 = math.tanh %63 : vector<128x32xf32>
    %cst_24 = arith.constant 0.000000e+00 : f32
    %65 = vector.broadcast %cst_24 : f32 to vector<128x32xf32>
    %66 = arith.cmpf ogt, %61, %65 : vector<128x32xf32>
    %cst_25 = arith.constant 2.000000e+00 : f32
    %67 = vector.broadcast %cst_25 : f32 to vector<128x32xf32>
    %68 = arith.mulf %67, %64 : vector<128x32xf32>
    %cst_26 = arith.constant 1.000000e+00 : f32
    %69 = vector.broadcast %cst_26 : f32 to vector<128x32xf32>
    %70 = arith.subf %69, %64 : vector<128x32xf32>
    %71 = arith.divf %68, %70 : vector<128x32xf32>
    %72 = arith.select %66, %61, %71 : vector<128x32xi1>, vector<128x32xf32>
    %c0_27 = arith.constant 0 : index
    %c0_28 = arith.constant 0 : index
    %73 = vector.load %arg2[%c0_27, %c0_28] : memref<128x128xf32, #tpu.memory_space<vmem>>, vector<128x128xf32>
    %c0_29 = arith.constant 0 : index
    %c0_30 = arith.constant 0 : index
    %74 = vector.load %arg8[%c0_29, %c0_30] : memref<32x8xf32, #tpu.memory_space<vmem>>, vector<32x8xf32>
    %c0_31 = arith.constant 0 : index
    %c0_32 = arith.constant 0 : index
    %75 = vector.load %arg9[%c0_31, %c0_32] : memref<1x8xf32, #tpu.memory_space<vmem>>, vector<1x8xf32>
    %c0_33 = arith.constant 0 : index
    %c0_34 = arith.constant 0 : index
    %76 = vector.load %arg10[%c0_33, %c0_34] : memref<1x8xf32, #tpu.memory_space<vmem>>, vector<1x8xf32>
    %c0_35 = arith.constant 0 : index
    %c0_36 = arith.constant 0 : index
    %77 = vector.load %arg11[%c0_35, %c0_36] : memref<1x8xf32, #tpu.memory_space<vmem>>, vector<1x8xf32>
    %c0_37 = arith.constant 0 : index
    %c0_38 = arith.constant 0 : index
    %c0_39 = arith.constant 0 : index
    %78 = vector.load %arg12[%c0_37, %c0_38, %c0_39] : memref<1x1x8xf32, #tpu.memory_space<vmem>>, vector<1x1x8xf32>
    %79 = arith.truncf %72 : vector<128x32xf32> to vector<128x32xbf16>
    %80 = arith.truncf %74 : vector<32x8xf32> to vector<32x8xbf16>
    %cst_40 = arith.constant dense<0.000000e+00> : vector<128x8xf32>
    %81 = tpu.matmul %79, %80, %cst_40 {dimension_numbers = #tpu.dot_dimension_numbers<[1], [0], [0], [1], [0, 0, 1, 1], [], []>} : vector<128x32xbf16>, vector<32x8xbf16>, vector<128x8xf32> -> vector<128x8xf32>
    %82 = arith.truncf %81 : vector<128x8xf32> to vector<128x8xbf16>
    %83 = arith.truncf %75 : vector<1x8xf32> to vector<1x8xbf16>
    %cst_41 = arith.constant dense<0.000000e+00> : vector<1x128xf32>
    %84 = tpu.matmul %83, %82, %cst_41 {dimension_numbers = #tpu.dot_dimension_numbers<[1], [1], [0], [0], [0, 0, 1, 0], [], []>} : vector<1x8xbf16>, vector<128x8xbf16>, vector<1x128xf32> -> vector<1x128xf32>
    %85 = arith.truncf %76 : vector<1x8xf32> to vector<1x8xbf16>
    %cst_42 = arith.constant dense<0.000000e+00> : vector<1x128xf32>
    %86 = tpu.matmul %85, %82, %cst_42 {dimension_numbers = #tpu.dot_dimension_numbers<[1], [1], [0], [0], [0, 0, 1, 0], [], []>} : vector<1x8xbf16>, vector<128x8xbf16>, vector<1x128xf32> -> vector<1x128xf32>
    %87 = vector.shape_cast %86 : vector<1x128xf32> to vector<1x128x1xf32>
    %88 = vector.shape_cast %84 : vector<1x128xf32> to vector<1x1x128xf32>
    %89 = vector.broadcast %87 : vector<1x128x1xf32> to vector<1x128x128xf32>
    %90 = vector.broadcast %88 : vector<1x1x128xf32> to vector<1x128x128xf32>
    %91 = arith.addf %89, %90 : vector<1x128x128xf32>
    %cst_43 = arith.constant 2.000000e-01 : f32
    %92 = vector.broadcast %cst_43 : f32 to vector<1x128x128xf32>
    %93 = arith.mulf %92, %91 : vector<1x128x128xf32>
    %94 = arith.maximumf %91, %93 : vector<1x128x128xf32>
    %cst_44 = arith.constant 1.000000e+00 : f32
    %95 = vector.broadcast %cst_44 : f32 to vector<128x128xf32>
    %96 = arith.subf %73, %95 : vector<128x128xf32>
    %cst_45 = arith.constant 1.000000e+30 : f32
    %97 = vector.broadcast %cst_45 : f32 to vector<128x128xf32>
    %98 = arith.mulf %96, %97 : vector<128x128xf32>
    %99 = vector.shape_cast %98 : vector<128x128xf32> to vector<1x128x128xf32>
    %100 = arith.addf %94, %99 : vector<1x128x128xf32>
    %cst_46 = arith.constant dense<0xFF800000> : vector<1x128xf32>
    %101 = vector.multi_reduction <maximumf>, %100, %cst_46 [2] : vector<1x128x128xf32> to vector<1x128xf32>
    %102 = vector.shape_cast %101 : vector<1x128xf32> to vector<1x128x1xf32>
    %103 = vector.broadcast %102 : vector<1x128x1xf32> to vector<1x128x128xf32>
    %104 = arith.subf %100, %103 : vector<1x128x128xf32>
    %105 = math.exp %104 : vector<1x128x128xf32>
    %cst_47 = arith.constant dense<0.000000e+00> : vector<1x128xf32>
    %106 = vector.multi_reduction <add>, %105, %cst_47 [2] : vector<1x128x128xf32> to vector<1x128xf32>
    %107 = vector.shape_cast %106 : vector<1x128xf32> to vector<1x128x1xf32>
    %cst_48 = arith.constant 9.99999968E-21 : f32
    %108 = vector.broadcast %cst_48 : f32 to vector<1x128x1xf32>
    %109 = arith.maximumf %107, %108 : vector<1x128x1xf32>
    %110 = tpu.reciprocal %109 {approx = true} : vector<1x128x1xf32> -> vector<1x128x1xf32>
    %111 = vector.broadcast %110 : vector<1x128x1xf32> to vector<1x128x128xf32>
    %112 = arith.mulf %105, %111 : vector<1x128x128xf32>
    %113 = arith.truncf %112 : vector<1x128x128xf32> to vector<1x128x128xbf16>
    %114 = vector.shape_cast %81 : vector<128x8xf32> to vector<1x128x8xf32>
    %115 = vector.broadcast %78 : vector<1x1x8xf32> to vector<1x128x8xf32>
    %116 = arith.mulf %114, %115 : vector<1x128x8xf32>
    %117 = arith.truncf %116 : vector<1x128x8xf32> to vector<1x128x8xbf16>
    %cst_49 = arith.constant dense<0.000000e+00> : vector<1x128x8xf32>
    %118 = tpu.matmul %113, %117, %cst_49 {dimension_numbers = #tpu.dot_dimension_numbers<[2], [1], [1], [2], [0, 0, 0, 1, 1, 2], [0], [0]>} : vector<1x128x128xbf16>, vector<1x128x8xbf16>, vector<1x128x8xf32> -> vector<1x128x8xf32>
    %119 = vector.shape_cast %118 : vector<1x128x8xf32> to vector<128x8xf32>
    %120 = vector.broadcast %77 : vector<1x8xf32> to vector<128x8xf32>
    %121 = arith.addf %119, %120 : vector<128x8xf32>
    %c0_50 = arith.constant 0 : index
    %c0_51 = arith.constant 0 : index
    %122 = vector.load %arg13[%c0_50, %c0_51] : memref<128x8xf32, #tpu.memory_space<vmem>>, vector<128x8xf32>
    tpu.vector_store %arg13[%c0_50, %c0_51], %121 {strides = array<i32>} : memref<128x8xf32, #tpu.memory_space<vmem>>, vector<128x8xf32>,
    return
  }
}

</mosaic_0001>

<bundles_post_ra>
// kernel: tpu_custom_call.1
= control target key start
LH: loop header
LB: loop body
LE: loop exit
PB: predicated region body
PF: predicated region fallthrough
CT: control target
= control target key end

     0   :  { %18 = vsyncpa [#allocation3], 0  ;;  %s4051_s25 = smov [#allocation2]   ;;  %s5871_s0 = inlined_call_operand.vmem [shape: f32[128,32], index: 0, kind: input, shape index: {}]   ;;  %s5872_s1 = inlined_call_operand.vmem [shape: f32[128,128], index: 1, kind: input, shape index: {}]   ;;  %s5873_s2 = inlined_call_operand.hbm [shape: f32[128,128], index: 2, kind: input, shape index: {}]   ;;  %s5874_s3 = inlined_call_operand.vmem [shape: f32[32,32], index: 3, kind: input, shape index: {}]   ;;  %s5875_s4 = inlined_call_operand.vmem [shape: f32[4,32], index: 4, kind: input, shape index: {}]   ;;  %s5876_s5 = inlined_call_operand.vmem [shape: f32[4,32], index: 5, kind: input, shape index: {}]   ;;  %s5877_s6 = inlined_call_operand.vmem [shape: f32[1,32], index: 6, kind: input, shape index: {}]   ;;  %s5878_s7 = inlined_call_operand.vmem [shape: f32[4,1,32], index: 7, kind: input, shape index: {}]   ;;  %s5879_s8 = inlined_call_operand.vmem [shape: f32[32,8], index: 8, kind: input, shape index: {}]   ;;  %s5880_s9 = inlined_call_operand.vmem [shape: f32[1,8], index: 9, kind: input, shape index: {}]   ;;  %s5881_s10 = inlined_call_operand.vmem [shape: f32[1,8], index: 10, kind: input, shape index: {}]   ;;  %s5882_s11 = inlined_call_operand.vmem [shape: f32[1,8], index: 11, kind: input, shape index: {}]   ;;  %s5883_s12 = inlined_call_operand.vmem [shape: f32[1,1,8], index: 12, kind: input, shape index: {}]   ;;  %s5884_s13 = inlined_call_operand.vmem [shape: f32[128,8], index: 13, kind: output, shape index: {}]  }
   0x1   :  { %s28_s26 = sshll.u32 %s4051_s25, 4  ;;  %s4027_s29 = scalar_lea.hbm %s5873_s2, 2048  ;;  %s29_s26 = int_to_ptr.vmem [resolvable:$true] %s28_s26 }
   0x2   :  { %p4028_p0 = scmp.ne.s32.totalorder %s5873_s2, %s4027_s29  ;;  %p4031_p1 = scmp.lt.u32.totalorder %s4027_s29, %s5873_s2 }
   0x4   :  { %p4033_p2 = pnand %p4031_p1, %p4028_p0 }
   0x6   :  { %4036 = shalt.err (!%p4033_p2)
}
   0x7   :  { %s4037_s17 = scalar_lea.vmem %s29_s26, 2048  ;;  %p4042_p4 = scmp.lt.s32.totalorder %s29_s26, %s29_s26 }
   0x8   :  { %p4038_p3 = scmp.ne.s32.totalorder %s29_s26, %s4037_s17  ;;  %p4043_p5 = scmp.lt.s32.totalorder %s4037_s17, %s4037_s17 }
   0xa   :  { %p4044_p6 = por %p4043_p5, %p4042_p4 }
   0xc   :  { %p4045_p7 = pnand %p4044_p6, %p4038_p3 }
   0xe   :  { %4048 = shalt.err (!%p4045_p7)
}
   0xf   :  { %s4052_s18 = smov 128   ;;  %s4053_s19 = smov 8  }
  0x10   :  { %34 = dma.hbm_to_vmem [thread:$0]  %s5873_s2, 2048, %s29_s26, [#allocation3], %s4052_s18, %s4052_s18, %s4053_s19  }
  0x11   :  { %4049 = dma.done.wait [#allocation3], 2048  }
  0x12   :  { %4050 = vsyncadd [#allocation3], 4294965248  ;;  %v91_v0 = vld [vmem:[%s5874_s3] sm:$0xff]  ;;  %v92_v1 = vld [vmem:[%s5874_s3 + $0x8] sm:$0xff]  ;;  %vm112_vm0 = vcmask 261120   ;;  %v5885_v30 = vmov 0.0  }
  0x13   :  { %v93_v2 = vld [vmem:[%s5874_s3 + $0x10] sm:$0xff]  ;;  %v110_v3 = vpack.c.bf16 %v92_v1, %v91_v0  ;;  %v94_v4 = vld [vmem:[%s5874_s3 + $0x18] sm:$0xff]  ;;  %v59_v5 = vld [vmem:[%s5871_s0] sm:$0xff]  ;;  %3313 = vmatprep.subr.bf16.mxu1 %v5885_v30  ;;  %vm4055_vm1 = vmmov 0  }
  0x14   :  { %v60_v6 = vld [vmem:[%s5871_s0 + $0x8] sm:$0xff]  ;;  %v111_v7 = vpack.c.bf16 %v94_v4, %v93_v2  ;;  %v61_v9 = vld [vmem:[%s5871_s0 + $0x10] sm:$0xff]  ;;  %v62_v10 = vld [vmem:[%s5871_s0 + $0x18] sm:$0xff]  ;;  %3329 = vmatprep.mubr.msk.bf16.mxu1 %vm4055_vm1, %v5885_v30 }
  0x15   :  { %v102_v8 = vpack.c.bf16 %v60_v6, %v59_v5  ;;  %3293 = vmatprep.subr.bf16.mxu0 %v110_v3  ;;  %v63_v11 = vld [vmem:[%s5871_s0 + $0x20] sm:$0xff]  ;;  %v64_v12 = vld [vmem:[%s5871_s0 + $0x28] sm:$0xff]  ;;  %v103_v13 = vpack.c.bf16 %v62_v10, %v61_v9  ;;  %v65_v15 = vld [vmem:[%s5871_s0 + $0x30] sm:$0xff] }
  0x16   :  { %3294 = vmatpush3.bf16.msra.mxu0 %v110_v3  ;;  %v104_v14 = vpack.c.bf16 %v64_v12, %v63_v11  ;;  %v66_v16 = vld [vmem:[%s5871_s0 + $0x38] sm:$0xff]  ;;  %v67_v17 = vld [vmem:[%s5871_s0 + $0x40] sm:$0xff]  ;;  %v68_v18 = vld [vmem:[%s5871_s0 + $0x48] sm:$0xff] }
  0x17   :  { %3297 = vmatprep.mubr.msk.bf16.mxu0 %vm112_vm0, %v102_v8  ;;  %3295 = vmatprep.subr.bf16.mxu0 %v111_v7  ;;  %v105_v19 = vpack.c.bf16 %v66_v16, %v65_v15  ;;  %v106_v20 = vpack.c.bf16 %v68_v18, %v67_v17  ;;  %v69_v21 = vld [vmem:[%s5871_s0 + $0x50] sm:$0xff]  ;;  %v70_v22 = vld [vmem:[%s5871_s0 + $0x58] sm:$0xff]  ;;  %v71_v23 = vld [vmem:[%s5871_s0 + $0x60] sm:$0xff] }
  0x18   :  { %v72_v24 = vld [vmem:[%s5871_s0 + $0x68] sm:$0xff]  ;;  %v107_v25 = vpack.c.bf16 %v70_v22, %v69_v21  ;;  %v73_v27 = vld [vmem:[%s5871_s0 + $0x70] sm:$0xff]  ;;  %v74_v28 = vld [vmem:[%s5871_s0 + $0x78] sm:$0xff] }
  0x19   :  { %v108_v26 = vpack.c.bf16 %v72_v24, %v71_v23  ;;  %v109_v29 = vpack.c.bf16 %v74_v28, %v73_v27  ;;  %v4216_v31 = vld [vmem:[%s5878_s7] ss:$0 sm:$0xff]  ;;  %v4221_v32 = vld [vmem:[%s5878_s7 + $0x1] ss:$0 sm:$0xff]  ;;  %v4226_v33 = vld [vmem:[%s5878_s7 + $0x2] ss:$0 sm:$0xff] }
  0x1a   :  { %3296 = vmatpush3.bf16.msra.mxu0 %v111_v7  ;;  %v4243_v52 = vld [vmem:[%s5878_s7 + $0x3] ss:$0 sm:$0xff] }
  0x1b   :  { %3333 = vmatprep.subr.bf16.mxu0 %v5885_v30 }
  0x1d   :  { %3298 = vmatmul.mubr.msk.bf16.vlgmr.msra.gmra.mrb[0].mxu0 %vm112_vm0, %v103_v13 }
  0x1e   :  { %3301 = vmatprep.mubr.msk.bf16.mxu0 %vm112_vm0, %v104_v14 }
  0x25   :  { %3302 = vmatmul.mubr.msk.bf16.gmra.mrb[4].mxu0 %vm112_vm0, %v105_v19 }
  0x26   :  { %3305 = vmatprep.mubr.msk.bf16.mxu0 %vm112_vm0, %v106_v20 }
  0x2d   :  { %3306 = vmatmul.mubr.msk.bf16.gmra.mrb[8].mxu0 %vm112_vm0, %v107_v25 }
  0x2e   :  { %3309 = vmatprep.mubr.msk.bf16.mxu0 %vm112_vm0, %v108_v26 }
  0x35   :  { %3310 = vmatmul.mubr.msk.bf16.gmra.mrb[12].mxu0 %vm112_vm0, %v109_v29 }
  0x36   :  { %3349 = vmatprep.mubr.msk.bf16.mxu0 %vm4055_vm1, %v5885_v30 }
  0xf0   :  { %v3299_v34 = vpop.f32.mrb[0].mxu0 }
  0xf1   :  { %v171_v35 = vpop.f32.mrb[1].mxu0  ;;  %v1653_v36 = vmul.f32 %v3299_v34, %v4216_v31  ;;  %v1669_v37 = vmul.f32 %v3299_v34, %v4221_v32  ;;  %v1685_v42 = vmul.f32 %v3299_v34, %v4226_v33  ;;  %v1701_v0 = vmul.f32 %v3299_v34, %v4243_v52 }
  0xf2   :  { %v3300_v38 = vpop.f32.mrb[2].mxu0  ;;  %v1651_v39 = vmul.f32 %v4216_v31, %v171_v35  ;;  %v1667_v40 = vmul.f32 %v4221_v32, %v171_v35  ;;  %v1683_v41 = vmul.f32 %v4226_v33, %v171_v35  ;;  %v1699_v60 = vmul.f32 %v4243_v52, %v171_v35 }
  0xf3   :  { %v174_v43 = vpop.f32.mrb[3].mxu0  ;;  %v235_v44 = vpack.c.bf16 %v3300_v38, %v3299_v34  ;;  %v1654_v45 = vmul.f32 %v3300_v38, %v4216_v31  ;;  %v1670_v46 = vmul.f32 %v3300_v38, %v4221_v32  ;;  %v1686_v47 = vmul.f32 %v3300_v38, %v4226_v33 }
  0xf4   :  { %v234_v48 = vpack.c.bf16 %v174_v43, %v171_v35  ;;  %v1652_v49 = vmul.f32 %v4216_v31, %v174_v43  ;;  %v1668_v50 = vmul.f32 %v4221_v32, %v174_v43  ;;  %v1684_v51 = vmul.f32 %v4226_v33, %v174_v43 }
  0xf5   :  { %v4245_v53 = vpack.c.bf16 %v1654_v45, %v1653_v36  ;;  %v4247_v54 = vpack.c.bf16 %v1670_v46, %v1669_v37  ;;  %v4249_v55 = vpack.c.bf16 %v1686_v47, %v1685_v42  ;;  %v1700_v61 = vmul.f32 %v4243_v52, %v174_v43 }
  0xf6   :  { %v247_v56 = vsel %vm112_vm0, %v234_v48, 0  ;;  %v4252_v57 = vpack.c.bf16 %v1652_v49, %v1651_v39  ;;  %v4254_v58 = vpack.c.bf16 %v1668_v50, %v1667_v40  ;;  %v4256_v59 = vpack.c.bf16 %v1684_v51, %v1683_v41 }
  0xf7   :  { %5957 = vst [vmem:[#allocation5_spill] sm:$0xff] %v4247_v54  ;;  %5958 = vst [vmem:[#allocation6_spill] sm:$0xff] %v4249_v55  ;;  %3314 = vmatpush3.bf16.xpose.msra.mxu1 %v247_v56  ;;  %3334 = vmatpush3.bf16.xpose.msra.mxu0 %v247_v56  ;;  %v1702_v62 = vmul.f32 %v3300_v38, %v4243_v52  ;;  %v4272_v5 = vpack.c.bf16 %v1700_v61, %v1699_v60  ;;  %v250_v23 = vsel %vm112_vm0, %v235_v44, 0 }
  0xf8   :  { %5959 = vst [vmem:[#allocation7_spill] sm:$0xff] %v4254_v58  ;;  %5960 = vst [vmem:[#allocation8_spill] sm:$0xff] %v4256_v59  ;;  %v4261_v63 = vpop.f32.mrb[4].mxu0  ;;  %3315 = vmatprep.subr.bf16.mxu1 %v5885_v30  ;;  %3335 = vmatprep.subr.bf16.mxu0 %v5885_v30 }
  0xf9   :  { %v187_v1 = vpop.f32.mrb[5].mxu0  ;;  %v1657_v2 = vmul.f32 %v4261_v63, %v4216_v31  ;;  %v1673_v3 = vmul.f32 %v4261_v63, %v4221_v32  ;;  %v1689_v4 = vmul.f32 %v4261_v63, %v4226_v33  ;;  %5961 = vst [vmem:[#allocation9_spill] sm:$0xff] %v4272_v5  ;;  %v4279_v10 = vpack.c.bf16 %v1702_v62, %v1701_v0 }
  0xfa   :  { %v4274_v6 = vpop.f32.mrb[6].mxu0  ;;  %v1655_v7 = vmul.f32 %v4216_v31, %v187_v1  ;;  %v1671_v8 = vmul.f32 %v4221_v32, %v187_v1  ;;  %v1687_v9 = vmul.f32 %v4226_v33, %v187_v1  ;;  %v1703_v27 = vmul.f32 %v4243_v52, %v187_v1 }
  0xfb   :  { %5962 = vst [vmem:[#allocation10_spill] sm:$0xff] %v4279_v10  ;;  %v190_v11 = vpop.f32.mrb[7].mxu0  ;;  %v237_v12 = vpack.c.bf16 %v4274_v6, %v4261_v63  ;;  %v1658_v13 = vmul.f32 %v4274_v6, %v4216_v31  ;;  %v1674_v14 = vmul.f32 %v4274_v6, %v4221_v32  ;;  %v1690_v15 = vmul.f32 %v4274_v6, %v4226_v33 }
  0xfc   :  { %v236_v16 = vpack.c.bf16 %v190_v11, %v187_v1  ;;  %v1656_v17 = vmul.f32 %v4216_v31, %v190_v11  ;;  %v1672_v18 = vmul.f32 %v4221_v32, %v190_v11  ;;  %v1688_v19 = vmul.f32 %v4226_v33, %v190_v11 }
  0xfd   :  { %v4292_v20 = vpack.c.bf16 %v1658_v13, %v1657_v2  ;;  %v4294_v21 = vpack.c.bf16 %v1674_v14, %v1673_v3  ;;  %v4296_v22 = vpack.c.bf16 %v1690_v15, %v1689_v4  ;;  %v1704_v28 = vmul.f32 %v4243_v52, %v190_v11 }
  0xfe   :  { %v4299_v24 = vpack.c.bf16 %v1656_v17, %v1655_v7  ;;  %v4301_v25 = vpack.c.bf16 %v1672_v18, %v1671_v8  ;;  %v4303_v26 = vpack.c.bf16 %v1688_v19, %v1687_v9  ;;  %v1705_v29 = vmul.f32 %v4261_v63, %v4243_v52 }
  0xff   :  { %5963 = vst [vmem:[#allocation11_spill] sm:$0xff] %v4294_v21  ;;  %5964 = vst [vmem:[#allocation12_spill] sm:$0xff] %v4296_v22  ;;  %3316 = vmatpush3.bf16.xpose.msra.mxu1 %v250_v23  ;;  %3336 = vmatpush3.bf16.xpose.msra.mxu0 %v250_v23  ;;  %v1706_v35 = vmul.f32 %v4274_v6, %v4243_v52  ;;  %v4323_v40 = vpack.c.bf16 %v1704_v28, %v1703_v27  ;;  %v253_v2 = vsel %vm112_vm0, %v236_v16, 0 }
 0x100   :  { %5965 = vst [vmem:[#allocation13_spill] sm:$0xff] %v4301_v25  ;;  %5966 = vst [vmem:[#allocation14_spill] sm:$0xff] %v4303_v26  ;;  %3317 = vmatprep.subr.bf16.mxu1 %v5885_v30  ;;  %3337 = vmatprep.subr.bf16.mxu0 %v5885_v30  ;;  %v4311_v34 = vpop.f32.mrb[8].mxu0 }
 0x101   :  { %v4315_v36 = vpop.f32.mrb[9].mxu0  ;;  %v1661_v37 = vmul.f32 %v4311_v34, %v4216_v31  ;;  %v1677_v38 = vmul.f32 %v4311_v34, %v4221_v32  ;;  %v1693_v39 = vmul.f32 %v4311_v34, %v4226_v33  ;;  %5967 = vst [vmem:[#allocation15_spill] sm:$0xff] %v4323_v40  ;;  %v4333_v45 = vpack.c.bf16 %v1706_v35, %v1705_v29 }
 0x102   :  { %v4325_v41 = vpop.f32.mrb[10].mxu0  ;;  %v1659_v42 = vmul.f32 %v4216_v31, %v4315_v36  ;;  %v1675_v43 = vmul.f32 %v4221_v32, %v4315_v36  ;;  %v1691_v44 = vmul.f32 %v4226_v33, %v4315_v36  ;;  %v1707_v8 = vmul.f32 %v4243_v52, %v4315_v36 }
 0x103   :  { %5968 = vst [vmem:[#allocation16_spill] sm:$0xff] %v4333_v45  ;;  %v206_v46 = vpop.f32.mrb[11].mxu0  ;;  %v239_v47 = vpack.c.bf16 %v4325_v41, %v4311_v34  ;;  %v1662_v48 = vmul.f32 %v4325_v41, %v4216_v31  ;;  %v1678_v49 = vmul.f32 %v4325_v41, %v4221_v32  ;;  %v1694_v50 = vmul.f32 %v4325_v41, %v4226_v33 }
 0x104   :  { %v238_v51 = vpack.c.bf16 %v206_v46, %v4315_v36  ;;  %v1660_v56 = vmul.f32 %v4216_v31, %v206_v46  ;;  %v1676_v60 = vmul.f32 %v4221_v32, %v206_v46  ;;  %v1692_v61 = vmul.f32 %v4226_v33, %v206_v46 }
 0x105   :  { %v4347_v62 = vpack.c.bf16 %v1662_v48, %v1661_v37  ;;  %v4349_v0 = vpack.c.bf16 %v1678_v49, %v1677_v38  ;;  %v4351_v1 = vpack.c.bf16 %v1694_v50, %v1693_v39  ;;  %v1708_v9 = vmul.f32 %v4243_v52, %v206_v46 }
 0x106   :  { %v4354_v3 = vpack.c.bf16 %v1660_v56, %v1659_v42  ;;  %v4356_v4 = vpack.c.bf16 %v1676_v60, %v1675_v43  ;;  %v4358_v7 = vpack.c.bf16 %v1692_v61, %v1691_v44  ;;  %v1709_v11 = vmul.f32 %v4311_v34, %v4243_v52  ;;  %v96_v34 = vld [vmem:[%s5876_s5] sm:$0xf] }
 0x107   :  { %5969 = vst [vmem:[#allocation17_spill] sm:$0xff] %v4349_v0  ;;  %5970 = vst [vmem:[#allocation18_spill] sm:$0xff] %v4351_v1  ;;  %3318 = vmatpush3.bf16.xpose.msra.mxu1 %v253_v2  ;;  %3338 = vmatpush3.bf16.xpose.msra.mxu0 %v253_v2  ;;  %v1710_v14 = vmul.f32 %v4325_v41, %v4243_v52  ;;  %v4372_v19 = vpack.c.bf16 %v1708_v9, %v1707_v8  ;;  %v256_v60 = vsel %vm112_vm0, %v237_v12, 0  ;;  %v95_v41 = vld [vmem:[%s5875_s4] sm:$0xf] }
 0x108   :  { %5971 = vst [vmem:[#allocation19_spill] sm:$0xff] %v4356_v4  ;;  %5972 = vst [vmem:[#allocation20_spill] sm:$0xff] %v4358_v7  ;;  %3319 = vmatprep.subr.bf16.mxu1 %v5885_v30  ;;  %3339 = vmatprep.subr.bf16.mxu0 %v5885_v30  ;;  %v3311_v13 = vpop.f32.mrb[12].mxu0  ;;  %v259_v9 = vsel %vm112_vm0, %v238_v51, 0 }
 0x109   :  { %v219_v15 = vpop.f32.mrb[13].mxu0  ;;  %v1665_v16 = vmul.f32 %v3311_v13, %v4216_v31  ;;  %v1681_v17 = vmul.f32 %v3311_v13, %v4221_v32  ;;  %v1697_v18 = vmul.f32 %v3311_v13, %v4226_v33  ;;  %5973 = vst [vmem:[#allocation21_spill] sm:$0xff] %v4372_v19  ;;  %v4377_v35 = vpack.c.bf16 %v1710_v14, %v1709_v11  ;;  %v89_v19 = vld [vmem:[%s5872_s1 + $0x70] sm:$0xff] }
 0x10a   :  { %v3312_v23 = vpop.f32.mrb[14].mxu0  ;;  %v1663_v27 = vmul.f32 %v4216_v31, %v219_v15  ;;  %v1679_v28 = vmul.f32 %v4221_v32, %v219_v15  ;;  %v1695_v29 = vmul.f32 %v4226_v33, %v219_v15  ;;  %v262_v11 = vsel %vm112_vm0, %v239_v47, 0 }
 0x10b   :  { %5974 = vst [vmem:[#allocation22_spill] sm:$0xff] %v4377_v35  ;;  %v222_v36 = vpop.f32.mrb[15].mxu0  ;;  %v241_v37 = vpack.c.bf16 %v3312_v23, %v3311_v13  ;;  %v1666_v38 = vmul.f32 %v3312_v23, %v4216_v31  ;;  %v1682_v39 = vmul.f32 %v3312_v23, %v4221_v32  ;;  %v1698_v42 = vmul.f32 %v3312_v23, %v4226_v33 }
 0x10c   :  { %v240_v43 = vpack.c.bf16 %v222_v36, %v219_v15  ;;  %v1664_v44 = vmul.f32 %v4216_v31, %v222_v36  ;;  %v1680_v46 = vmul.f32 %v4221_v32, %v222_v36  ;;  %v1696_v48 = vmul.f32 %v4226_v33, %v222_v36 }
 0x10d   :  { %v1722_v49 = vpack.c.bf16 %v1666_v38, %v1665_v16  ;;  %v4385_v50 = vpack.c.bf16 %v1682_v39, %v1681_v17  ;;  %v4387_v56 = vpack.c.bf16 %v1698_v42, %v1697_v18  ;;  %v1711_v31 = vmul.f32 %v4243_v52, %v219_v15 }
 0x10e   :  { %v1721_v61 = vpack.c.bf16 %v1664_v44, %v1663_v27  ;;  %v4393_v2 = vpack.c.bf16 %v1680_v46, %v1679_v28  ;;  %v4395_v8 = vpack.c.bf16 %v1696_v48, %v1695_v29  ;;  %v1712_v32 = vmul.f32 %v4243_v52, %v222_v36 }
 0x10f   :  { %5975 = vst [vmem:[#allocation23_spill] sm:$0xff] %v4385_v50  ;;  %5976 = vst [vmem:[#allocation24_spill] sm:$0xff] %v4387_v56  ;;  %3320 = vmatpush3.bf16.xpose.msra.mxu1 %v256_v60  ;;  %3340 = vmatpush3.bf16.xpose.msra.mxu0 %v256_v60  ;;  %v1713_v33 = vmul.f32 %v3311_v13, %v4243_v52  ;;  %v1714_v63 = vmul.f32 %v3312_v23, %v4243_v52  ;;  %v265_v52 = vsel %vm112_vm0, %v240_v43, 0  ;;  %v4056_v39 = vmov 1966171168  }
 0x110   :  { %5977 = vst [vmem:[#allocation25_spill] sm:$0xff] %v4393_v2  ;;  %5978 = vst [vmem:[#allocation26_spill] sm:$0xff] %v4395_v8  ;;  %3321 = vmatprep.subr.bf16.mxu1 %v5885_v30  ;;  %3341 = vmatprep.subr.bf16.mxu0 %v5885_v30  ;;  %v4403_v6 = vpack.c.bf16 %v1712_v32, %v1711_v31  ;;  %v268_v51 = vsel %vm112_vm0, %v241_v37, 0  ;;  %v310_v47 = vpack.c.bf16 %v96_v34, %v96_v34  ;;  %v75_v31 = vld [vmem:[%s5872_s1] sm:$0xff] }
 0x111   :  { %v4405_v12 = vpack.c.bf16 %v1714_v63, %v1713_v33  ;;  %v242_v13 = vpack.c.bf16 %v95_v41, %v95_v41  ;;  %v624_v42 = vunpack.c.l.s4 %v4056_v39 }
 0x112   :  { %5979 = vst [vmem:[#allocation27_spill] sm:$0xff] %v4403_v6  ;;  %v87_v6 = vld [vmem:[%s5872_s1 + $0x60] sm:$0xff] }
 0x113   :  { %5980 = vst [vmem:[#allocation28_spill] sm:$0xff] %v4405_v12  ;;  %v625_v43 = vunpack.c.0.s8 %v624_v42 }
 0x117   :  { %3322 = vmatpush3.bf16.xpose.msra.mxu1 %v259_v9  ;;  %3342 = vmatpush3.bf16.xpose.msra.mxu0 %v259_v9  ;;  %v3108_v9 = vadd.f32 -1.0, %v75_v31 }
 0x118   :  { %3323 = vmatprep.subr.bf16.mxu1 %v5885_v30  ;;  %3343 = vmatprep.subr.bf16.mxu0 %v5885_v30 }
 0x11f   :  { %3324 = vmatpush3.bf16.xpose.msra.mxu1 %v262_v11  ;;  %3344 = vmatpush3.bf16.xpose.msra.mxu0 %v262_v11  ;;  %v77_v11 = vld [vmem:[%s5872_s1 + $0x10] sm:$0xff] }
 0x120   :  { %3325 = vmatprep.subr.bf16.mxu1 %v5885_v30  ;;  %3345 = vmatprep.subr.bf16.mxu0 %v5885_v30  ;;  %v3110_v34 = vadd.f32 -1.0, %v77_v11 }
 0x127   :  { %3326 = vmatpush3.bf16.xpose.msra.mxu1 %v265_v52  ;;  %3346 = vmatpush3.bf16.xpose.msra.mxu0 %v265_v52 }
 0x128   :  { %3327 = vmatprep.subr.bf16.mxu1 %v5885_v30  ;;  %3347 = vmatprep.subr.bf16.mxu0 %v5885_v30 }
 0x12f   :  { %3328 = vmatpush3.bf16.xpose.msra.mxu1 %v268_v51  ;;  %3348 = vmatpush3.bf16.xpose.msra.mxu0 %v268_v51 }
 0x130   :  { %3353 = vmatprep.subr.bf16.mxu1 %v4252_v57 }
 0x136   :  { %3350 = vmatmul.mubr.msk.bf16.vlgmr.msra.gmra.mrb[16].mxu0 %vm112_vm0, %v310_v47  ;;  %3330 = vmatmul.mubr.msk.bf16.vlgmr.msra.gmra.mrb[0].mxu1 %vm112_vm0, %v242_v13 }
 0x137   :  { %3354 = vmatpush3.bf16.msra.mxu1 %v4252_v57 }
 0x138   :  { %3355 = vmatprep.subr.bf16.mxu1 %v4245_v53 }
 0x13b   :  { %3356 = vmatpush3.bf16.msra.mxu1 %v4245_v53  ;;  %v354_v53 = vlaneseq }
 0x13c   :  { %3357 = vmatprep.subr.bf16.mxu1 %v4299_v24 }
 0x13d   :  { %v4441_v57 = vshrl.u32 %v354_v53, 7  ;;  %v4488_v53 = vmul.f32 1e+30, %v3108_v9 }
 0x13f   :  { %3358 = vmatpush3.bf16.msra.mxu1 %v4299_v24  ;;  %v4444_v24 = vsub.s32 0, %v4441_v57  ;;  %v423_v27 = vsub.s32 1, %v4441_v57  ;;  %v490_v29 = vsub.s32 2, %v4441_v57  ;;  %v557_v37 = vsub.s32 3, %v4441_v57 }
 0x140   :  { %3359 = vmatprep.subr.bf16.mxu1 %v4292_v20  ;;  %v4459_v44 = vsub.s32 %v625_v43, %v4441_v57  ;;  %v78_v57 = vld [vmem:[%s5872_s1 + $0x18] sm:$0xff] }
 0x141   :  { %5981 = vst [vmem:[#allocation29_spill] sm:$0xff] %v4444_v24 }
 0x143   :  { %3360 = vmatpush3.bf16.msra.mxu1 %v4292_v20 }
 0x144   :  { %3361 = vmatprep.subr.bf16.mxu1 %v4354_v3 }
 0x147   :  { %3362 = vmatpush3.bf16.msra.mxu1 %v4354_v3 }
 0x148   :  { %3363 = vmatprep.subr.bf16.mxu1 %v4347_v62 }
 0x14b   :  { %3364 = vmatpush3.bf16.msra.mxu1 %v4347_v62 }
 0x14c   :  { %3365 = vmatprep.subr.bf16.mxu1 %v1721_v61 }
 0x14f   :  { %3366 = vmatpush3.bf16.msra.mxu1 %v1721_v61 }
 0x150   :  { %3367 = vmatprep.subr.bf16.mxu1 %v1722_v49 }
 0x153   :  { %3368 = vmatpush3.bf16.msra.mxu1 %v1722_v49 }
 0x154   :  { %3385 = vmatprep.subr.bf16.mxu1 %v4254_v58 }
 0x209   :  { %v348_v20 = vpop.f32.mrb[16].mxu0  ;;  %v4446_v14 = vpop.f32.mrb[0].mxu1 }
 0x20a   :  { %v357_v3 = vrot.slane %v348_v20, %v4444_v24  ;;  %v3351_v15 = vpop.f32.mrb[17].mxu0  ;;  %v3331_v16 = vpop.f32.mrb[1].mxu1  ;;  %v424_v28 = vrot.slane %v348_v20, %v423_v27  ;;  %v491_v36 = vrot.slane %v348_v20, %v490_v29  ;;  %v4452_v38 = vrot.slane %v348_v20, %v557_v37 }
 0x20b   :  { %v351_v62 = vpop.f32.mrb[18].mxu0  ;;  %v307_v17 = vpop.f32.mrb[2].mxu1  ;;  %v4463_v46 = vrot.slane %v4446_v14, %v4459_v44  ;;  %v3111_v15 = vadd.f32 -1.0, %v78_v57 }
 0x20c   :  { %367 = vbcast.lane.b32.xlu1 %v357_v3, 272  ;;  %359 = vbcast.lane.b32.xlu0 %v357_v3, 256  ;;  %v3352_v18 = vpop.f32.mrb[19].mxu0  ;;  %v3332_v23 = vpop.f32.mrb[3].mxu1 }
 0x20d   :  { %v4467_v48 = vrot.slane %v4463_v46, %v4459_v44  ;;  %v79_v23 = vld [vmem:[%s5872_s1 + $0x20] sm:$0xff]  ;;  %v4507_v29 = vmul.f32 1e+30, %v3111_v15 }
 0x20f   :  { %v4472_v49 = vrot.slane %v4467_v48, %v4444_v24 }
 0x210   :  { %371 = vbcast.lane.b32.xlu1 %v357_v3, 280  ;;  %363 = vbcast.lane.b32.xlu0 %v357_v3, 264 }
 0x214   :  { %379 = vbcast.lane.b32.xlu1 %v357_v3, 296  ;;  %375 = vbcast.lane.b32.xlu0 %v357_v3, 288 }
 0x218   :  { %387 = vbcast.lane.b32.xlu1 %v357_v3, 312  ;;  %383 = vbcast.lane.b32.xlu0 %v357_v3, 304 }
 0x21c   :  { %395 = vbcast.lane.b32.xlu1 %v357_v3, 328  ;;  %391 = vbcast.lane.b32.xlu0 %v357_v3, 320 }
 0x220   :  { %403 = vbcast.lane.b32.xlu1 %v357_v3, 344  ;;  %399 = vbcast.lane.b32.xlu0 %v357_v3, 336 }
 0x224   :  { %411 = vbcast.lane.b32.xlu1 %v357_v3, 360  ;;  %407 = vbcast.lane.b32.xlu0 %v357_v3, 352 }
 0x228   :  { %419 = vbcast.lane.b32.xlu1 %v357_v3, 376  ;;  %415 = vbcast.lane.b32.xlu0 %v357_v3, 368  ;;  %v4496_v3 = vmul.f32 1e+30, %v3110_v34  ;;  %v82_v34 = vld [vmem:[%s5872_s1 + $0x38] sm:$0xff] }
 0x229   :  { %v3115_v57 = vadd.f32 -1.0, %v82_v34 }
 0x22c   :  { %430 = vbcast.lane.b32.xlu1 %v424_v28, 264  ;;  %426 = vbcast.lane.b32.xlu0 %v424_v28, 256 }
 0x230   :  { %438 = vbcast.lane.b32.xlu1 %v424_v28, 280  ;;  %434 = vbcast.lane.b32.xlu0 %v424_v28, 272 }
 0x234   :  { %446 = vbcast.lane.b32.xlu1 %v424_v28, 296  ;;  %442 = vbcast.lane.b32.xlu0 %v424_v28, 288 }
 0x238   :  { %454 = vbcast.lane.b32.xlu1 %v424_v28, 312  ;;  %450 = vbcast.lane.b32.xlu0 %v424_v28, 304 }
 0x23c   :  { %462 = vbcast.lane.b32.xlu1 %v424_v28, 328  ;;  %458 = vbcast.lane.b32.xlu0 %v424_v28, 320 }
 0x240   :  { %470 = vbcast.lane.b32.xlu1 %v424_v28, 344  ;;  %466 = vbcast.lane.b32.xlu0 %v424_v28, 336 }
 0x244   :  { %478 = vbcast.lane.b32.xlu1 %v424_v28, 360  ;;  %474 = vbcast.lane.b32.xlu0 %v424_v28, 352 }
 0x248   :  { %486 = vbcast.lane.b32.xlu1 %v424_v28, 376  ;;  %482 = vbcast.lane.b32.xlu0 %v424_v28, 368 }
 0x24c   :  { %497 = vbcast.lane.b32.xlu1 %v491_v36, 264  ;;  %493 = vbcast.lane.b32.xlu0 %v491_v36, 256 }
 0x250   :  { %505 = vbcast.lane.b32.xlu1 %v491_v36, 280  ;;  %501 = vbcast.lane.b32.xlu0 %v491_v36, 272 }
 0x254   :  { %509 = vbcast.lane.b32.xlu1 %v491_v36, 288  ;;  %513 = vbcast.lane.b32.xlu0 %v491_v36, 296 }
 0x258   :  { %517 = vbcast.lane.b32.xlu1 %v491_v36, 304  ;;  %529 = vbcast.lane.b32.xlu0 %v491_v36, 328 }
 0x25c   :  { %521 = vbcast.lane.b32.xlu1 %v491_v36, 312  ;;  %545 = vbcast.lane.b32.xlu0 %v491_v36, 360 }
 0x260   :  { %525 = vbcast.lane.b32.xlu1 %v491_v36, 320  ;;  %564 = vbcast.lane.b32.xlu0 %v4452_v38, 264 }
 0x264   :  { %533 = vbcast.lane.b32.xlu1 %v491_v36, 336  ;;  %580 = vbcast.lane.b32.xlu0 %v4452_v38, 296 }
 0x268   :  { %537 = vbcast.lane.b32.xlu1 %v491_v36, 344  ;;  %596 = vbcast.lane.b32.xlu0 %v4452_v38, 328 }
 0x26c   :  { %541 = vbcast.lane.b32.xlu1 %v491_v36, 352  ;;  %612 = vbcast.lane.b32.xlu0 %v4452_v38, 360 }
 0x270   :  { %549 = vbcast.lane.b32.xlu1 %v491_v36, 368 }
 0x274   :  { %553 = vbcast.lane.b32.xlu1 %v491_v36, 376  ;;  %v3112_v36 = vadd.f32 -1.0, %v79_v23 }
 0x278   :  { %560 = vbcast.lane.b32.xlu1 %v4452_v38, 256 }
 0x27c   :  { %568 = vbcast.lane.b32.xlu1 %v4452_v38, 272 }
 0x27e   :  { %v368_v60 = vpop.permute.xlu1 %367  ;;  %v360_v61 = vpop.permute.xlu0 %359 }
 0x27f   :  { %v667_v32 = vadd.f32 %v4472_v49, %v360_v61  ;;  %v669_v33 = vadd.f32 %v4472_v49, %v368_v60  ;;  %v81_v60 = vld [vmem:[%s5872_s1 + $0x30] sm:$0xff] }
 0x280   :  { %572 = vbcast.lane.b32.xlu1 %v4452_v38, 280 }
 0x281   :  { %v731_v63 = vmul.f32 0.2, %v667_v32  ;;  %v733_v41 = vmul.f32 0.2, %v669_v33 }
 0x282   :  { %v372_v52 = vpop.permute.xlu1 %371  ;;  %v4484_v51 = vpop.permute.xlu0 %363 }
 0x283   :  { %v670_v47 = vadd.f32 %v4472_v49, %v372_v52  ;;  %v795_v13 = vmax.f32 %v667_v32, %v731_v63  ;;  %v797_v18 = vmax.f32 %v669_v33, %v733_v41  ;;  %v4520_v32 = vmul.f32 1e+30, %v3112_v36 }
 0x284   :  { %576 = vbcast.lane.b32.xlu1 %v4452_v38, 288  ;;  %v3114_v33 = vadd.f32 -1.0, %v81_v60 }
 0x285   :  { %v734_v16 = vmul.f32 0.2, %v670_v47  ;;  %v4500_v17 = vadd.f32 %v4488_v53, %v795_v13  ;;  %v4511_v42 = vadd.f32 %v4496_v3, %v797_v18  ;;  %v83_v18 = vld [vmem:[%s5872_s1 + $0x40] sm:$0xff] }
 0x286   :  { %v4493_v20 = vpop.permute.xlu1 %379  ;;  %v376_v14 = vpop.permute.xlu0 %375  ;;  %v4531_v13 = vmul.f32 1e+30, %v3114_v33  ;;  %v3116_v36 = vadd.f32 -1.0, %v83_v18 }
 0x287   :  { %v671_v62 = vadd.f32 %v4472_v49, %v376_v14  ;;  %v798_v43 = vmax.f32 %v670_v47, %v734_v16 }
 0x288   :  { %584 = vbcast.lane.b32.xlu1 %v4452_v38, 304 }
 0x289   :  { %v735_v37 = vmul.f32 0.2, %v671_v62  ;;  %v4524_v11 = vadd.f32 %v4507_v29, %v798_v43 }
 0x28a   :  { %v388_v27 = vpop.permute.xlu1 %387  ;;  %v384_v28 = vpop.permute.xlu0 %383 }
 0x28b   :  { %955 = vmax.xlane.f32.xlu0 %v4500_v17  ;;  %v673_v39 = vadd.f32 %v4472_v49, %v384_v28  ;;  %v674_v63 = vadd.f32 %v4472_v49, %v388_v27  ;;  %v799_v52 = vmax.f32 %v671_v62, %v735_v37  ;;  %v4544_v28 = vmul.f32 1e+30, %v3115_v57 }
 0x28c   :  { %588 = vbcast.lane.b32.xlu1 %v4452_v38, 312 }
 0x28d   :  { %v737_v9 = vmul.f32 0.2, %v673_v39  ;;  %v738_v14 = vmul.f32 0.2, %v674_v63  ;;  %v4535_v16 = vadd.f32 %v4520_v32, %v799_v52  ;;  %v4555_v52 = vmul.f32 1e+30, %v3116_v36 }
 0x28e   :  { %v4516_v61 = vpop.permute.xlu1 %395  ;;  %v392_v31 = vpop.permute.xlu0 %391  ;;  %v630_v36 = vcombine.high %v4463_v46, %v4463_v46 }
 0x28f   :  { %959 = vmax.xlane.f32.xlu0 %v4511_v42  ;;  %v675_v15 = vadd.f32 %v4472_v49, %v392_v31  ;;  %v801_v62 = vmax.f32 %v673_v39, %v737_v9  ;;  %v802_v39 = vmax.f32 %v674_v63, %v738_v14  ;;  %v85_v31 = vld [vmem:[%s5872_s1 + $0x50] sm:$0xff]  ;;  %v86_v14 = vld [vmem:[%s5872_s1 + $0x58] sm:$0xff] }
 0x290   :  { %592 = vbcast.lane.b32.xlu1 %v4452_v38, 320  ;;  %v3118_v34 = vadd.f32 -1.0, %v85_v31  ;;  %v3119_v31 = vadd.f32 -1.0, %v86_v14  ;;  %v4581_v46 = vrot.slane %v630_v36, %v4459_v44  ;;  %v3120_v14 = vadd.f32 -1.0, %v87_v6 }
 0x291   :  { %v739_v37 = vmul.f32 0.2, %v675_v15  ;;  %v4548_v60 = vadd.f32 %v4531_v13, %v801_v62  ;;  %v4559_v62 = vadd.f32 %v4544_v28, %v802_v39  ;;  %v3122_v44 = vadd.f32 -1.0, %v89_v19 }
 0x292   :  { %v404_v41 = vpop.permute.xlu1 %403  ;;  %v400_v47 = vpop.permute.xlu0 %399  ;;  %v4598_v6 = vmul.f32 1e+30, %v3120_v14 }
 0x293   :  { %961 = vmax.xlane.f32.xlu0 %v4524_v11  ;;  %v677_v43 = vadd.f32 %v4472_v49, %v400_v47  ;;  %v678_v57 = vadd.f32 %v4472_v49, %v404_v41  ;;  %v803_v63 = vmax.f32 %v675_v15, %v739_v37  ;;  %v4570_v41 = vmul.f32 1e+30, %v3118_v34 }
 0x294   :  { %600 = vbcast.lane.b32.xlu1 %v4452_v38, 336  ;;  %v4584_v34 = vmul.f32 1e+30, %v3119_v31  ;;  %v90_v31 = vld [vmem:[%s5872_s1 + $0x78] sm:$0xff]  ;;  %v4610_v5 = vmul.f32 1e+30, %v3122_v44 }
 0x295   :  { %v741_v47 = vmul.f32 0.2, %v677_v43  ;;  %v742_v39 = vmul.f32 0.2, %v678_v57  ;;  %v4574_v37 = vadd.f32 %v4555_v52, %v803_v63  ;;  %v3123_v14 = vadd.f32 -1.0, %v90_v31 }
 0x296   :  { %v4540_v23 = vpop.permute.xlu1 %411  ;;  %v408_v27 = vpop.permute.xlu0 %407 }
 0x297   :  { %963 = vmax.xlane.f32.xlu0 %v4535_v16  ;;  %v679_v15 = vadd.f32 %v4472_v49, %v408_v27  ;;  %v805_v12 = vmax.f32 %v677_v43, %v741_v47  ;;  %v806_v47 = vmax.f32 %v678_v57, %v742_v39 }
 0x298   :  { %604 = vbcast.lane.b32.xlu1 %v4452_v38, 344 }
 0x299   :  { %v743_v27 = vmul.f32 0.2, %v679_v15  ;;  %v4588_v43 = vadd.f32 %v4570_v41, %v805_v12  ;;  %v4602_v57 = vadd.f32 %v4584_v34, %v806_v47 }
 0x29a   :  { %v420_v33 = vpop.permute.xlu1 %419  ;;  %v416_v9 = vpop.permute.xlu0 %415 }
 0x29b   :  { %967 = vmax.xlane.f32.xlu0 %v4548_v60  ;;  %v681_v63 = vadd.f32 %v4472_v49, %v416_v9  ;;  %v682_v9 = vadd.f32 %v4472_v49, %v420_v33  ;;  %5982 = vst [vmem:[#allocation30_spill] sm:$0xff] %v4602_v57  ;;  %v807_v36 = vmax.f32 %v679_v15, %v743_v27  ;;  %v4619_v27 = vmul.f32 1e+30, %v3123_v14 }
 0x29c   :  { %608 = vbcast.lane.b32.xlu1 %v4452_v38, 352 }
 0x29d   :  { %v745_v12 = vmul.f32 0.2, %v681_v63  ;;  %v746_v19 = vmul.f32 0.2, %v682_v9  ;;  %v4614_v56 = vadd.f32 %v4598_v6, %v807_v36 }
 0x29e   :  { %v4564_v18 = vpop.permute.xlu1 %430  ;;  %v427_v30 = vpop.permute.xlu0 %426 }
 0x29f   :  { %969 = vmax.xlane.f32.xlu0 %v4559_v62  ;;  %v809_v47 = vmax.f32 %v681_v63, %v745_v12  ;;  %v810_v31 = vmax.f32 %v682_v9, %v746_v19 }
 0x2a0   :  { %616 = vbcast.lane.b32.xlu1 %v4452_v38, 368 }
 0x2a1   :  { %v4623_v44 = vadd.f32 %v4610_v5, %v809_v47  ;;  %v4630_v36 = vadd.f32 %v4619_v27, %v810_v31 }
 0x2a2   :  { %v439_v35 = vpop.permute.xlu1 %438  ;;  %v435_v45 = vpop.permute.xlu0 %434 }
 0x2a3   :  { %971 = vmax.xlane.f32.xlu0 %v4574_v37  ;;  %5983 = vst [vmem:[#allocation31_spill] sm:$0xff] %v4630_v36 }
 0x2a4   :  { %620 = vbcast.lane.b32.xlu1 %v4452_v38, 376  ;;  %v4596_v38 = vrot.slane %v4581_v46, %v4444_v24 }
 0x2a6   :  { %v447_v40 = vpop.permute.xlu1 %446  ;;  %v4608_v10 = vpop.permute.xlu0 %442  ;;  %v683_v33 = vadd.f32 %v4596_v38, %v427_v30  ;;  %v685_v1 = vadd.f32 %v4596_v38, %v435_v45  ;;  %v686_v63 = vadd.f32 %v4596_v38, %v439_v35  ;;  %v668_v35 = vadd.f32 %v4472_v49, %v4484_v51 }
 0x2a7   :  { %975 = vmax.xlane.f32.xlu0 %v4588_v43  ;;  %v688_v9 = vadd.f32 %v4596_v38, %v447_v40 }
 0x2a8   :  { %v747_v8 = vmul.f32 0.2, %v683_v33  ;;  %v749_v12 = vmul.f32 0.2, %v685_v1  ;;  %v750_v47 = vmul.f32 0.2, %v686_v63 }
 0x2a9   :  { %v752_v40 = vmul.f32 0.2, %v688_v9  ;;  %v732_v51 = vmul.f32 0.2, %v668_v35 }
 0x2aa   :  { %v455_v39 = vpop.permute.xlu1 %454  ;;  %v4625_v7 = vpop.permute.xlu0 %450  ;;  %v811_v14 = vmax.f32 %v683_v33, %v747_v8  ;;  %v813_v26 = vmax.f32 %v685_v1, %v749_v12  ;;  %v76_v8 = vld [vmem:[%s5872_s1 + $0x8] sm:$0xff]  ;;  %v814_v12 = vmax.f32 %v686_v63, %v750_v47 }
 0x2ab   :  { %977 = vmax.xlane.f32.xlu0 %v4602_v57  ;;  %v80_v33 = vld [vmem:[%s5872_s1 + $0x28] sm:$0xff]  ;;  %v690_v31 = vadd.f32 %v4596_v38, %v455_v39  ;;  %v3109_v2 = vadd.f32 -1.0, %v76_v8  ;;  %v796_v8 = vmax.f32 %v668_v35, %v732_v51  ;;  %v680_v35 = vadd.f32 %v4472_v49, %v4540_v23 }
 0x2ac   :  { %v4637_v19 = vadd.f32 %v4488_v53, %v811_v14  ;;  %v4652_v1 = vadd.f32 %v4496_v3, %v813_v26  ;;  %v672_v14 = vadd.f32 %v4472_v49, %v4493_v20  ;;  %v3113_v0 = vadd.f32 -1.0, %v80_v33  ;;  %v84_v63 = vld [vmem:[%s5872_s1 + $0x48] sm:$0xff] }
 0x2ad   :  { %v754_v4 = vmul.f32 0.2, %v690_v31  ;;  %v4661_v39 = vadd.f32 %v4507_v29, %v814_v12  ;;  %v816_v26 = vmax.f32 %v688_v9, %v752_v40  ;;  %v676_v20 = vadd.f32 %v4472_v49, %v4516_v61  ;;  %v88_v61 = vld [vmem:[%s5872_s1 + $0x68] sm:$0xff] }
 0x2ae   :  { %v4616_v15 = vpop.permute.xlu1 %462  ;;  %v459_v45 = vpop.permute.xlu0 %458  ;;  %v736_v47 = vmul.f32 0.2, %v672_v14  ;;  %v4670_v54 = vmul.f32 1e+30, %v3109_v2  ;;  %v3117_v9 = vadd.f32 -1.0, %v84_v63 }
 0x2af   :  { %979 = vmax.xlane.f32.xlu0 %v4614_v56  ;;  %v691_v21 = vadd.f32 %v4596_v38, %v459_v45  ;;  %5984 = vst [vmem:[#allocation32_spill] sm:$0xff] %v4661_v39  ;;  %v4673_v45 = vmul.f32 1e+30, %v3113_v0  ;;  %v740_v2 = vmul.f32 0.2, %v676_v20 }
 0x2b0   :  { %v4689_v51 = vadd.f32 %v4670_v54, %v796_v8  ;;  %v800_v63 = vmax.f32 %v672_v14, %v736_v47  ;;  %v744_v23 = vmul.f32 0.2, %v680_v35  ;;  %v684_v8 = vadd.f32 %v4596_v38, %v4564_v18 }
 0x2b1   :  { %v755_v40 = vmul.f32 0.2, %v691_v21  ;;  %v4679_v58 = vadd.f32 %v4673_v45, %v816_v26 }
 0x2b2   :  { %v471_v30 = vpop.permute.xlu1 %470  ;;  %v467_v59 = vpop.permute.xlu0 %466  ;;  %v4704_v47 = vadd.f32 %v4673_v45, %v800_v63  ;;  %v687_v63 = vadd.f32 %v4596_v38, %v4608_v10 }
 0x2b3   :  { %983 = vmax.xlane.f32.xlu0 %v4623_v44  ;;  %v693_v12 = vadd.f32 %v4596_v38, %v467_v59  ;;  %5985 = vst [vmem:[#allocation33_spill] sm:$0xff] %v4679_v58  ;;  %v4693_v59 = vmul.f32 1e+30, %v3117_v9  ;;  %v819_v49 = vmax.f32 %v691_v21, %v755_v40  ;;  %v804_v9 = vmax.f32 %v676_v20, %v740_v2 }
 0x2b4   :  { %v808_v2 = vmax.f32 %v680_v35, %v744_v23  ;;  %v689_v35 = vadd.f32 %v4596_v38, %v4625_v7 }
 0x2b5   :  { %v757_v26 = vmul.f32 0.2, %v693_v12  ;;  %v4713_v40 = vadd.f32 %v4555_v52, %v819_v49  ;;  %v4720_v20 = vadd.f32 %v4693_v59, %v804_v9 }
 0x2b6   :  { %v4632_v22 = vpop.permute.xlu1 %478  ;;  %v4675_v33 = vpop.permute.xlu0 %474 }
 0x2b7   :  { %985 = vmax.xlane.f32.xlu0 %v4630_v36  ;;  %v818_v36 = vmax.f32 %v690_v31, %v754_v4  ;;  %v3121_v4 = vadd.f32 -1.0, %v88_v61  ;;  %v694_v31 = vadd.f32 %v4596_v38, %v471_v30  ;;  %v696_v21 = vadd.f32 %v4596_v38, %v4632_v22  ;;  %5987 = vst [vmem:[#allocation35_spill] sm:$0xff] %v4713_v40 }
 0x2b8   :  { %v821_v18 = vmax.f32 %v693_v12, %v757_v26  ;;  %v748_v61 = vmul.f32 0.2, %v684_v8  ;;  %5988 = vst [vmem:[#allocation36_spill] sm:$0xff] %v4720_v20 }
 0x2b9   :  { %v4708_v30 = vmul.f32 1e+30, %v3121_v4  ;;  %v645_v4 = vcombine.high %v4467_v48, %v4467_v48  ;;  %v760_v49 = vmul.f32 0.2, %v696_v21 }
 0x2ba   :  { %v4641_v55 = vpop.permute.xlu1 %486  ;;  %v483_v57 = vpop.permute.xlu0 %482  ;;  %v4729_v10 = vadd.f32 %v4570_v41, %v821_v18  ;;  %v812_v9 = vmax.f32 %v684_v8, %v748_v61  ;;  %v753_v18 = vmul.f32 0.2, %v689_v35 }
 0x2bb   :  { %987 = vmax.xlane.f32.xlu0 %v4637_v19  ;;  %v698_v12 = vadd.f32 %v4596_v38, %v4641_v55  ;;  %v4736_v48 = vadd.f32 %v4708_v30, %v808_v2  ;;  %v824_v7 = vmax.f32 %v696_v21, %v760_v49  ;;  %v692_v2 = vadd.f32 %v4596_v38, %v4616_v15 }
 0x2bc   :  { %5989 = vst [vmem:[#allocation37_spill] sm:$0xff] %v4729_v10  ;;  %v4752_v61 = vadd.f32 %v4670_v54, %v812_v9  ;;  %v695_v15 = vadd.f32 %v4596_v38, %v4675_v33  ;;  %v697_v33 = vadd.f32 %v4596_v38, %v483_v57 }
 0x2bd   :  { %5990 = vst [vmem:[#allocation38_spill] sm:$0xff] %v4736_v48  ;;  %v762_v55 = vmul.f32 0.2, %v698_v12  ;;  %v4758_v21 = vadd.f32 %v4708_v30, %v824_v7 }
 0x2be   :  { %v4656_v50 = vpop.permute.xlu1 %497  ;;  %v494_v22 = vpop.permute.xlu0 %493  ;;  %5992 = vst [vmem:[#allocation40_spill] sm:$0xff] %v4752_v61  ;;  %v759_v7 = vmul.f32 0.2, %v695_v15 }
 0x2bf   :  { %991 = vmax.xlane.f32.xlu0 %v4652_v1  ;;  %5993 = vst [vmem:[#allocation41_spill] sm:$0xff] %v4758_v21  ;;  %v826_v49 = vmax.f32 %v698_v12, %v762_v55 }
 0x2c1   :  { %v4772_v12 = vadd.f32 %v4619_v27, %v826_v49 }
 0x2c2   :  { %v4668_v25 = vpop.permute.xlu1 %505 }
 0x2c3   :  { %993 = vmax.xlane.f32.xlu0 %v4661_v39  ;;  %v4697_v39 = vadd.f32 %v4544_v28, %v818_v36  ;;  %v758_v36 = vmul.f32 0.2, %v694_v31  ;;  %5994 = vst [vmem:[#allocation42_spill] sm:$0xff] %v4772_v12 }
 0x2c5   :  { %5986 = vst [vmem:[#allocation34_spill] sm:$0xff] %v4697_v39  ;;  %v822_v26 = vmax.f32 %v694_v31, %v758_v36 }
 0x2c6   :  { %v4686_v0 = vpop.permute.xlu1 %509 }
 0x2c7   :  { %997 = vmax.xlane.f32.xlu0 %v4679_v58  ;;  %v4745_v36 = vadd.f32 %v4584_v34, %v822_v26 }
 0x2c8   :  { %957 = vmax.xlane.f32.xlu1 %v4689_v51 }
 0x2c9   :  { %5991 = vst [vmem:[#allocation39_spill] sm:$0xff] %v4745_v36 }
 0x2ca   :  { %v4701_v14 = vpop.permute.xlu1 %517 }
 0x2cb   :  { %1001 = vmax.xlane.f32.xlu0 %v4697_v39  ;;  %v751_v39 = vmul.f32 0.2, %v687_v63 }
 0x2cc   :  { %965 = vmax.xlane.f32.xlu1 %v4704_v47 }
 0x2ce   :  { %v4717_v58 = vpop.permute.xlu1 %521 }
 0x2cf   :  { %1003 = vmax.xlane.f32.xlu0 %v4713_v40  ;;  %v4739_v40 = vrot.slane %v645_v4, %v4444_v24  ;;  %v815_v4 = vmax.f32 %v687_v63, %v751_v39  ;;  %v817_v39 = vmax.f32 %v689_v35, %v753_v18 }
 0x2d0   :  { %973 = vmax.xlane.f32.xlu1 %v4720_v20  ;;  %v502_v20 = vpop.permute.xlu0 %501 }
 0x2d1   :  { %v699_v31 = vadd.f32 %v4739_v40, %v494_v22  ;;  %v701_v26 = vadd.f32 %v4739_v40, %v502_v20  ;;  %v4765_v9 = vadd.f32 %v4520_v32, %v815_v4  ;;  %v702_v63 = vadd.f32 %v4739_v40, %v4668_v25 }
 0x2d2   :  { %v4733_v23 = vpop.permute.xlu1 %525  ;;  %v4776_v4 = vadd.f32 %v4531_v13, %v817_v39  ;;  %v700_v38 = vadd.f32 %v4739_v40, %v4656_v50  ;;  %v703_v50 = vadd.f32 %v4739_v40, %v4686_v0  ;;  %v705_v0 = vadd.f32 %v4739_v40, %v4701_v14 }
 0x2d3   :  { %1007 = vmax.xlane.f32.xlu0 %v4729_v10  ;;  %v763_v22 = vmul.f32 0.2, %v699_v31  ;;  %v756_v10 = vmul.f32 0.2, %v692_v2  ;;  %v765_v20 = vmul.f32 0.2, %v701_v26 }
 0x2d4   :  { %981 = vmax.xlane.f32.xlu1 %v4736_v48  ;;  %v766_v18 = vmul.f32 0.2, %v702_v63 }
 0x2d5   :  { %v827_v55 = vmax.f32 %v699_v31, %v763_v22  ;;  %v820_v35 = vmax.f32 %v692_v2, %v756_v10  ;;  %v829_v31 = vmax.f32 %v701_v26, %v765_v20  ;;  %v761_v22 = vmul.f32 0.2, %v697_v33 }
 0x2d6   :  { %v4749_v8 = vpop.permute.xlu1 %533  ;;  %v823_v10 = vmax.f32 %v695_v15, %v759_v7  ;;  %v830_v2 = vmax.f32 %v702_v63, %v766_v18  ;;  %v764_v20 = vmul.f32 0.2, %v700_v38 }
 0x2d7   :  { %1009 = vmax.xlane.f32.xlu0 %v4745_v36  ;;  %v514_v36 = vpop.permute.xlu0 %513  ;;  %v4782_v49 = vadd.f32 %v4488_v53, %v827_v55  ;;  %v4787_v39 = vadd.f32 %v4693_v59, %v820_v35  ;;  %v4794_v26 = vadd.f32 %v4496_v3, %v829_v31  ;;  %v825_v15 = vmax.f32 %v697_v33, %v761_v22 }
 0x2d8   :  { %989 = vmax.xlane.f32.xlu1 %v4752_v61  ;;  %v704_v25 = vadd.f32 %v4739_v40, %v514_v36  ;;  %v706_v36 = vadd.f32 %v4739_v40, %v4717_v58  ;;  %v4799_v35 = vadd.f32 %v4598_v6, %v823_v10  ;;  %v707_v58 = vadd.f32 %v4739_v40, %v4733_v23 }
 0x2d9   :  { %5995 = vst [vmem:[#allocation43_spill] sm:$0xff] %v4787_v39  ;;  %5996 = vst [vmem:[#allocation44_spill] sm:$0xff] %v4794_v26  ;;  %v4806_v18 = vadd.f32 %v4507_v29, %v830_v2  ;;  %v828_v31 = vmax.f32 %v700_v38, %v764_v20  ;;  %v4811_v33 = vadd.f32 %v4610_v5, %v825_v15  ;;  %v769_v20 = vmul.f32 0.2, %v705_v0 }
 0x2da   :  { %v4762_v48 = vpop.permute.xlu1 %537  ;;  %v770_v7 = vmul.f32 0.2, %v706_v36  ;;  %v709_v23 = vadd.f32 %v4739_v40, %v4749_v8 }
 0x2db   :  { %1013 = vmax.xlane.f32.xlu0 %v4758_v21  ;;  %5997 = vst [vmem:[#allocation45_spill] sm:$0xff] %v4806_v18  ;;  %v767_v21 = vmul.f32 0.2, %v703_v50  ;;  %v530_v22 = vpop.permute.xlu0 %529  ;;  %v4822_v15 = vadd.f32 %v4670_v54, %v828_v31  ;;  %v710_v8 = vadd.f32 %v4739_v40, %v4762_v48 }
 0x2dc   :  { %995 = vmax.xlane.f32.xlu1 %v4765_v9  ;;  %v708_v14 = vadd.f32 %v4739_v40, %v530_v22 }
 0x2dd   :  { %v831_v2 = vmax.f32 %v703_v50, %v767_v21  ;;  %5999 = vst [vmem:[#allocation47_spill] sm:$0xff] %v4822_v15  ;;  %v833_v21 = vmax.f32 %v705_v0, %v769_v20 }
 0x2de   :  { %v542_v61 = vpop.permute.xlu1 %541  ;;  %v772_v50 = vmul.f32 0.2, %v708_v14 }
 0x2df   :  { %1017 = vmax.xlane.f32.xlu0 %v4772_v12  ;;  %v768_v12 = vmul.f32 0.2, %v704_v25  ;;  %v711_v22 = vadd.f32 %v4739_v40, %v542_v61  ;;  %v4833_v31 = vadd.f32 %v4520_v32, %v831_v2 }
 0x2e0   :  { %999 = vmax.xlane.f32.xlu1 %v4776_v4  ;;  %v836_v20 = vmax.f32 %v708_v14, %v772_v50 }
 0x2e1   :  { %v832_v63 = vmax.f32 %v704_v25, %v768_v12  ;;  %v834_v12 = vmax.f32 %v706_v36, %v770_v7  ;;  %v771_v25 = vmul.f32 0.2, %v707_v58  ;;  %v773_v7 = vmul.f32 0.2, %v709_v23 }
 0x2e2   :  { %v550_v57 = vpop.permute.xlu1 %549  ;;  %v775_v61 = vmul.f32 0.2, %v711_v22 }
 0x2e3   :  { %1019 = vmax.xlane.f32.xlu0 %v4782_v49  ;;  %v4818_v38 = vadd.f32 %v4673_v45, %v832_v63  ;;  %v835_v36 = vmax.f32 %v707_v58, %v771_v25  ;;  %v4829_v63 = vadd.f32 %v4544_v28, %v834_v12  ;;  %v646_v58 = vcombine.high %v4581_v46, %v4581_v46 }
 0x2e4   :  { %1005 = vmax.xlane.f32.xlu1 %v4787_v39  ;;  %v837_v12 = vmax.f32 %v709_v23, %v773_v7  ;;  %v774_v25 = vmul.f32 0.2, %v710_v8 }
 0x2e5   :  { %5998 = vst [vmem:[#allocation46_spill] sm:$0xff] %v4818_v38  ;;  %6000 = vst [vmem:[#allocation48_spill] sm:$0xff] %v4829_v63  ;;  %v4841_v0 = vadd.f32 %v4555_v52, %v835_v36  ;;  %v4849_v46 = vrot.slane %v646_v58, %v4444_v24 }
 0x2e6   :  { %v554_v55 = vpop.permute.xlu1 %553  ;;  %v838_v23 = vmax.f32 %v710_v8, %v774_v25  ;;  %v4854_v14 = vadd.f32 %v4570_v41, %v837_v12 }
 0x2e7   :  { %1023 = vmax.xlane.f32.xlu0 %v4794_v26  ;;  %6001 = vst [vmem:[#allocation49_spill] sm:$0xff] %v4841_v0  ;;  %v714_v36 = vadd.f32 %v4739_v40, %v554_v55 }
 0x2e8   :  { %1011 = vmax.xlane.f32.xlu1 %v4799_v35  ;;  %v4864_v55 = vadd.f32 %v4584_v34, %v838_v23 }
 0x2ea   :  { %v561_v10 = vpop.permute.xlu1 %560  ;;  %6003 = vst [vmem:[#allocation51_spill] sm:$0xff] %v4864_v55 }
 0x2eb   :  { %1025 = vmax.xlane.f32.xlu0 %v4806_v18  ;;  %v546_v18 = vpop.permute.xlu0 %545 }
 0x2ec   :  { %1015 = vmax.xlane.f32.xlu1 %v4811_v33  ;;  %v712_v48 = vadd.f32 %v4739_v40, %v546_v18 }
 0x2ee   :  { %v569_v26 = vpop.permute.xlu1 %568  ;;  %v776_v18 = vmul.f32 0.2, %v712_v48 }
 0x2ef   :  { %1029 = vmax.xlane.f32.xlu0 %v4818_v38  ;;  %v713_v38 = vadd.f32 %v4739_v40, %v550_v57  ;;  %v565_v7 = vpop.permute.xlu0 %564  ;;  %v839_v57 = vmax.f32 %v711_v22, %v775_v61  ;;  %v778_v40 = vmul.f32 0.2, %v714_v36  ;;  %v717_v25 = vadd.f32 %v4849_v46, %v569_v26 }
 0x2f0   :  { %1021 = vmax.xlane.f32.xlu1 %v4822_v15  ;;  %v4845_v15 = vadd.f32 %v4531_v13, %v833_v21  ;;  %v715_v21 = vadd.f32 %v4849_v46, %v561_v10  ;;  %v840_v58 = vmax.f32 %v712_v48, %v776_v18  ;;  %v716_v8 = vadd.f32 %v4849_v46, %v565_v7 }
 0x2f1   :  { %v777_v50 = vmul.f32 0.2, %v713_v38  ;;  %v4868_v61 = vadd.f32 %v4598_v6, %v839_v57  ;;  %v842_v48 = vmax.f32 %v714_v36, %v778_v40 }
 0x2f2   :  { %v573_v39 = vpop.permute.xlu1 %572  ;;  %v779_v22 = vmul.f32 0.2, %v715_v21  ;;  %v4874_v7 = vadd.f32 %v4708_v30, %v840_v58 }
 0x2f3   :  { %1033 = vmax.xlane.f32.xlu0 %v4829_v63  ;;  %v841_v12 = vmax.f32 %v713_v38, %v777_v50  ;;  %v718_v18 = vadd.f32 %v4849_v46, %v573_v39  ;;  %v581_v23 = vpop.permute.xlu0 %580  ;;  %v781_v50 = vmul.f32 0.2, %v717_v25  ;;  %v4884_v58 = vadd.f32 %v4619_v27, %v842_v48 }
 0x2f4   :  { %1027 = vmax.xlane.f32.xlu1 %v4833_v31  ;;  %6004 = vst [vmem:[#allocation52_spill] sm:$0xff] %v4874_v7  ;;  %v843_v38 = vmax.f32 %v715_v21, %v779_v22  ;;  %v720_v36 = vadd.f32 %v4849_v46, %v581_v23 }
 0x2f5   :  { %v4878_v57 = vadd.f32 %v4610_v5, %v841_v12  ;;  %v782_v39 = vmul.f32 0.2, %v718_v18  ;;  %v845_v40 = vmax.f32 %v717_v25, %v781_v50 }
 0x2f6   :  { %v577_v2 = vpop.permute.xlu1 %576  ;;  %v784_v12 = vmul.f32 0.2, %v720_v36 }
 0x2f7   :  { %1035 = vmax.xlane.f32.xlu0 %v4841_v0  ;;  %v4858_v0 = vadd.f32 %v4693_v59, %v836_v20  ;;  %v780_v20 = vmul.f32 0.2, %v716_v8  ;;  %v719_v26 = vadd.f32 %v4849_v46, %v577_v2  ;;  %v597_v48 = vpop.permute.xlu0 %596 }
 0x2f8   :  { %1031 = vmax.xlane.f32.xlu1 %v4845_v15 }
 0x2f9   :  { %6002 = vst [vmem:[#allocation50_spill] sm:$0xff] %v4858_v0  ;;  %v783_v21 = vmul.f32 0.2, %v719_v26 }
 0x2fa   :  { %v585_v63 = vpop.permute.xlu1 %584 }
 0x2fb   :  { %1039 = vmax.xlane.f32.xlu0 %v4854_v14  ;;  %v721_v22 = vadd.f32 %v4849_v46, %v585_v63  ;;  %v847_v25 = vmax.f32 %v719_v26, %v783_v21 }
 0x2fc   :  { %1037 = vmax.xlane.f32.xlu1 %v4858_v0  ;;  %v4888_v0 = vadd.f32 %v4488_v53, %v843_v38  ;;  %v4898_v53 = vadd.f32 %v4496_v3, %v845_v40  ;;  %v848_v38 = vmax.f32 %v720_v36, %v784_v12  ;;  %v613_v36 = vpop.permute.xlu0 %612 }
 0x2fd   :  { %v785_v50 = vmul.f32 0.2, %v721_v22  ;;  %v4908_v21 = vadd.f32 %v4520_v32, %v847_v25  ;;  %v728_v25 = vadd.f32 %v4849_v46, %v613_v36 }
 0x2fe   :  { %v589_v10 = vpop.permute.xlu1 %588 }
 0x2ff   :  { %1041 = vmax.xlane.f32.xlu0 %v4864_v55  ;;  %v844_v55 = vmax.f32 %v716_v8, %v780_v20  ;;  %v846_v8 = vmax.f32 %v718_v18, %v782_v39  ;;  %v722_v20 = vadd.f32 %v4849_v46, %v589_v10  ;;  %v724_v18 = vadd.f32 %v4849_v46, %v597_v48 }
 0x300   :  { %1043 = vmax.xlane.f32.xlu1 %v4868_v61 }
 0x301   :  { %v4894_v23 = vadd.f32 %v4670_v54, %v844_v55  ;;  %v786_v10 = vmul.f32 0.2, %v722_v20  ;;  %v4904_v54 = vadd.f32 %v4507_v29, %v846_v8  ;;  %v849_v55 = vmax.f32 %v721_v22, %v785_v50 }
 0x302   :  { %v593_v24 = vpop.permute.xlu1 %592  ;;  %v788_v3 = vmul.f32 0.2, %v724_v18  ;;  %v4914_v29 = vadd.f32 %v4673_v45, %v848_v38 }
 0x303   :  { %1045 = vmax.xlane.f32.xlu0 %v4874_v7  ;;  %v723_v63 = vadd.f32 %v4849_v46, %v593_v24  ;;  %v850_v40 = vmax.f32 %v722_v20, %v786_v10  ;;  %v4918_v32 = vadd.f32 %v4531_v13, %v849_v55  ;;  %v792_v13 = vmul.f32 0.2, %v728_v25 }
 0x304   :  { %1047 = vmax.xlane.f32.xlu1 %v4878_v57  ;;  %v852_v20 = vmax.f32 %v724_v18, %v788_v3 }
 0x305   :  { %v787_v26 = vmul.f32 0.2, %v723_v63 }
 0x306   :  { %v601_v2 = vpop.permute.xlu1 %600 }
 0x307   :  { %1049 = vmax.xlane.f32.xlu0 %v4884_v58  ;;  %v725_v39 = vadd.f32 %v4849_v46, %v601_v2  ;;  %v851_v22 = vmax.f32 %v723_v63, %v787_v26 }
 0x308   :  { %1051 = vmax.xlane.f32.xlu1 %v4888_v0 }
 0x309   :  { %v789_v8 = vmul.f32 0.2, %v725_v39  ;;  %v4928_v26 = vadd.f32 %v4555_v52, %v851_v22  ;;  %v856_v22 = vmax.f32 %v728_v25, %v792_v13 }
 0x30a   :  { %v605_v7 = vpop.permute.xlu1 %604 }
 0x30b   :  { %1053 = vmax.xlane.f32.xlu0 %v4894_v23  ;;  %v726_v12 = vadd.f32 %v4849_v46, %v605_v7  ;;  %v4924_v7 = vadd.f32 %v4544_v28, %v850_v40  ;;  %v853_v45 = vmax.f32 %v725_v39, %v789_v8  ;;  %v4935_v39 = vadd.f32 %v4693_v59, %v852_v20 }
 0x30c   :  { %1055 = vmax.xlane.f32.xlu1 %v4898_v53  ;;  %v4954_v20 = vadd.f32 %v4708_v30, %v856_v22 }
 0x30d   :  { %v790_v50 = vmul.f32 0.2, %v726_v12  ;;  %v4938_v40 = vadd.f32 %v4570_v41, %v853_v45 }
 0x30e   :  { %v609_v24 = vpop.permute.xlu1 %608 }
 0x30f   :  { %1057 = vmax.xlane.f32.xlu0 %v4904_v54  ;;  %v727_v2 = vadd.f32 %v4849_v46, %v609_v24  ;;  %v854_v24 = vmax.f32 %v726_v12, %v790_v50 }
 0x310   :  { %1059 = vmax.xlane.f32.xlu1 %v4908_v21 }
 0x311   :  { %v791_v63 = vmul.f32 0.2, %v727_v2 }
 0x312   :  { %v617_v48 = vpop.permute.xlu1 %616 }
 0x313   :  { %1061 = vmax.xlane.f32.xlu0 %v4914_v29  ;;  %v729_v38 = vadd.f32 %v4849_v46, %v617_v48  ;;  %v855_v3 = vmax.f32 %v727_v2, %v791_v63 }
 0x314   :  { %1063 = vmax.xlane.f32.xlu1 %v4918_v32 }
 0x315   :  { %v793_v36 = vmul.f32 0.2, %v729_v38  ;;  %v4947_v2 = vadd.f32 %v4598_v6, %v855_v3 }
 0x316   :  { %v621_v10 = vpop.permute.xlu1 %620 }
 0x317   :  { %1065 = vmax.xlane.f32.xlu0 %v4924_v7  ;;  %v730_v18 = vadd.f32 %v4849_v46, %v621_v10  ;;  %v857_v59 = vmax.f32 %v729_v38, %v793_v36 }
 0x318   :  { %v956_v55 = vpop.xlane.xlu0 %955  ;;  %1067 = vmax.xlane.f32.xlu1 %v4928_v26 }
 0x319   :  { %v1083_v28 = vsub.f32 %v4500_v17, %v956_v55  ;;  %v794_v12 = vmul.f32 0.2, %v730_v18  ;;  %v4944_v17 = vadd.f32 %v4584_v34, %v854_v24 }
 0x31b   :  { %v1147_v52 = vmul.f32 1.442695, %v1083_v28  ;;  %1069 = vmax.xlane.f32.xlu0 %v4935_v39  ;;  %v858_v25 = vmax.f32 %v730_v18, %v794_v12 }
 0x31c   :  { %v960_v8 = vpop.xlane.xlu0 %959  ;;  %1071 = vmax.xlane.f32.xlu1 %v4938_v40 }
 0x31d   :  { %3643 = vpow2.f32 %v1147_v52  ;;  %v1085_v46 = vsub.f32 %v4511_v42, %v960_v8  ;;  %v4957_v42 = vadd.f32 %v4610_v5, %v857_v59  ;;  %v4963_v50 = vadd.f32 %v4619_v27, %v858_v25 }
 0x31f   :  { %v1151_v41 = vmul.f32 1.442695, %v1085_v46  ;;  %1073 = vmax.xlane.f32.xlu0 %v4944_v17 }
 0x320   :  { %v4950_v48 = vpop.xlane.xlu0 %961  ;;  %1075 = vmax.xlane.f32.xlu1 %v4947_v2 }
 0x321   :  { %3645 = vpow2.f32 %v1151_v41 }
 0x323   :  { %1077 = vmax.xlane.f32.xlu0 %v4954_v20 }
 0x324   :  { %v964_v34 = vpop.xlane.xlu0 %963  ;;  %1079 = vmax.xlane.f32.xlu1 %v4957_v42 }
 0x325   :  { %v1087_v6 = vsub.f32 %v4535_v16, %v964_v34 }
 0x327   :  { %v4965_v45 = vpop.eup %3643  ;;  %v1155_v63 = vmul.f32 1.442695, %v1087_v6  ;;  %1081 = vmax.xlane.f32.xlu0 %v4963_v50 }
 0x328   :  { %v968_v30 = vpop.xlane.xlu0 %967  ;;  %1275 = vadd.xlane.f32.xlu1 %v4965_v45 }
 0x329   :  { %3647 = vpow2.f32 %v1155_v63  ;;  %v1089_v5 = vsub.f32 %v4548_v60, %v968_v30 }
 0x32b   :  { %v4970_v38 = vpop.eup %3645  ;;  %v1159_v10 = vmul.f32 1.442695, %v1089_v5 }
 0x32c   :  { %v4972_v13 = vpop.xlane.xlu0 %969  ;;  %1279 = vadd.xlane.f32.xlu1 %v4970_v38 }
 0x32d   :  { %3649 = vpow2.f32 %v1159_v10 }
 0x330   :  { %v972_v16 = vpop.xlane.xlu0 %971 }
 0x331   :  { %v1091_v27 = vsub.f32 %v4574_v37, %v972_v16 }
 0x333   :  { %v4976_v55 = vpop.eup %3647  ;;  %v1163_v24 = vmul.f32 1.442695, %v1091_v27  ;;  %v1086_v27 = vsub.f32 %v4524_v11, %v4950_v48 }
 0x334   :  { %v976_v18 = vpop.xlane.xlu0 %975  ;;  %1283 = vadd.xlane.f32.xlu1 %v4976_v55 }
 0x335   :  { %3651 = vpow2.f32 %v1163_v24  ;;  %v1093_v60 = vsub.f32 %v4588_v43, %v976_v18 }
 0x337   :  { %v4980_v28 = vpop.eup %3649  ;;  %v1167_v3 = vmul.f32 1.442695, %v1093_v60 }
 0x338   :  { %v978_v36 = vpop.xlane.xlu0 %977  ;;  %1287 = vadd.xlane.f32.xlu1 %v4980_v28 }
 0x339   :  { %3653 = vpow2.f32 %v1167_v3 }
 0x33c   :  { %v980_v52 = vpop.xlane.xlu0 %979 }
 0x33d   :  { %v1095_v22 = vsub.f32 %v4614_v56, %v980_v52  ;;  %v1153_v52 = vmul.f32 1.442695, %v1086_v27 }
 0x33f   :  { %v4984_v37 = vpop.eup %3651  ;;  %v1171_v8 = vmul.f32 1.442695, %v1095_v22 }
 0x340   :  { %v984_v12 = vpop.xlane.xlu0 %983  ;;  %1291 = vadd.xlane.f32.xlu1 %v4984_v37 }
 0x341   :  { %3655 = vpow2.f32 %v1171_v8  ;;  %v1097_v46 = vsub.f32 %v4623_v44, %v984_v12 }
 0x343   :  { %v4988_v43 = vpop.eup %3653  ;;  %v1175_v59 = vmul.f32 1.442695, %v1097_v46 }
 0x344   :  { %v4990_v41 = vpop.xlane.xlu0 %985  ;;  %1295 = vadd.xlane.f32.xlu1 %v4988_v43 }
 0x345   :  { %3657 = vpow2.f32 %v1175_v59 }
 0x348   :  { %v988_v25 = vpop.xlane.xlu0 %987 }
 0x349   :  { %v1099_v56 = vsub.f32 %v4637_v19, %v988_v25 }
 0x34b   :  { %v4994_v34 = vpop.eup %3655  ;;  %v1179_v6 = vmul.f32 1.442695, %v1099_v56  ;;  %v6007_v56 = vld [vmem:[#allocation36_spill] sm:$0xff] }
 0x34c   :  { %v992_v63 = vpop.xlane.xlu0 %991  ;;  %1299 = vadd.xlane.f32.xlu1 %v4994_v34 }
 0x34d   :  { %3659 = vpow2.f32 %v1179_v6  ;;  %v1101_v44 = vsub.f32 %v4652_v1, %v992_v63 }
 0x34f   :  { %v4998_v30 = vpop.eup %3657  ;;  %v1183_v5 = vmul.f32 1.442695, %v1101_v44  ;;  %v6008_v44 = vld [vmem:[#allocation30_spill] sm:$0xff] }
 0x350   :  { %v5000_v10 = vpop.xlane.xlu0 %993  ;;  %1303 = vadd.xlane.f32.xlu1 %v4998_v30 }
 0x351   :  { %3661 = vpow2.f32 %v1183_v5  ;;  %v1094_v5 = vsub.f32 %v6008_v44, %v978_v36 }
 0x354   :  { %v5003_v16 = vpop.xlane.xlu0 %997 }
 0x355   :  { %v958_v19 = vpop.xlane.xlu1 %957 }
 0x356   :  { %v1084_v24 = vsub.f32 %v4689_v51, %v958_v19  ;;  %v1090_v51 = vsub.f32 %v4559_v62, %v4972_v13  ;;  %v1169_v13 = vmul.f32 1.442695, %v1094_v5 }
 0x357   :  { %v5008_v18 = vpop.eup %3659 }
 0x358   :  { %6005 = vst [vmem:[#allocation53_spill] sm:$0xff] %v5008_v18  ;;  %v1149_v60 = vmul.f32 1.442695, %v1084_v24  ;;  %v5010_v1 = vpop.xlane.xlu0 %1001  ;;  %1307 = vadd.xlane.f32.xlu1 %v5008_v18  ;;  %v1161_v25 = vmul.f32 1.442695, %v1090_v51 }
 0x359   :  { %v966_v3 = vpop.xlane.xlu1 %965 }
 0x35a   :  { %3663 = vpow2.f32 %v1149_v60  ;;  %v1088_v22 = vsub.f32 %v4704_v47, %v966_v3  ;;  %v6009_v60 = vld [vmem:[#allocation38_spill] sm:$0xff] }
 0x35b   :  { %v5014_v8 = vpop.eup %3661  ;;  %3665 = vpow2.f32 %v1153_v52 }
 0x35c   :  { %6006 = vst [vmem:[#allocation54_spill] sm:$0xff] %v5014_v8  ;;  %v1004_v12 = vpop.xlane.xlu0 %1003  ;;  %1311 = vadd.xlane.f32.xlu1 %v5014_v8  ;;  %v1157_v48 = vmul.f32 1.442695, %v1088_v22 }
 0x35d   :  { %v974_v11 = vpop.xlane.xlu1 %973 }
 0x35e   :  { %3667 = vpow2.f32 %v1157_v48  ;;  %v1092_v6 = vsub.f32 %v6007_v56, %v974_v11  ;;  %v6010_v48 = vld [vmem:[#allocation31_spill] sm:$0xff] }
 0x35f   :  { %3669 = vpow2.f32 %v1161_v25  ;;  %v1098_v25 = vsub.f32 %v6010_v48, %v4990_v41 }
 0x360   :  { %v1008_v46 = vpop.xlane.xlu0 %1007  ;;  %v1165_v27 = vmul.f32 1.442695, %v1092_v6 }
 0x361   :  { %v982_v59 = vpop.xlane.xlu1 %981 }
 0x362   :  { %v1096_v3 = vsub.f32 %v6009_v60, %v982_v59  ;;  %3671 = vpow2.f32 %v1165_v27  ;;  %v6011_v59 = vld [vmem:[#allocation35_spill] sm:$0xff] }
 0x363   :  { %3673 = vpow2.f32 %v1169_v13  ;;  %v1107_v44 = vsub.f32 %v6011_v59, %v1004_v12 }
 0x364   :  { %v5020_v63 = vpop.eup %3663  ;;  %v5022_v47 = vpop.xlane.xlu0 %1009  ;;  %v1173_v56 = vmul.f32 1.442695, %v1096_v3  ;;  %v6013_v3 = vld [vmem:[#allocation40_spill] sm:$0xff] }
 0x365   :  { %v990_v19 = vpop.xlane.xlu1 %989  ;;  %1277 = vadd.xlane.f32.xlu0 %v5020_v63  ;;  %v5026_v24 = vpop.eup %3665  ;;  %v1195_v41 = vmul.f32 1.442695, %v1107_v44 }
 0x366   :  { %v1100_v48 = vsub.f32 %v6013_v3, %v990_v19 }
 0x368   :  { %v5028_v62 = vpop.xlane.xlu0 %1013  ;;  %v5033_v11 = vpop.eup %3667 }
 0x369   :  { %v996_v52 = vpop.xlane.xlu1 %995  ;;  %1281 = vadd.xlane.f32.xlu0 %v5026_v24  ;;  %v5042_v27 = vpop.eup %3669 }
 0x36a   :  { %v1103_v22 = vsub.f32 %v4765_v9, %v996_v52  ;;  %v1177_v52 = vmul.f32 1.442695, %v1098_v25 }
 0x36c   :  { %v1187_v36 = vmul.f32 1.442695, %v1103_v22  ;;  %v5035_v51 = vpop.xlane.xlu0 %1017  ;;  %v6012_v22 = vld [vmem:[#allocation37_spill] sm:$0xff]  ;;  %v5047_v18 = vpop.eup %3671 }
 0x36d   :  { %v1000_v6 = vpop.xlane.xlu1 %999  ;;  %1285 = vadd.xlane.f32.xlu0 %v5033_v11  ;;  %v1109_v8 = vsub.f32 %v6012_v22, %v1008_v46  ;;  %v1181_v46 = vmul.f32 1.442695, %v1100_v48 }
 0x36e   :  { %3675 = vpow2.f32 %v1187_v36  ;;  %v1105_v5 = vsub.f32 %v4776_v4, %v1000_v6  ;;  %v6014_v4 = vld [vmem:[#allocation32_spill] sm:$0xff] }
 0x36f   :  { %3677 = vpow2.f32 %v1173_v56  ;;  %v1102_v36 = vsub.f32 %v6014_v4, %v5000_v10  ;;  %v1199_v6 = vmul.f32 1.442695, %v1109_v8  ;;  %v5053_v56 = vpop.eup %3673 }
 0x370   :  { %v1191_v9 = vmul.f32 1.442695, %v1105_v5  ;;  %v1020_v60 = vpop.xlane.xlu0 %1019 }
 0x371   :  { %v1006_v13 = vpop.xlane.xlu1 %1005  ;;  %1289 = vadd.xlane.f32.xlu0 %v5042_v27  ;;  %v1185_v5 = vmul.f32 1.442695, %v1102_v36 }
 0x372   :  { %3679 = vpow2.f32 %v1191_v9  ;;  %v6015_v9 = vld [vmem:[#allocation33_spill] sm:$0xff] }
 0x373   :  { %3681 = vpow2.f32 %v1177_v52  ;;  %v1104_v52 = vsub.f32 %v6015_v9, %v5003_v16  ;;  %v6017_v16 = vld [vmem:[#allocation34_spill] sm:$0xff]  ;;  %v6019_v9 = vld [vmem:[#allocation43_spill] sm:$0xff] }
 0x374   :  { %v1024_v12 = vpop.xlane.xlu0 %1023  ;;  %3683 = vpow2.f32 %v1195_v41  ;;  %v1106_v4 = vsub.f32 %v6017_v16, %v5010_v1  ;;  %v1108_v1 = vsub.f32 %v6019_v9, %v1006_v13  ;;  %v6020_v16 = vld [vmem:[#allocation44_spill] sm:$0xff] }
 0x375   :  { %v1012_v59 = vpop.xlane.xlu1 %1011  ;;  %1293 = vadd.xlane.f32.xlu0 %v5047_v18  ;;  %3685 = vpow2.f32 %v1199_v6  ;;  %v1189_v48 = vmul.f32 1.442695, %v1104_v52  ;;  %v1115_v6 = vsub.f32 %v4782_v49, %v1020_v60  ;;  %v1117_v49 = vsub.f32 %v6020_v16, %v1024_v12 }
 0x376   :  { %v1111_v25 = vsub.f32 %v4799_v35, %v1012_v59  ;;  %3687 = vpow2.f32 %v1181_v46 }
 0x377   :  { %3689 = vpow2.f32 %v1185_v5  ;;  %v1193_v5 = vmul.f32 1.442695, %v1106_v4 }
 0x378   :  { %v5055_v44 = vpop.eup %3675  ;;  %v5057_v19 = vpop.xlane.xlu0 %1025  ;;  %v1203_v8 = vmul.f32 1.442695, %v1111_v25 }
 0x379   :  { %v1016_v10 = vpop.xlane.xlu1 %1015  ;;  %1297 = vadd.xlane.f32.xlu0 %v5053_v56  ;;  %1315 = vadd.xlane.f32.xlu1 %v5055_v44  ;;  %v5064_v22 = vpop.eup %3677 }
 0x37a   :  { %v1113_v35 = vsub.f32 %v4811_v33, %v1016_v10  ;;  %3691 = vpow2.f32 %v1203_v8  ;;  %v1211_v10 = vmul.f32 1.442695, %v1115_v6  ;;  %v1215_v6 = vmul.f32 1.442695, %v1117_v49 }
 0x37b   :  { %3693 = vpow2.f32 %v1189_v48  ;;  %v6022_v48 = vld [vmem:[#allocation39_spill] sm:$0xff] }
 0x37c   :  { %v5066_v41 = vpop.eup %3679  ;;  %v5068_v3 = vpop.xlane.xlu0 %1029  ;;  %v1207_v33 = vmul.f32 1.442695, %v1113_v35  ;;  %v1110_v4 = vsub.f32 %v6022_v48, %v5022_v47 }
 0x37d   :  { %6016 = vst [vmem:[#allocation36_spill] sm:$0xff] %v5066_v41  ;;  %v5072_v36 = vpop.xlane.xlu1 %1021  ;;  %1301 = vadd.xlane.f32.xlu0 %v5064_v22  ;;  %1319 = vadd.xlane.f32.xlu1 %v5066_v41  ;;  %v5077_v59 = vpop.eup %3681  ;;  %v1197_v41 = vmul.f32 1.442695, %v1108_v1 }
 0x37e   :  { %v5079_v46 = vpop.eup %3683  ;;  %3695 = vpow2.f32 %v1207_v33  ;;  %v1201_v16 = vmul.f32 1.442695, %v1110_v4 }
 0x37f   :  { %6018 = vst [vmem:[#allocation30_spill] sm:$0xff] %v5079_v46  ;;  %v5087_v60 = vpop.eup %3685  ;;  %3697 = vpow2.f32 %v1193_v5  ;;  %v6024_v5 = vld [vmem:[#allocation41_spill] sm:$0xff] }
 0x380   :  { %v5081_v25 = vpop.xlane.xlu0 %1033  ;;  %6021 = vst [vmem:[#allocation38_spill] sm:$0xff] %v5087_v60  ;;  %v5089_v8 = vpop.eup %3687  ;;  %3699 = vpow2.f32 %v1211_v10 }
 0x381   :  { %v1028_v52 = vpop.xlane.xlu1 %1027  ;;  %1305 = vadd.xlane.f32.xlu0 %v5077_v59  ;;  %1323 = vadd.xlane.f32.xlu1 %v5079_v46  ;;  %v5096_v33 = vpop.eup %3689  ;;  %v1112_v46 = vsub.f32 %v6024_v5, %v5028_v62  ;;  %3701 = vpow2.f32 %v1197_v41  ;;  %v6026_v62 = vld [vmem:[#allocation42_spill] sm:$0xff]  ;;  %v6027_v5 = vld [vmem:[#allocation49_spill] sm:$0xff] }
 0x382   :  { %v1119_v12 = vsub.f32 %v4833_v31, %v1028_v52  ;;  %3703 = vpow2.f32 %v1215_v6  ;;  %v1114_v41 = vsub.f32 %v6026_v62, %v5035_v51 }
 0x383   :  { %3705 = vpow2.f32 %v1201_v16  ;;  %v1205_v48 = vmul.f32 1.442695, %v1112_v46  ;;  %v6028_v16 = vld [vmem:[#allocation47_spill] sm:$0xff] }
 0x384   :  { %v1036_v35 = vpop.xlane.xlu0 %1035  ;;  %v5098_v9 = vpop.eup %3691  ;;  %v1219_v10 = vmul.f32 1.442695, %v1119_v12  ;;  %v1209_v46 = vmul.f32 1.442695, %v1114_v41  ;;  %v1116_v51 = vsub.f32 %v6028_v16, %v5072_v36  ;;  %v6032_v16 = vld [vmem:[#allocation46_spill] sm:$0xff] }
 0x385   :  { %v1032_v13 = vpop.xlane.xlu1 %1031  ;;  %1309 = vadd.xlane.f32.xlu0 %v5089_v8  ;;  %1327 = vadd.xlane.f32.xlu1 %v5087_v60  ;;  %6023 = vst [vmem:[#allocation31_spill] sm:$0xff] %v5098_v9  ;;  %v5107_v52 = vpop.eup %3693  ;;  %v1123_v6 = vsub.f32 %v6027_v5, %v1036_v35 }
 0x386   :  { %v1121_v31 = vsub.f32 %v4845_v15, %v1032_v13  ;;  %3707 = vpow2.f32 %v1219_v10 }
 0x387   :  { %3709 = vpow2.f32 %v1205_v48  ;;  %v1227_v10 = vmul.f32 1.442695, %v1123_v6  ;;  %v6030_v48 = vld [vmem:[#allocation45_spill] sm:$0xff] }
 0x388   :  { %v1040_v47 = vpop.xlane.xlu0 %1039  ;;  %v5109_v49 = vpop.eup %3695  ;;  %v1223_v12 = vmul.f32 1.442695, %v1121_v31  ;;  %v1118_v41 = vsub.f32 %v6030_v48, %v5057_v19  ;;  %v1120_v19 = vsub.f32 %v6032_v16, %v5068_v3 }
 0x389   :  { %v5102_v1 = vpop.xlane.xlu1 %1037  ;;  %1313 = vadd.xlane.f32.xlu0 %v5096_v33  ;;  %1331 = vadd.xlane.f32.xlu1 %v5098_v9  ;;  %6025 = vst [vmem:[#allocation35_spill] sm:$0xff] %v5109_v49  ;;  %v5116_v9 = vpop.eup %3697  ;;  %v1125_v35 = vsub.f32 %v4854_v14, %v1040_v47 }
 0x38a   :  { %v5120_v13 = vpop.eup %3699  ;;  %3711 = vpow2.f32 %v1223_v12 }
 0x38b   :  { %v5127_v31 = vpop.eup %3701  ;;  %3713 = vpow2.f32 %v1209_v46  ;;  %v1231_v6 = vmul.f32 1.442695, %v1125_v35  ;;  %v1217_v46 = vmul.f32 1.442695, %v1118_v41  ;;  %v1221_v41 = vmul.f32 1.442695, %v1120_v19 }
 0x38c   :  { %v5118_v15 = vpop.xlane.xlu0 %1041  ;;  %v5129_v5 = vpop.eup %3703  ;;  %3715 = vpow2.f32 %v1227_v10 }
 0x38d   :  { %v1044_v4 = vpop.xlane.xlu1 %1043  ;;  %1317 = vadd.xlane.f32.xlu0 %v5107_v52  ;;  %1335 = vadd.xlane.f32.xlu1 %v5109_v49  ;;  %6029 = vst [vmem:[#allocation37_spill] sm:$0xff] %v5129_v5  ;;  %v1213_v49 = vmul.f32 1.442695, %v1116_v51  ;;  %v5138_v47 = vpop.eup %3705 }
 0x38e   :  { %v1127_v14 = vsub.f32 %v4868_v61, %v1044_v4 }
 0x38f   :  { %3717 = vpow2.f32 %v1213_v49 }
 0x390   :  { %v5133_v60 = vpop.xlane.xlu0 %1045  ;;  %v5140_v12 = vpop.eup %3707  ;;  %3719 = vpow2.f32 %v1231_v6  ;;  %v1235_v48 = vmul.f32 1.442695, %v1127_v14 }
 0x391   :  { %v1048_v62 = vpop.xlane.xlu1 %1047  ;;  %1321 = vadd.xlane.f32.xlu0 %v5116_v9  ;;  %1339 = vadd.xlane.f32.xlu1 %v5120_v13  ;;  %6031 = vst [vmem:[#allocation40_spill] sm:$0xff] %v5140_v12  ;;  %v5147_v35 = vpop.eup %3709  ;;  %3721 = vpow2.f32 %v1217_v46  ;;  %v6035_v46 = vld [vmem:[#allocation50_spill] sm:$0xff] }
 0x392   :  { %v1129_v10 = vsub.f32 %v4878_v57, %v1048_v62  ;;  %3723 = vpow2.f32 %v1235_v48  ;;  %v1124_v19 = vsub.f32 %v6035_v46, %v5102_v1 }
 0x393   :  { %3725 = vpow2.f32 %v1221_v41  ;;  %v6036_v41 = vld [vmem:[#allocation51_spill] sm:$0xff] }
 0x394   :  { %v1050_v61 = vpop.xlane.xlu0 %1049  ;;  %v5149_v4 = vpop.eup %3711  ;;  %v1239_v6 = vmul.f32 1.442695, %v1129_v10  ;;  %v1229_v10 = vmul.f32 1.442695, %v1124_v19  ;;  %v6037_v19 = vld [vmem:[#allocation52_spill] sm:$0xff] }
 0x395   :  { %1325 = vadd.xlane.f32.xlu0 %v5127_v31  ;;  %1343 = vadd.xlane.f32.xlu1 %v5129_v5  ;;  %v1052_v36 = vpop.xlane.xlu1 %1051  ;;  %v6033_v5 = vld [vmem:[#allocation48_spill] sm:$0xff]  ;;  %v5156_v57 = vpop.eup %3713 }
 0x396   :  { %v1122_v3 = vsub.f32 %v6033_v5, %v5081_v25  ;;  %v1131_v14 = vsub.f32 %v4888_v0, %v1052_v36  ;;  %v5158_v62 = vpop.eup %3715  ;;  %3727 = vpow2.f32 %v1239_v6 }
 0x397   :  { %6034 = vst [vmem:[#allocation32_spill] sm:$0xff] %v5158_v62 }
 0x398   :  { %v1225_v16 = vmul.f32 1.442695, %v1122_v3  ;;  %v1243_v5 = vmul.f32 1.442695, %v1131_v14  ;;  %v1126_v3 = vsub.f32 %v6036_v41, %v5118_v15 }
 0x399   :  { %1329 = vadd.xlane.f32.xlu0 %v5138_v47  ;;  %1347 = vadd.xlane.f32.xlu1 %v5140_v12  ;;  %v1056_v51 = vpop.xlane.xlu1 %1055  ;;  %v1054_v12 = vpop.xlane.xlu0 %1053 }
 0x39a   :  { %v1133_v48 = vsub.f32 %v4898_v53, %v1056_v51  ;;  %v5165_v0 = vpop.eup %3717  ;;  %3729 = vpow2.f32 %v1225_v16  ;;  %v1233_v16 = vmul.f32 1.442695, %v1126_v3 }
 0x39b   :  { %v5167_v36 = vpop.eup %3719  ;;  %3731 = vpow2.f32 %v1243_v5 }
 0x39c   :  { %v1247_v46 = vmul.f32 1.442695, %v1133_v48  ;;  %v5174_v14 = vpop.eup %3721  ;;  %3733 = vpow2.f32 %v1229_v10  ;;  %v1130_v10 = vsub.f32 %v4884_v58, %v1050_v61 }
 0x39d   :  { %1333 = vadd.xlane.f32.xlu0 %v5147_v35  ;;  %1351 = vadd.xlane.f32.xlu1 %v5149_v4  ;;  %v1060_v49 = vpop.xlane.xlu1 %1059  ;;  %v1058_v53 = vpop.xlane.xlu0 %1057 }
 0x39e   :  { %v1135_v6 = vsub.f32 %v4908_v21, %v1060_v49  ;;  %v5176_v51 = vpop.eup %3723  ;;  %3735 = vpow2.f32 %v1247_v46 }
 0x39f   :  { %v5183_v48 = vpop.eup %3725  ;;  %3737 = vpow2.f32 %v1233_v16  ;;  %v1132_v16 = vsub.f32 %v4894_v23, %v1054_v12 }
 0x3a0   :  { %v1251_v15 = vmul.f32 1.442695, %v1135_v6  ;;  %v5185_v49 = vpop.eup %3727 }
 0x3a1   :  { %1337 = vadd.xlane.f32.xlu0 %v5156_v57  ;;  %1355 = vadd.xlane.f32.xlu1 %v5158_v62  ;;  %v1064_v25 = vpop.xlane.xlu1 %1063  ;;  %v1128_v62 = vsub.f32 %v6037_v19, %v5133_v60  ;;  %v1062_v3 = vpop.xlane.xlu0 %1061 }
 0x3a2   :  { %v1137_v5 = vsub.f32 %v4918_v32, %v1064_v25  ;;  %3739 = vpow2.f32 %v1251_v15  ;;  %v1241_v25 = vmul.f32 1.442695, %v1130_v10  ;;  %v1245_v15 = vmul.f32 1.442695, %v1132_v16 }
 0x3a3   :  { %v1237_v41 = vmul.f32 1.442695, %v1128_v62 }
 0x3a4   :  { %v1255_v60 = vmul.f32 1.442695, %v1137_v5  ;;  %v5191_v6 = vpop.eup %3729  ;;  %v1134_v5 = vsub.f32 %v4904_v54, %v1058_v53 }
 0x3a5   :  { %1341 = vadd.xlane.f32.xlu0 %v5165_v0  ;;  %1359 = vadd.xlane.f32.xlu1 %v5167_v36  ;;  %v1068_v1 = vpop.xlane.xlu1 %1067  ;;  %v5193_v32 = vpop.eup %3731  ;;  %3741 = vpow2.f32 %v1237_v41 }
 0x3a6   :  { %v1139_v46 = vsub.f32 %v4928_v26, %v1068_v1  ;;  %3743 = vpow2.f32 %v1255_v60  ;;  %v5199_v19 = vpop.eup %3733  ;;  %v1066_v26 = vpop.xlane.xlu0 %1065  ;;  %v1249_v10 = vmul.f32 1.442695, %v1134_v5  ;;  %v1136_v60 = vsub.f32 %v4914_v29, %v1062_v3 }
 0x3a7   :  { %3745 = vpow2.f32 %v1241_v25  ;;  %v1138_v29 = vsub.f32 %v4924_v7, %v1066_v26 }
 0x3a8   :  { %v1259_v58 = vmul.f32 1.442695, %v1139_v46  ;;  %v5201_v1 = vpop.eup %3735  ;;  %v1253_v16 = vmul.f32 1.442695, %v1136_v60 }
 0x3a9   :  { %1345 = vadd.xlane.f32.xlu0 %v5174_v14  ;;  %1363 = vadd.xlane.f32.xlu1 %v5176_v51  ;;  %v1072_v21 = vpop.xlane.xlu1 %1071  ;;  %v5207_v41 = vpop.eup %3737 }
 0x3aa   :  { %v1141_v61 = vsub.f32 %v4938_v40, %v1072_v21  ;;  %3747 = vpow2.f32 %v1259_v58  ;;  %v1070_v46 = vpop.xlane.xlu0 %1069 }
 0x3ab   :  { %3749 = vpow2.f32 %v1245_v15  ;;  %v1140_v15 = vsub.f32 %v4935_v39, %v1070_v46 }
 0x3ac   :  { %v1263_v23 = vmul.f32 1.442695, %v1141_v61  ;;  %v5209_v21 = vpop.eup %3739 }
 0x3ad   :  { %1349 = vadd.xlane.f32.xlu0 %v5183_v48  ;;  %1367 = vadd.xlane.f32.xlu1 %v5185_v49  ;;  %v1076_v62 = vpop.xlane.xlu1 %1075  ;;  %v1261_v26 = vmul.f32 1.442695, %v1140_v15 }
 0x3ae   :  { %v1143_v12 = vsub.f32 %v4947_v2, %v1076_v62  ;;  %3751 = vpow2.f32 %v1263_v23  ;;  %v1074_v58 = vpop.xlane.xlu0 %1073 }
 0x3af   :  { %v5215_v25 = vpop.eup %3741  ;;  %3753 = vpow2.f32 %v1249_v10 }
 0x3b0   :  { %v1267_v54 = vmul.f32 1.442695, %v1143_v12  ;;  %v5217_v2 = vpop.eup %3743  ;;  %v1142_v12 = vsub.f32 %v4944_v17, %v1074_v58 }
 0x3b1   :  { %1353 = vadd.xlane.f32.xlu0 %v5191_v6  ;;  %1371 = vadd.xlane.f32.xlu1 %v5193_v32  ;;  %v1080_v40 = vpop.xlane.xlu1 %1079  ;;  %6038 = vst [vmem:[#allocation33_spill] sm:$0xff] %v5217_v2  ;;  %v5222_v62 = vpop.eup %3745 }
 0x3b2   :  { %v1145_v53 = vsub.f32 %v4957_v42, %v1080_v40  ;;  %3755 = vpow2.f32 %v1267_v54  ;;  %v1257_v42 = vmul.f32 1.442695, %v1138_v29  ;;  %v1078_v7 = vpop.xlane.xlu0 %1077  ;;  %v1265_v39 = vmul.f32 1.442695, %v1142_v12 }
 0x3b3   :  { %3757 = vpow2.f32 %v1253_v16  ;;  %v1144_v60 = vsub.f32 %v4954_v20, %v1078_v7 }
 0x3b4   :  { %v1271_v3 = vmul.f32 1.442695, %v1145_v53  ;;  %v5224_v61 = vpop.eup %3747 }
 0x3b5   :  { %1357 = vadd.xlane.f32.xlu0 %v5199_v19  ;;  %1375 = vadd.xlane.f32.xlu1 %v5201_v1  ;;  %6039 = vst [vmem:[#allocation34_spill] sm:$0xff] %v5224_v61  ;;  %v5229_v5 = vpop.eup %3749  ;;  %v1269_v17 = vmul.f32 1.442695, %v1144_v60  ;;  %v1276_v58 = vpop.xlane.xlu1 %1275 }
 0x3b6   :  { %3759 = vpow2.f32 %v1271_v3  ;;  %v1082_v54 = vpop.xlane.xlu0 %1081 }
 0x3b7   :  { %3761 = vpow2.f32 %v1257_v42  ;;  %v1146_v16 = vsub.f32 %v4963_v50, %v1082_v54  ;;  %v1403_v54 = vmax.f32 %v1276_v58, 1e-20 }
 0x3b8   :  { %v5231_v23 = vpop.eup %3751  ;;  %3763 = vpow2.f32 %v1261_v26 }
 0x3b9   :  { %1361 = vadd.xlane.f32.xlu0 %v5207_v41  ;;  %1379 = vadd.xlane.f32.xlu1 %v5209_v21  ;;  %6040 = vst [vmem:[#allocation43_spill] sm:$0xff] %v5231_v23  ;;  %v5236_v40 = vpop.eup %3753  ;;  %3765 = vpow2.f32 %v1265_v39  ;;  %v1273_v3 = vmul.f32 1.442695, %v1146_v16  ;;  %v1280_v15 = vpop.xlane.xlu1 %1279 }
 0x3ba   :  { %3767 = vpow2.f32 %v1269_v17 }
 0x3bb   :  { %3769 = vpow2.f32 %v1273_v3  ;;  %v1405_v3 = vmax.f32 %v1280_v15, 1e-20 }
 0x3bc   :  { %v5238_v10 = vpop.eup %3755  ;;  %3771 = vrcp.f32 %v1403_v54 }
 0x3bd   :  { %1365 = vadd.xlane.f32.xlu0 %v5215_v25  ;;  %1383 = vadd.xlane.f32.xlu1 %v5217_v2  ;;  %6041 = vst [vmem:[#allocation44_spill] sm:$0xff] %v5238_v10  ;;  %v5243_v46 = vpop.eup %3757 }
 0x3be   :  { %6042 = vst [vmem:[#allocation39_spill] sm:$0xff] %v5243_v46 }
 0x3c0   :  { %v5245_v53 = vpop.eup %3759 }
 0x3c1   :  { %1369 = vadd.xlane.f32.xlu0 %v5222_v62  ;;  %1387 = vadd.xlane.f32.xlu1 %v5224_v61  ;;  %6043 = vst [vmem:[#allocation41_spill] sm:$0xff] %v5245_v53  ;;  %v5250_v29 = vpop.eup %3761  ;;  %v1284_v50 = vpop.xlane.xlu1 %1283 }
 0x3c2   :  { %6044 = vst [vmem:[#allocation42_spill] sm:$0xff] %v5250_v29  ;;  %v5253_v20 = vpop.eup %3763 }
 0x3c3   :  { %6045 = vst [vmem:[#allocation49_spill] sm:$0xff] %v5253_v20  ;;  %v5256_v42 = vpop.eup %3765 }
 0x3c4   :  { %6046 = vst [vmem:[#allocation47_spill] sm:$0xff] %v5256_v42  ;;  %v5259_v7 = vpop.eup %3767 }
 0x3c5   :  { %1373 = vadd.xlane.f32.xlu0 %v5229_v5  ;;  %1391 = vadd.xlane.f32.xlu1 %v5231_v23  ;;  %6047 = vst [vmem:[#allocation45_spill] sm:$0xff] %v5259_v7  ;;  %v5262_v26 = vpop.eup %3769  ;;  %v1288_v12 = vpop.xlane.xlu1 %1287 }
 0x3c6   :  { %6048 = vst [vmem:[#allocation46_spill] sm:$0xff] %v5262_v26  ;;  %v1409_v61 = vmax.f32 %v1288_v12, 1e-20  ;;  %v3772_v2 = vpop.eup %3771 }
 0x3c9   :  { %1377 = vadd.xlane.f32.xlu0 %v5236_v40  ;;  %1395 = vadd.xlane.f32.xlu1 %v5238_v10 }
 0x3cd   :  { %1381 = vadd.xlane.f32.xlu0 %v5243_v46  ;;  %1399 = vadd.xlane.f32.xlu1 %v5245_v53  ;;  %v1292_v39 = vpop.xlane.xlu1 %1291 }
 0x3ce   :  { %v1411_v15 = vmax.f32 %v1292_v39, 1e-20 }
 0x3d1   :  { %1385 = vadd.xlane.f32.xlu0 %v5250_v29  ;;  %v1296_v60 = vpop.xlane.xlu1 %1295 }
 0x3d5   :  { %1389 = vadd.xlane.f32.xlu0 %v5253_v20 }
 0x3d9   :  { %1393 = vadd.xlane.f32.xlu0 %v5256_v42  ;;  %v1300_v17 = vpop.xlane.xlu1 %1299  ;;  %v1407_v42 = vmax.f32 %v1284_v50, 1e-20 }
 0x3dd   :  { %1397 = vadd.xlane.f32.xlu0 %v5259_v7  ;;  %v1304_v7 = vpop.xlane.xlu1 %1303 }
 0x3e1   :  { %1401 = vadd.xlane.f32.xlu0 %v5262_v26 }
 0x3e5   :  { %v5265_v29 = vpop.xlane.xlu1 %1307 }
 0x3f2   :  { %v1278_v16 = vpop.xlane.xlu0 %1277 }
 0x3f3   :  { %v1404_v53 = vmax.f32 %v1278_v16, 1e-20  ;;  %v1413_v16 = vmax.f32 %v1296_v60, 1e-20 }
 0x3f5   :  { %3773 = vrcp.f32 %v1404_v53  ;;  %v1531_v53 = vmul.f32 %v3772_v2, %v4965_v45 }
 0x3f6   :  { %v1282_v10 = vpop.xlane.xlu0 %1281  ;;  %3775 = vrcp.f32 %v1405_v3 }
 0x3f7   :  { %v1406_v23 = vmax.f32 %v1282_v10, 1e-20 }
 0x3f9   :  { %3777 = vrcp.f32 %v1406_v23  ;;  %v5269_v23 = vpop.xlane.xlu1 %1311 }
 0x3fa   :  { %v1286_v20 = vpop.xlane.xlu0 %1285  ;;  %3779 = vrcp.f32 %v1407_v42 }
 0x3fb   :  { %v1408_v26 = vmax.f32 %v1286_v20, 1e-20 }
 0x3fd   :  { %3781 = vrcp.f32 %v1408_v26 }
 0x3fe   :  { %v1290_v58 = vpop.xlane.xlu0 %1289  ;;  %3783 = vrcp.f32 %v1409_v61 }
 0x3ff   :  { %v3774_v46 = vpop.eup %3773  ;;  %v1410_v54 = vmax.f32 %v1290_v58, 1e-20  ;;  %v1415_v58 = vmax.f32 %v1300_v17, 1e-20 }
 0x400   :  { %v1532_v50 = vmul.f32 %v3774_v46, %v5020_v63  ;;  %v3776_v10 = vpop.eup %3775 }
 0x401   :  { %3785 = vrcp.f32 %v1410_v54  ;;  %v1533_v26 = vmul.f32 %v3776_v10, %v4970_v38  ;;  %v6049_v38 = vld [vmem:[#allocation7_spill] sm:$0xff] }
 0x402   :  { %v1294_v42 = vpop.xlane.xlu0 %1293  ;;  %v1595_v12 = vpack.c.bf16 %v1532_v50, %v1531_v53  ;;  %3787 = vrcp.f32 %v1411_v15 }
 0x403   :  { %v3778_v20 = vpop.eup %3777  ;;  %v1412_v3 = vmax.f32 %v1294_v42, 1e-20 }
 0x404   :  { %3369 = vmatprep.mubr.bf16.mxu1 %v1595_v12  ;;  %v1534_v61 = vmul.f32 %v3778_v20, %v5026_v24  ;;  %v3780_v39 = vpop.eup %3779  ;;  %v6050_v24 = vld [vmem:[#allocation5_spill] sm:$0xff]  ;;  %v1417_v20 = vmax.f32 %v1304_v7, 1e-20  ;;  %v1419_v7 = vmax.f32 %v5265_v29, 1e-20 }
 0x405   :  { %3789 = vrcp.f32 %v1412_v3  ;;  %v1535_v15 = vmul.f32 %v3780_v39, %v4976_v55  ;;  %v6051_v3 = vld [vmem:[#allocation13_spill] sm:$0xff]  ;;  %v1421_v29 = vmax.f32 %v5269_v23, 1e-20 }
 0x406   :  { %v1298_v45 = vpop.xlane.xlu0 %1297  ;;  %v5273_v2 = vpop.xlane.xlu1 %1315  ;;  %v1596_v63 = vpack.c.bf16 %v1534_v61, %v1533_v26  ;;  %3791 = vrcp.f32 %v1413_v16 }
 0x407   :  { %v3782_v46 = vpop.eup %3781  ;;  %v1414_v54 = vmax.f32 %v1298_v45, 1e-20  ;;  %v1423_v23 = vmax.f32 %v5273_v2, 1e-20 }
 0x408   :  { %3370 = vmatmul.mubr.bf16.vlgmr.msra.gmra.mrb[4].mxu1 %v1596_v63  ;;  %v1536_v60 = vmul.f32 %v3782_v46, %v5033_v11  ;;  %v3784_v53 = vpop.eup %3783 }
 0x409   :  { %3793 = vrcp.f32 %v1414_v54  ;;  %3386 = vmatpush3.bf16.msra.mxu1 %v6049_v38  ;;  %v1537_v16 = vmul.f32 %v3784_v53, %v4980_v28 }
 0x40a   :  { %3387 = vmatprep.subr.bf16.mxu1 %v6050_v24  ;;  %v1302_v50 = vpop.xlane.xlu0 %1301  ;;  %v5279_v10 = vpop.xlane.xlu1 %1319  ;;  %v1597_v42 = vpack.c.bf16 %v1536_v60, %v1535_v15  ;;  %3795 = vrcp.f32 %v1415_v58  ;;  %v6052_v58 = vld [vmem:[#allocation11_spill] sm:$0xff] }
 0x40b   :  { %v3786_v12 = vpop.eup %3785  ;;  %v1416_v17 = vmax.f32 %v1302_v50, 1e-20  ;;  %v6053_v50 = vld [vmem:[#allocation19_spill] sm:$0xff]  ;;  %v1425_v2 = vmax.f32 %v5279_v10, 1e-20 }
 0x40c   :  { %3373 = vmatprep.mubr.bf16.mxu1 %v1597_v42  ;;  %v1538_v55 = vmul.f32 %v3786_v12, %v5042_v27  ;;  %v3788_v11 = vpop.eup %3787 }
 0x40d   :  { %3797 = vrcp.f32 %v1416_v17  ;;  %3388 = vmatpush3.bf16.msra.mxu1 %v6050_v24  ;;  %v1539_v28 = vmul.f32 %v3788_v11, %v4984_v37  ;;  %v6054_v11 = vld [vmem:[#allocation17_spill] sm:$0xff] }
 0x40e   :  { %3389 = vmatprep.subr.bf16.mxu1 %v6051_v3  ;;  %v1306_v26 = vpop.xlane.xlu0 %1305  ;;  %v5285_v61 = vpop.xlane.xlu1 %1323  ;;  %v1598_v39 = vpack.c.bf16 %v1538_v55, %v1537_v16  ;;  %3799 = vrcp.f32 %v1417_v20 }
 0x40f   :  { %v3790_v45 = vpop.eup %3789  ;;  %v1418_v63 = vmax.f32 %v1306_v26, 1e-20  ;;  %v1427_v10 = vmax.f32 %v5285_v61, 1e-20 }
 0x410   :  { %3374 = vmatmul.mubr.bf16.gmra.mrb[8].mxu1 %v1598_v39  ;;  %v1540_v27 = vmul.f32 %v3790_v45, %v5047_v18  ;;  %v3792_v46 = vpop.eup %3791 }
 0x411   :  { %3801 = vrcp.f32 %v1418_v63  ;;  %3390 = vmatpush3.bf16.msra.mxu1 %v6051_v3  ;;  %v1541_v37 = vmul.f32 %v3792_v46, %v4988_v43 }
 0x412   :  { %3391 = vmatprep.subr.bf16.mxu1 %v6052_v58  ;;  %v1310_v54 = vpop.xlane.xlu0 %1309  ;;  %v5292_v15 = vpop.xlane.xlu1 %1327  ;;  %v1599_v60 = vpack.c.bf16 %v1540_v27, %v1539_v28  ;;  %3803 = vrcp.f32 %v1419_v7  ;;  %v6055_v28 = vld [vmem:[#allocation25_spill] sm:$0xff] }
 0x413   :  { %v3794_v53 = vpop.eup %3793  ;;  %v1420_v38 = vmax.f32 %v1310_v54, 1e-20  ;;  %v1429_v61 = vmax.f32 %v5292_v15, 1e-20 }
 0x414   :  { %3377 = vmatprep.mubr.bf16.mxu1 %v1599_v60  ;;  %v1542_v18 = vmul.f32 %v3794_v53, %v5053_v56  ;;  %v3796_v24 = vpop.eup %3795  ;;  %v6056_v53 = vld [vmem:[#allocation53_spill] sm:$0xff] }
 0x415   :  { %3805 = vrcp.f32 %v1420_v38  ;;  %3392 = vmatpush3.bf16.msra.mxu1 %v6052_v58  ;;  %v1543_v43 = vmul.f32 %v3796_v24, %v4994_v34  ;;  %v6057_v38 = vld [vmem:[#allocation23_spill] sm:$0xff] }
 0x416   :  { %3393 = vmatprep.subr.bf16.mxu1 %v6053_v50  ;;  %v1314_v42 = vpop.xlane.xlu0 %1313  ;;  %v5299_v12 = vpop.xlane.xlu1 %1331  ;;  %v1600_v20 = vpack.c.bf16 %v1542_v18, %v1541_v37  ;;  %3807 = vrcp.f32 %v1421_v29 }
 0x417   :  { %v3798_v17 = vpop.eup %3797  ;;  %v1422_v16 = vmax.f32 %v1314_v42, 1e-20  ;;  %v1431_v15 = vmax.f32 %v5299_v12, 1e-20 }
 0x418   :  { %3378 = vmatmul.mubr.bf16.gmra.mrb[12].mxu1 %v1600_v20  ;;  %v1544_v56 = vmul.f32 %v3798_v17, %v5064_v22  ;;  %v3800_v55 = vpop.eup %3799  ;;  %v6058_v20 = vld [vmem:[#allocation54_spill] sm:$0xff] }
 0x419   :  { %3809 = vrcp.f32 %v1422_v16  ;;  %3394 = vmatpush3.bf16.msra.mxu1 %v6053_v50  ;;  %v1545_v34 = vmul.f32 %v3800_v55, %v4998_v30  ;;  %v6059_v16 = vld [vmem:[#allocation8_spill] sm:$0xff] }
 0x41a   :  { %3395 = vmatprep.subr.bf16.mxu1 %v6054_v11  ;;  %v1318_v3 = vpop.xlane.xlu0 %1317  ;;  %v5306_v26 = vpop.xlane.xlu1 %1335  ;;  %v1601_v39 = vpack.c.bf16 %v1544_v56, %v1543_v43  ;;  %3811 = vrcp.f32 %v1423_v23 }
 0x41b   :  { %v3802_v45 = vpop.eup %3801  ;;  %v1424_v7 = vmax.f32 %v1318_v3, 1e-20  ;;  %v1433_v12 = vmax.f32 %v5306_v26, 1e-20 }
 0x41c   :  { %3381 = vmatprep.mubr.bf16.mxu1 %v1601_v39  ;;  %v1546_v22 = vmul.f32 %v3802_v45, %v5077_v59  ;;  %v3804_v63 = vpop.eup %3803 }
 0x41d   :  { %3813 = vrcp.f32 %v1424_v7  ;;  %3396 = vmatpush3.bf16.msra.mxu1 %v6054_v11  ;;  %v1547_v30 = vmul.f32 %v3804_v63, %v6056_v53 }
 0x41e   :  { %3397 = vmatprep.subr.bf16.mxu1 %v6055_v28  ;;  %v1322_v27 = vpop.xlane.xlu0 %1321  ;;  %v5313_v46 = vpop.xlane.xlu1 %1339  ;;  %v1602_v58 = vpack.c.bf16 %v1546_v22, %v1545_v34  ;;  %3815 = vrcp.f32 %v1425_v2  ;;  %v6060_v2 = vld [vmem:[#allocation6_spill] sm:$0xff] }
 0x41f   :  { %v3806_v54 = vpop.eup %3805  ;;  %v1426_v60 = vmax.f32 %v1322_v27, 1e-20  ;;  %v6061_v27 = vld [vmem:[#allocation36_spill] sm:$0xff]  ;;  %v1435_v26 = vmax.f32 %v5313_v46, 1e-20 }
 0x420   :  { %3382 = vmatmul.mubr.bf16.gmra.mrb[16].mxu1 %v1602_v58  ;;  %v1548_v59 = vmul.f32 %v3806_v54, %v5089_v8  ;;  %v3808_v29 = vpop.eup %3807  ;;  %v6062_v54 = vld [vmem:[#allocation14_spill] sm:$0xff] }
 0x421   :  { %3817 = vrcp.f32 %v1426_v60  ;;  %3398 = vmatpush3.bf16.msra.mxu1 %v6055_v28  ;;  %v1549_v17 = vmul.f32 %v3808_v29, %v6058_v20  ;;  %v6063_v29 = vld [vmem:[#allocation30_spill] sm:$0xff] }
 0x422   :  { %3399 = vmatprep.subr.bf16.mxu1 %v6057_v38  ;;  %v1326_v37 = vpop.xlane.xlu0 %1325  ;;  %v5320_v18 = vpop.xlane.xlu1 %1343  ;;  %v1603_v24 = vpack.c.bf16 %v1548_v59, %v1547_v30  ;;  %3819 = vrcp.f32 %v1427_v10 }
 0x423   :  { %v3810_v50 = vpop.eup %3809  ;;  %v1428_v42 = vmax.f32 %v1326_v37, 1e-20  ;;  %v1437_v46 = vmax.f32 %v5320_v18, 1e-20 }
 0x424   :  { %v1550_v23 = vmul.f32 %v3810_v50, %v5096_v33  ;;  %3401 = vmatprep.mubr.bf16.mxu1 %v1603_v24  ;;  %v3812_v8 = vpop.eup %3811  ;;  %v6064_v24 = vld [vmem:[#allocation12_spill] sm:$0xff] }
 0x425   :  { %3821 = vrcp.f32 %v1428_v42  ;;  %3400 = vmatpush3.bf16.msra.mxu1 %v6057_v38  ;;  %v1551_v39 = vmul.f32 %v3812_v8, %v5055_v44 }
 0x426   :  { %3417 = vmatprep.subr.bf16.mxu1 %v6059_v16  ;;  %v1330_v43 = vpop.xlane.xlu0 %1329  ;;  %v5327_v56 = vpop.xlane.xlu1 %1347  ;;  %v1604_v55 = vpack.c.bf16 %v1550_v23, %v1549_v17  ;;  %3823 = vrcp.f32 %v1429_v61  ;;  %v6065_v23 = vld [vmem:[#allocation38_spill] sm:$0xff] }
 0x427   :  { %v3814_v11 = vpop.eup %3813  ;;  %v1430_v3 = vmax.f32 %v1330_v43, 1e-20  ;;  %v6066_v43 = vld [vmem:[#allocation20_spill] sm:$0xff]  ;;  %v1439_v18 = vmax.f32 %v5327_v56, 1e-20 }
 0x428   :  { %3402 = vmatmul.mubr.bf16.vlgmr.msra.gmra.mrb[4].mxu1 %v1604_v55  ;;  %v1552_v33 = vmul.f32 %v3814_v11, %v5107_v52  ;;  %v3816_v45 = vpop.eup %3815 }
 0x429   :  { %3825 = vrcp.f32 %v1430_v3  ;;  %3418 = vmatpush3.bf16.msra.mxu1 %v6059_v16  ;;  %v1553_v44 = vmul.f32 %v3816_v45, %v6061_v27 }
 0x42a   :  { %3419 = vmatprep.subr.bf16.mxu1 %v6060_v2  ;;  %v1334_v7 = vpop.xlane.xlu0 %1333  ;;  %v5334_v34 = vpop.xlane.xlu1 %1351  ;;  %v1605_v22 = vpack.c.bf16 %v1552_v33, %v1551_v39  ;;  %3827 = vrcp.f32 %v1431_v15  ;;  %v6067_v33 = vld [vmem:[#allocation31_spill] sm:$0xff] }
 0x42b   :  { %v3818_v63 = vpop.eup %3817  ;;  %v1432_v28 = vmax.f32 %v1334_v7, 1e-20  ;;  %v6068_v7 = vld [vmem:[#allocation18_spill] sm:$0xff]  ;;  %v1441_v56 = vmax.f32 %v5334_v34, 1e-20 }
 0x42c   :  { %3405 = vmatprep.mubr.bf16.mxu1 %v1605_v22  ;;  %v1554_v52 = vmul.f32 %v3818_v63, %v5116_v9  ;;  %v3820_v58 = vpop.eup %3819 }
 0x42d   :  { %3829 = vrcp.f32 %v1432_v28  ;;  %3420 = vmatpush3.bf16.msra.mxu1 %v6060_v2  ;;  %v1555_v38 = vmul.f32 %v3820_v58, %v6063_v29 }
 0x42e   :  { %3421 = vmatprep.subr.bf16.mxu1 %v6062_v54  ;;  %v1338_v10 = vpop.xlane.xlu0 %1337  ;;  %v5341_v60 = vpop.xlane.xlu1 %1355  ;;  %v1606_v53 = vpack.c.bf16 %v1554_v52, %v1553_v44  ;;  %3831 = vrcp.f32 %v1433_v12  ;;  %v6069_v44 = vld [vmem:[#allocation35_spill] sm:$0xff] }
 0x42f   :  { %v3822_v30 = vpop.eup %3821  ;;  %v1434_v59 = vmax.f32 %v1338_v10, 1e-20  ;;  %v1443_v34 = vmax.f32 %v5341_v60, 1e-20  ;;  %v6072_v60 = vld [vmem:[#allocation37_spill] sm:$0xff] }
 0x430   :  { %3406 = vmatmul.mubr.bf16.gmra.mrb[8].mxu1 %v1606_v53  ;;  %v1556_v9 = vmul.f32 %v3822_v30, %v5127_v31  ;;  %v3824_v37 = vpop.eup %3823 }
 0x431   :  { %3833 = vrcp.f32 %v1434_v59  ;;  %3422 = vmatpush3.bf16.msra.mxu1 %v6062_v54  ;;  %v1557_v8 = vmul.f32 %v3824_v37, %v6065_v23  ;;  %v6070_v54 = vld [vmem:[#allocation26_spill] sm:$0xff]  ;;  %v6073_v23 = vld [vmem:[#allocation9_spill] sm:$0xff] }
 0x432   :  { %3423 = vmatprep.subr.bf16.mxu1 %v6064_v24  ;;  %v1342_v50 = vpop.xlane.xlu0 %1341  ;;  %v5348_v61 = vpop.xlane.xlu1 %1359  ;;  %v1607_v42 = vpack.c.bf16 %v1556_v9, %v1555_v38  ;;  %3835 = vrcp.f32 %v1435_v26  ;;  %v6071_v9 = vld [vmem:[#allocation24_spill] sm:$0xff] }
 0x433   :  { %v3826_v20 = vpop.eup %3825  ;;  %v1436_v17 = vmax.f32 %v1342_v50, 1e-20 }
 0x434   :  { %3409 = vmatprep.mubr.bf16.mxu1 %v1607_v42  ;;  %v1558_v31 = vmul.f32 %v3826_v20, %v5138_v47  ;;  %v3828_v16 = vpop.eup %3827  ;;  %v1445_v42 = vmax.f32 %v5348_v61, 1e-20 }
 0x435   :  { %3837 = vrcp.f32 %v1436_v17  ;;  %3424 = vmatpush3.bf16.msra.mxu1 %v6064_v24  ;;  %v1559_v45 = vmul.f32 %v3828_v16, %v6067_v33 }
 0x436   :  { %3425 = vmatprep.subr.bf16.mxu1 %v6066_v43  ;;  %v1346_v55 = vpop.xlane.xlu0 %1345  ;;  %v5355_v11 = vpop.xlane.xlu1 %1363  ;;  %v1608_v15 = vpack.c.bf16 %v1558_v31, %v1557_v8  ;;  %3839 = vrcp.f32 %v1437_v46 }
 0x437   :  { %v3830_v3 = vpop.eup %3829  ;;  %v1438_v39 = vmax.f32 %v1346_v55, 1e-20  ;;  %v1447_v61 = vmax.f32 %v5355_v11, 1e-20  ;;  %v6074_v55 = vld [vmem:[#allocation40_spill] sm:$0xff] }
 0x438   :  { %3410 = vmatmul.mubr.bf16.gmra.mrb[12].mxu1 %v1608_v15  ;;  %v1560_v47 = vmul.f32 %v3830_v3, %v5147_v35  ;;  %v3832_v2 = vpop.eup %3831 }
 0x439   :  { %3841 = vrcp.f32 %v1438_v39  ;;  %3426 = vmatpush3.bf16.msra.mxu1 %v6066_v43  ;;  %v1561_v52 = vmul.f32 %v3832_v2, %v6069_v44  ;;  %v6075_v39 = vld [vmem:[#allocation10_spill] sm:$0xff] }
 0x43a   :  { %3427 = vmatprep.subr.bf16.mxu1 %v6068_v7  ;;  %v1350_v22 = vpop.xlane.xlu0 %1349  ;;  %v5362_v63 = vpop.xlane.xlu1 %1367  ;;  %v1609_v12 = vpack.c.bf16 %v1560_v47, %v1559_v45  ;;  %3843 = vrcp.f32 %v1439_v18 }
 0x43b   :  { %v3834_v28 = vpop.eup %3833  ;;  %v1440_v27 = vmax.f32 %v1350_v22, 1e-20  ;;  %v1449_v2 = vmax.f32 %v5362_v63, 1e-20 }
 0x43c   :  { %3413 = vmatprep.mubr.bf16.mxu1 %v1609_v12  ;;  %v1562_v35 = vmul.f32 %v3834_v28, %v5156_v57  ;;  %v3836_v58 = vpop.eup %3835  ;;  %v6076_v12 = vld [vmem:[#allocation15_spill] sm:$0xff] }
 0x43d   :  { %3845 = vrcp.f32 %v1440_v27  ;;  %3428 = vmatpush3.bf16.msra.mxu1 %v6068_v7  ;;  %v1563_v29 = vmul.f32 %v3836_v58, %v5120_v13 }
 0x43e   :  { %3429 = vmatprep.subr.bf16.mxu1 %v6070_v54  ;;  %v1354_v10 = vpop.xlane.xlu0 %1353  ;;  %v5369_v53 = vpop.xlane.xlu1 %1371  ;;  %v1610_v30 = vpack.c.bf16 %v1562_v35, %v1561_v52  ;;  %3847 = vrcp.f32 %v1441_v56  ;;  %v6077_v35 = vld [vmem:[#allocation32_spill] sm:$0xff] }
 0x43f   :  { %v3838_v26 = vpop.eup %3837  ;;  %v1442_v59 = vmax.f32 %v1354_v10, 1e-20  ;;  %v1451_v44 = vmax.f32 %v5369_v53, 1e-20 }
 0x440   :  { %3414 = vmatmul.mubr.bf16.gmra.mrb[16].mxu1 %v1610_v30  ;;  %v1564_v57 = vmul.f32 %v3838_v26, %v5165_v0  ;;  %v3840_v38 = vpop.eup %3839 }
 0x441   :  { %3849 = vrcp.f32 %v1442_v59  ;;  %3430 = vmatpush3.bf16.msra.mxu1 %v6070_v54  ;;  %v1565_v46 = vmul.f32 %v3840_v38, %v6072_v60  ;;  %v6078_v54 = vld [vmem:[#allocation16_spill] sm:$0xff]  ;;  %v6079_v38 = vld [vmem:[#allocation21_spill] sm:$0xff] }
 0x442   :  { %3431 = vmatprep.subr.bf16.mxu1 %v6071_v9  ;;  %v1358_v37 = vpop.xlane.xlu0 %1357  ;;  %v1611_v24 = vpack.c.bf16 %v1564_v57, %v1563_v29  ;;  %3851 = vrcp.f32 %v1443_v34  ;;  %v5379_v13 = vpop.xlane.xlu1 %1375 }
 0x443   :  { %v3842_v50 = vpop.eup %3841  ;;  %v1444_v20 = vmax.f32 %v1358_v37, 1e-20  ;;  %v1453_v34 = vmax.f32 %v5379_v13, 1e-20 }
 0x444   :  { %v1566_v17 = vmul.f32 %v3842_v50, %v5174_v14  ;;  %3433 = vmatprep.mubr.bf16.mxu1 %v1611_v24  ;;  %v3844_v0 = vpop.eup %3843 }
 0x445   :  { %3853 = vrcp.f32 %v1444_v20  ;;  %3432 = vmatpush3.bf16.msra.mxu1 %v6071_v9  ;;  %v1567_v15 = vmul.f32 %v3844_v0, %v6074_v55 }
 0x446   :  { %3449 = vmatprep.subr.bf16.mxu1 %v6073_v23  ;;  %v1362_v8 = vpop.xlane.xlu0 %1361  ;;  %v1612_v31 = vpack.c.bf16 %v1566_v17, %v1565_v46  ;;  %3855 = vrcp.f32 %v1445_v42  ;;  %v1380_v18 = vpop.xlane.xlu1 %1379 }
 0x447   :  { %v3846_v16 = vpop.eup %3845  ;;  %v1446_v43 = vmax.f32 %v1362_v8, 1e-20  ;;  %v1455_v50 = vmax.f32 %v1380_v18, 1e-20 }
 0x448   :  { %3434 = vmatmul.mubr.bf16.vlgmr.msra.gmra.mrb[4].mxu1 %v1612_v31  ;;  %v1568_v14 = vmul.f32 %v3846_v16, %v5183_v48  ;;  %v3848_v3 = vpop.eup %3847 }
 0x449   :  { %3857 = vrcp.f32 %v1446_v43  ;;  %3450 = vmatpush3.bf16.msra.mxu1 %v6073_v23  ;;  %v1569_v7 = vmul.f32 %v3848_v3, %v5149_v4 }
 0x44a   :  { %3451 = vmatprep.subr.bf16.mxu1 %v6075_v39  ;;  %v1366_v33 = vpop.xlane.xlu0 %1365  ;;  %v1613_v45 = vpack.c.bf16 %v1568_v14, %v1567_v15  ;;  %3859 = vrcp.f32 %v1447_v61  ;;  %v1384_v63 = vpop.xlane.xlu1 %1383 }
 0x44b   :  { %v3850_v47 = vpop.eup %3849  ;;  %v1448_v11 = vmax.f32 %v1366_v33, 1e-20  ;;  %v1457_v0 = vmax.f32 %v1384_v63, 1e-20 }
 0x44c   :  { %3437 = vmatprep.mubr.bf16.mxu1 %v1613_v45  ;;  %v1570_v22 = vmul.f32 %v3850_v47, %v5191_v6  ;;  %v3852_v48 = vpop.eup %3851 }
 0x44d   :  { %3861 = vrcp.f32 %v1448_v11  ;;  %3452 = vmatpush3.bf16.msra.mxu1 %v6075_v39  ;;  %v1571_v58 = vmul.f32 %v3852_v48, %v6077_v35  ;;  %v6082_v39 = vld [vmem:[#allocation28_spill] sm:$0xff] }
 0x44e   :  { %3453 = vmatprep.subr.bf16.mxu1 %v6076_v12  ;;  %v1370_v28 = vpop.xlane.xlu0 %1369  ;;  %v1614_v56 = vpack.c.bf16 %v1570_v22, %v1569_v7  ;;  %3863 = vrcp.f32 %v1449_v2 }
 0x44f   :  { %v3854_v27 = vpop.eup %3853  ;;  %v1450_v52 = vmax.f32 %v1370_v28, 1e-20 }
 0x450   :  { %3438 = vmatmul.mubr.bf16.gmra.mrb[8].mxu1 %v1614_v56  ;;  %v1572_v4 = vmul.f32 %v3854_v27, %v5199_v19  ;;  %v3856_v6 = vpop.eup %3855  ;;  %v1388_v19 = vpop.xlane.xlu1 %1387 }
 0x451   :  { %3865 = vrcp.f32 %v1450_v52  ;;  %3454 = vmatpush3.bf16.msra.mxu1 %v6076_v12  ;;  %v1573_v59 = vmul.f32 %v3856_v6, %v5167_v36  ;;  %v1459_v15 = vmax.f32 %v1388_v19, 1e-20  ;;  %v6083_v52 = vld [vmem:[#allocation39_spill] sm:$0xff] }
 0x452   :  { %3455 = vmatprep.subr.bf16.mxu1 %v6078_v54  ;;  %v1374_v10 = vpop.xlane.xlu0 %1373  ;;  %v1615_v30 = vpack.c.bf16 %v1572_v4, %v1571_v58  ;;  %3867 = vrcp.f32 %v1451_v44 }
 0x453   :  { %v3858_v26 = vpop.eup %3857  ;;  %v1452_v53 = vmax.f32 %v1374_v10, 1e-20 }
 0x454   :  { %3441 = vmatprep.mubr.bf16.mxu1 %v1615_v30  ;;  %v1574_v29 = vmul.f32 %v3858_v26, %v5207_v41  ;;  %v3860_v57 = vpop.eup %3859  ;;  %v6080_v41 = vld [vmem:[#allocation22_spill] sm:$0xff]  ;;  %v1392_v8 = vpop.xlane.xlu1 %1391 }
 0x455   :  { %3869 = vrcp.f32 %v1452_v53  ;;  %3456 = vmatpush3.bf16.msra.mxu1 %v6078_v54  ;;  %v1575_v20 = vmul.f32 %v3860_v57, %v5176_v51  ;;  %v1461_v2 = vmax.f32 %v1392_v8, 1e-20  ;;  %v6084_v54 = vld [vmem:[#allocation33_spill] sm:$0xff]  ;;  %v6085_v30 = vld [vmem:[#allocation42_spill] sm:$0xff] }
 0x456   :  { %3457 = vmatprep.subr.bf16.mxu1 %v6079_v38  ;;  %v1378_v9 = vpop.xlane.xlu0 %1377  ;;  %v1616_v37 = vpack.c.bf16 %v1574_v29, %v1573_v59  ;;  %3871 = vrcp.f32 %v1453_v34  ;;  %v6086_v57 = vld [vmem:[#allocation34_spill] sm:$0xff] }
 0x457   :  { %v3862_v24 = vpop.eup %3861  ;;  %v1454_v42 = vmax.f32 %v1378_v9, 1e-20 }
 0x458   :  { %3442 = vmatmul.mubr.bf16.gmra.mrb[12].mxu1 %v1616_v37  ;;  %v1576_v36 = vmul.f32 %v3862_v24, %v5215_v25  ;;  %v3864_v60 = vpop.eup %3863  ;;  %v6081_v25 = vld [vmem:[#allocation27_spill] sm:$0xff] }
 0x459   :  { %3873 = vrcp.f32 %v1454_v42  ;;  %3458 = vmatpush3.bf16.msra.mxu1 %v6079_v38  ;;  %v1577_v31 = vmul.f32 %v3864_v60, %v5185_v49  ;;  %v6087_v38 = vld [vmem:[#allocation49_spill] sm:$0xff]  ;;  %v6088_v42 = vld [vmem:[#allocation43_spill] sm:$0xff] }
 0x45a   :  { %3459 = vmatprep.subr.bf16.mxu1 %v6080_v41  ;;  %v1382_v46 = vpop.xlane.xlu0 %1381  ;;  %v1617_v17 = vpack.c.bf16 %v1576_v36, %v1575_v20  ;;  %3875 = vrcp.f32 %v1455_v50  ;;  %v6089_v36 = vld [vmem:[#allocation47_spill] sm:$0xff] }
 0x45b   :  { %v3866_v13 = vpop.eup %3865  ;;  %v1456_v23 = vmax.f32 %v1382_v46, 1e-20 }
 0x45c   :  { %3445 = vmatprep.mubr.bf16.mxu1 %v1617_v17  ;;  %v1578_v51 = vmul.f32 %v3866_v13, %v5222_v62  ;;  %v3868_v16 = vpop.eup %3867  ;;  %v1396_v62 = vpop.xlane.xlu1 %1395  ;;  %v6090_v13 = vld [vmem:[#allocation44_spill] sm:$0xff] }
 0x45d   :  { %3877 = vrcp.f32 %v1456_v23  ;;  %3460 = vmatpush3.bf16.msra.mxu1 %v6080_v41  ;;  %v1579_v3 = vmul.f32 %v3868_v16, %v5193_v32  ;;  %v1463_v28 = vmax.f32 %v1396_v62, 1e-20  ;;  %v6091_v23 = vld [vmem:[#allocation45_spill] sm:$0xff]  ;;  %v2352_v62 = vld [vmem:[%s5879_s8 + $0x18] sm:$0xff] }
 0x45e   :  { %3461 = vmatprep.subr.bf16.mxu1 %v6081_v25  ;;  %v1386_v61 = vpop.xlane.xlu0 %1385  ;;  %v1618_v43 = vpack.c.bf16 %v1578_v51, %v1577_v31  ;;  %3879 = vrcp.f32 %v1457_v0 }
 0x45f   :  { %v3870_v55 = vpop.eup %3869  ;;  %v1458_v14 = vmax.f32 %v1386_v61, 1e-20 }
 0x460   :  { %3446 = vmatmul.mubr.bf16.gmra.mrb[16].mxu1 %v1618_v43  ;;  %v1580_v18 = vmul.f32 %v3870_v55, %v5229_v5  ;;  %v3872_v49 = vpop.eup %3871  ;;  %v1400_v27 = vpop.xlane.xlu1 %1399  ;;  %v6093_v43 = vld [vmem:[#allocation46_spill] sm:$0xff] }
 0x461   :  { %3881 = vrcp.f32 %v1458_v14  ;;  %3462 = vmatpush3.bf16.msra.mxu1 %v6081_v25  ;;  %v1581_v7 = vmul.f32 %v3872_v49, %v5201_v1  ;;  %v1465_v4 = vmax.f32 %v1400_v27, 1e-20  ;;  %v6092_v25 = vld [vmem:[#allocation41_spill] sm:$0xff]  ;;  %v2351_v49 = vld [vmem:[%s5879_s8 + $0x10] sm:$0xff] }
 0x462   :  { %3463 = vmatprep.subr.bf16.mxu1 %v6082_v39  ;;  %v1390_v33 = vpop.xlane.xlu0 %1389  ;;  %v1619_v45 = vpack.c.bf16 %v1580_v18, %v1579_v3  ;;  %3883 = vrcp.f32 %v1459_v15  ;;  %v2349_v14 = vld [vmem:[%s5879_s8] sm:$0xff]  ;;  %v2350_v3 = vld [vmem:[%s5879_s8 + $0x8] sm:$0xff] }
 0x463   :  { %v3874_v47 = vpop.eup %3873  ;;  %v1460_v11 = vmax.f32 %v1390_v33, 1e-20  ;;  %v2365_v18 = vpack.c.bf16 %v2350_v3, %v2349_v14  ;;  %v6094_v33 = vmov 0.0  }
 0x464   :  { %v1582_v22 = vmul.f32 %v3874_v47, %v5236_v40  ;;  %3465 = vmatprep.mubr.bf16.mxu1 %v1619_v45  ;;  %v3876_v32 = vpop.eup %3875  ;;  %v5446_v45 = vld [vmem:[%s5877_s6] ss:$0 sm:$0xff] }
 0x465   :  { %3885 = vrcp.f32 %v1460_v11  ;;  %3464 = vmatpush3.bf16.msra.mxu1 %v6082_v39  ;;  %v1583_v44 = vmul.f32 %v3876_v32, %v5209_v21  ;;  %3481 = vmatprep.subr.bf16.mxu0 %v2365_v18  ;;  %v2366_v39 = vpack.c.bf16 %v2352_v62, %v2351_v49 }
 0x466   :  { %v1394_v5 = vpop.xlane.xlu0 %1393  ;;  %v1620_v48 = vpack.c.bf16 %v1582_v22, %v1581_v7  ;;  %3887 = vrcp.f32 %v1461_v2  ;;  %3482 = vmatpush3.bf16.msra.mxu0 %v2365_v18 }
 0x467   :  { %v3878_v12 = vpop.eup %3877  ;;  %v1462_v56 = vmax.f32 %v1394_v5, 1e-20  ;;  %3483 = vmatprep.subr.bf16.mxu0 %v2366_v39 }
 0x468   :  { %3466 = vmatmul.mubr.bf16.vlgmr.msra.gmra.mrb[4].mxu1 %v1620_v48  ;;  %v1584_v63 = vmul.f32 %v3878_v12, %v6083_v52  ;;  %v3880_v1 = vpop.eup %3879 }
 0x469   :  { %3889 = vrcp.f32 %v1462_v56  ;;  %v1585_v10 = vmul.f32 %v3880_v1, %v6084_v54 }
 0x46a   :  { %v1398_v40 = vpop.xlane.xlu0 %1397  ;;  %v1621_v35 = vpack.c.bf16 %v1584_v63, %v1583_v44  ;;  %3891 = vrcp.f32 %v1463_v28  ;;  %3484 = vmatpush3.bf16.msra.mxu0 %v2366_v39 }
 0x46b   :  { %v3882_v58 = vpop.eup %3881  ;;  %v1464_v6 = vmax.f32 %v1398_v40, 1e-20  ;;  %3501 = vmatprep.subr.bf16.mxu0 %v6094_v33 }
 0x46c   :  { %3469 = vmatprep.mubr.bf16.mxu1 %v1621_v35  ;;  %v1586_v26 = vmul.f32 %v3882_v58, %v6085_v30  ;;  %v3884_v34 = vpop.eup %3883 }
 0x46d   :  { %3893 = vrcp.f32 %v1464_v6  ;;  %v1587_v19 = vmul.f32 %v3884_v34, %v6086_v57 }
 0x46e   :  { %v1402_v53 = vpop.xlane.xlu0 %1401  ;;  %v1622_v59 = vpack.c.bf16 %v1586_v26, %v1585_v10  ;;  %3895 = vrcp.f32 %v1465_v4 }
 0x46f   :  { %v3886_v21 = vpop.eup %3885  ;;  %v1466_v29 = vmax.f32 %v1402_v53, 1e-20 }
 0x470   :  { %3470 = vmatmul.mubr.bf16.gmra.mrb[8].mxu1 %v1622_v59  ;;  %v1588_v9 = vmul.f32 %v3886_v21, %v6087_v38  ;;  %v3888_v37 = vpop.eup %3887 }
 0x471   :  { %3897 = vrcp.f32 %v1466_v29  ;;  %v1589_v20 = vmul.f32 %v3888_v37, %v6088_v42 }
 0x472   :  { %v1623_v24 = vpack.c.bf16 %v1588_v9, %v1587_v19 }
 0x473   :  { %v3890_v50 = vpop.eup %3889 }
 0x474   :  { %3473 = vmatprep.mubr.bf16.mxu1 %v1623_v24  ;;  %v1590_v60 = vmul.f32 %v3890_v50, %v6089_v36  ;;  %v3892_v41 = vpop.eup %3891 }
 0x475   :  { %v1591_v0 = vmul.f32 %v3892_v41, %v6090_v13 }
 0x476   :  { %v1624_v46 = vpack.c.bf16 %v1590_v60, %v1589_v20 }
 0x477   :  { %v3894_v17 = vpop.eup %3893 }
 0x478   :  { %3474 = vmatmul.mubr.bf16.gmra.mrb[12].mxu1 %v1624_v46  ;;  %v1592_v8 = vmul.f32 %v3894_v17, %v6091_v23  ;;  %v3896_v31 = vpop.eup %3895 }
 0x479   :  { %v1593_v61 = vmul.f32 %v3896_v31, %v6092_v25 }
 0x47a   :  { %v1625_v51 = vpack.c.bf16 %v1592_v8, %v1591_v0 }
 0x47b   :  { %v3898_v16 = vpop.eup %3897 }
 0x47c   :  { %3477 = vmatprep.mubr.bf16.mxu1 %v1625_v51  ;;  %v1594_v55 = vmul.f32 %v3898_v16, %v6093_v43 }
 0x47e   :  { %v1626_v15 = vpack.c.bf16 %v1594_v55, %v1593_v61 }
 0x480   :  { %3478 = vmatmul.mubr.bf16.gmra.mrb[16].mxu1 %v1626_v15 }
 0x53b   :  { %v3467_v47 = vpop.f32.mrb[4].mxu1 }
 0x53c   :  { %v5449_v2 = vadd.f32 %v3467_v47, %v5446_v45  ;;  %v2072_v11 = vpop.f32.mrb[5].mxu1 }
 0x53d   :  { %v5452_v7 = vadd.f32 %v5446_v45, %v2072_v11  ;;  %v3468_v22 = vpop.f32.mrb[6].mxu1 }
 0x53e   :  { %v2207_v32 = vmul.f32 0.5, %v5449_v2  ;;  %v5456_v5 = vadd.f32 %v3468_v22, %v5446_v45  ;;  %v2075_v48 = vpop.f32.mrb[7].mxu1  ;;  %vm2239_vm2 = vcmp.gt.f32.partialorder %v5449_v2, 0.0 }
 0x53f   :  { %v2205_v12 = vmul.f32 0.5, %v5452_v7  ;;  %v5460_v28 = vadd.f32 %v5446_v45, %v2075_v48  ;;  %vm2237_vm3 = vcmp.gt.f32.partialorder %v5452_v7, 0.0 }
 0x540   :  { %3899 = vtanh.f32 %v2207_v32  ;;  %v2208_v56 = vmul.f32 0.5, %v5456_v5  ;;  %vm2240_vm4 = vcmp.gt.f32.partialorder %v5456_v5, 0.0 }
 0x541   :  { %3901 = vtanh.f32 %v2205_v12  ;;  %v2206_v27 = vmul.f32 0.5, %v5460_v28  ;;  %vm2238_vm5 = vcmp.gt.f32.partialorder %v5460_v28, 0.0 }
 0x542   :  { %3903 = vtanh.f32 %v2208_v56 }
 0x543   :  { %3905 = vtanh.f32 %v2206_v27  ;;  %v3471_v44 = vpop.f32.mrb[8].mxu1 }
 0x544   :  { %v5465_v52 = vadd.f32 %v3471_v44, %v5446_v45  ;;  %v2088_v63 = vpop.f32.mrb[9].mxu1 }
 0x545   :  { %v5468_v1 = vadd.f32 %v5446_v45, %v2088_v63  ;;  %v3472_v40 = vpop.f32.mrb[10].mxu1 }
 0x546   :  { %v2211_v35 = vmul.f32 0.5, %v5465_v52  ;;  %v5472_v58 = vadd.f32 %v3472_v40, %v5446_v45  ;;  %v2091_v4 = vpop.f32.mrb[11].mxu1  ;;  %vm2243_vm6 = vcmp.gt.f32.partialorder %v5465_v52, 0.0 }
 0x547   :  { %v2209_v6 = vmul.f32 0.5, %v5468_v1  ;;  %v5476_v54 = vadd.f32 %v5446_v45, %v2091_v4  ;;  %vm2241_vm7 = vcmp.gt.f32.partialorder %v5468_v1, 0.0 }
 0x548   :  { %3907 = vtanh.f32 %v2211_v35  ;;  %v2212_v10 = vmul.f32 0.5, %v5472_v58  ;;  %vm2244_vm8 = vcmp.gt.f32.partialorder %v5472_v58, 0.0 }
 0x549   :  { %3909 = vtanh.f32 %v2209_v6  ;;  %v2210_v30 = vmul.f32 0.5, %v5476_v54  ;;  %vm2242_vm9 = vcmp.gt.f32.partialorder %v5476_v54, 0.0 }
 0x54a   :  { %v3900_v26 = vpop.eup %3899  ;;  %3911 = vtanh.f32 %v2212_v10 }
 0x54b   :  { %v3902_v34 = vpop.eup %3901  ;;  %v2271_v53 = vsub.f32 1.0, %v3900_v26  ;;  %3913 = vtanh.f32 %v2210_v30  ;;  %v3475_v59 = vpop.f32.mrb[12].mxu1  ;;  %v2255_v14 = vmul.f32 2.0, %v3900_v26 }
 0x54c   :  { %v3904_v21 = vpop.eup %3903  ;;  %v2269_v29 = vsub.f32 1.0, %v3902_v34  ;;  %v5481_v57 = vadd.f32 %v3475_v59, %v5446_v45  ;;  %v2104_v19 = vpop.f32.mrb[13].mxu1  ;;  %v2253_v39 = vmul.f32 2.0, %v3902_v34 }
 0x54d   :  { %v3906_v38 = vpop.eup %3905  ;;  %3915 = vrcp.f32 %v2271_v53  ;;  %v2272_v9 = vsub.f32 1.0, %v3904_v21  ;;  %v5484_v37 = vadd.f32 %v5446_v45, %v2104_v19  ;;  %v3476_v24 = vpop.f32.mrb[14].mxu1  ;;  %v2256_v32 = vmul.f32 2.0, %v3904_v21 }
 0x54e   :  { %3917 = vrcp.f32 %v2269_v29  ;;  %v2270_v50 = vsub.f32 1.0, %v3906_v38  ;;  %v2215_v42 = vmul.f32 0.5, %v5481_v57  ;;  %v2107_v20 = vpop.f32.mrb[15].mxu1  ;;  %v5489_v60 = vadd.f32 %v3476_v24, %v5446_v45 }
 0x54f   :  { %3919 = vrcp.f32 %v2272_v9  ;;  %v2213_v36 = vmul.f32 0.5, %v5484_v37  ;;  %v5492_v41 = vadd.f32 %v5446_v45, %v2107_v20  ;;  %v2254_v27 = vmul.f32 2.0, %v3906_v38 }
 0x550   :  { %3921 = vrcp.f32 %v2270_v50  ;;  %v2216_v17 = vmul.f32 0.5, %v5489_v60  ;;  %vm2247_vm10 = vcmp.gt.f32.partialorder %v5481_v57, 0.0  ;;  %vm2248_vm11 = vcmp.gt.f32.partialorder %v5489_v60, 0.0 }
 0x551   :  { %3923 = vtanh.f32 %v2215_v42  ;;  %v2214_v43 = vmul.f32 0.5, %v5492_v41  ;;  %vm2245_vm12 = vcmp.gt.f32.partialorder %v5484_v37, 0.0  ;;  %vm2246_vm13 = vcmp.gt.f32.partialorder %v5492_v41, 0.0 }
 0x552   :  { %v3908_v46 = vpop.eup %3907  ;;  %3925 = vtanh.f32 %v2213_v36 }
 0x553   :  { %v3910_v13 = vpop.eup %3909  ;;  %v2275_v0 = vsub.f32 1.0, %v3908_v46  ;;  %v3479_v23 = vpop.f32.mrb[16].mxu1  ;;  %3927 = vtanh.f32 %v2216_v17  ;;  %v2259_v21 = vmul.f32 2.0, %v3908_v46 }
 0x554   :  { %v3912_v8 = vpop.eup %3911  ;;  %v2273_v31 = vsub.f32 1.0, %v3910_v13  ;;  %v5496_v51 = vadd.f32 %v3479_v23, %v5446_v45  ;;  %v2120_v16 = vpop.f32.mrb[17].mxu1  ;;  %v2257_v24 = vmul.f32 2.0, %v3910_v13 }
 0x555   :  { %v3914_v25 = vpop.eup %3913  ;;  %3929 = vrcp.f32 %v2275_v0  ;;  %v2276_v61 = vsub.f32 1.0, %v3912_v8  ;;  %v5500_v55 = vadd.f32 %v5446_v45, %v2120_v16  ;;  %v3480_v15 = vpop.f32.mrb[18].mxu1  ;;  %v2260_v20 = vmul.f32 2.0, %v3912_v8 }
 0x556   :  { %3931 = vrcp.f32 %v2273_v31  ;;  %v2274_v3 = vsub.f32 1.0, %v3914_v25  ;;  %v2219_v18 = vmul.f32 0.5, %v5496_v51  ;;  %v2123_v49 = vpop.f32.mrb[19].mxu1  ;;  %v5506_v48 = vadd.f32 %v3480_v15, %v5446_v45 }
 0x557   :  { %v3916_v62 = vpop.eup %3915  ;;  %3933 = vrcp.f32 %v2276_v61  ;;  %v2217_v47 = vmul.f32 0.5, %v5500_v55  ;;  %v5511_v35 = vadd.f32 %v5446_v45, %v2123_v49  ;;  %vm2251_vm14 = vcmp.gt.f32.partialorder %v5496_v51, 0.0 }
 0x558   :  { %v3918_v11 = vpop.eup %3917  ;;  %v2290_v22 = vmul.f32 %v3916_v62, %v2255_v14  ;;  %3935 = vrcp.f32 %v2274_v3  ;;  %v2220_v40 = vmul.f32 0.5, %v5506_v48  ;;  %vm2252_vm15 = vcmp.gt.f32.partialorder %v5506_v48, 0.0 }
 0x559   :  { %v3920_v12 = vpop.eup %3919  ;;  %v2286_v56 = vmul.f32 %v3918_v11, %v2253_v39  ;;  %3937 = vtanh.f32 %v2214_v43  ;;  %v2218_v9 = vmul.f32 0.5, %v5511_v35 }
 0x55a   :  { %v3922_v44 = vpop.eup %3921  ;;  %v2292_v63 = vmul.f32 %v3920_v12, %v2256_v32  ;;  %3939 = vtanh.f32 %v2219_v18  ;;  %v2319_v30 = vsel %vm2239_vm2, %v5449_v2, %v2290_v22  ;;  %vm2249_vm2 = vcmp.gt.f32.partialorder %v5500_v55, 0.0 }
 0x55b   :  { %v3924_v4 = vpop.eup %3923  ;;  %v2288_v6 = vmul.f32 %v3922_v44, %v2254_v27  ;;  %3941 = vtanh.f32 %v2217_v47  ;;  %v2317_v45 = vsel %vm2237_vm3, %v5452_v7, %v2286_v56  ;;  %vm2250_vm3 = vcmp.gt.f32.partialorder %v5511_v35, 0.0 }
 0x55c   :  { %v5515_v10 = vpop.eup %3925  ;;  %v2320_v26 = vsel %vm2240_vm4, %v5456_v5, %v2292_v63  ;;  %v2279_v34 = vsub.f32 1.0, %v3924_v4  ;;  %3943 = vtanh.f32 %v2220_v40  ;;  %vm2497_vm4 = vcmask 64512  }
 0x55d   :  { %v2358_v53 = vpack.c.bf16 %v2320_v26, %v2319_v30  ;;  %v2318_v59 = vsel %vm2238_vm5, %v5460_v28, %v2288_v6  ;;  %v3928_v29 = vpop.eup %3927  ;;  %v2277_v38 = vsub.f32 1.0, %v5515_v10  ;;  %v2258_v28 = vmul.f32 2.0, %v3914_v25 }
 0x55e   :  { %v2357_v19 = vpack.c.bf16 %v2318_v59, %v2317_v45  ;;  %3945 = vrcp.f32 %v2279_v34  ;;  %v2280_v5 = vsub.f32 1.0, %v3928_v29  ;;  %v2264_v47 = vmul.f32 2.0, %v3928_v29 }
 0x55f   :  { %v3930_v2 = vpop.eup %3929  ;;  %3947 = vtanh.f32 %v2218_v9  ;;  %v2261_v12 = vmul.f32 2.0, %v5515_v10 }
 0x560   :  { %v3932_v50 = vpop.eup %3931  ;;  %v2298_v42 = vmul.f32 %v3930_v2, %v2259_v21  ;;  %3485 = vmatprep.mubr.msk.bf16.mxu0 %vm112_vm0, %v2357_v19  ;;  %3949 = vrcp.f32 %v2280_v5 }
 0x561   :  { %v3934_v7 = vpop.eup %3933  ;;  %v2294_v36 = vmul.f32 %v3932_v50, %v2257_v24  ;;  %3486 = vmatmul.mubr.msk.bf16.vlgmr.msra.gmra.mrb[20].mxu0 %vm112_vm0, %v2358_v53  ;;  %3951 = vrcp.f32 %v2277_v38 }
 0x562   :  { %v3936_v46 = vpop.eup %3935  ;;  %v2300_v17 = vmul.f32 %v3934_v7, %v2260_v20  ;;  %v2323_v8 = vsel %vm2243_vm6, %v5465_v52, %v2298_v42  ;;  %v2263_v52 = vmul.f32 2.0, %v3924_v4 }
 0x563   :  { %v3938_v0 = vpop.eup %3937  ;;  %v2296_v13 = vmul.f32 %v3936_v46, %v2258_v28  ;;  %v2321_v61 = vsel %vm2241_vm7, %v5468_v1, %v2294_v36 }
 0x564   :  { %v3940_v23 = vpop.eup %3939  ;;  %v2324_v31 = vsel %vm2244_vm8, %v5472_v58, %v2300_v17  ;;  %v2278_v16 = vsub.f32 1.0, %v3938_v0  ;;  %v2262_v40 = vmul.f32 2.0, %v3938_v0 }
 0x565   :  { %v3942_v25 = vpop.eup %3941  ;;  %v2360_v43 = vpack.c.bf16 %v2324_v31, %v2323_v8  ;;  %v2322_v15 = vsel %vm2242_vm9, %v5476_v54, %v2296_v13  ;;  %v2283_v14 = vsub.f32 1.0, %v3940_v23  ;;  %v2267_v6 = vmul.f32 2.0, %v3940_v23 }
 0x566   :  { %v3944_v3 = vpop.eup %3943  ;;  %v2359_v18 = vpack.c.bf16 %v2322_v15, %v2321_v61  ;;  %3953 = vrcp.f32 %v2278_v16  ;;  %v2281_v49 = vsub.f32 1.0, %v3942_v25  ;;  %v2265_v21 = vmul.f32 2.0, %v3942_v25 }
 0x567   :  { %3955 = vrcp.f32 %v2283_v14  ;;  %v2284_v62 = vsub.f32 1.0, %v3944_v3  ;;  %v2268_v45 = vmul.f32 2.0, %v3944_v3 }
 0x568   :  { %v3946_v39 = vpop.eup %3945  ;;  %3957 = vrcp.f32 %v2281_v49  ;;  %3489 = vmatprep.mubr.msk.bf16.mxu0 %vm112_vm0, %v2359_v18 }
 0x569   :  { %3959 = vrcp.f32 %v2284_v62  ;;  %3490 = vmatmul.mubr.msk.bf16.gmra.mrb[24].mxu0 %vm112_vm0, %v2360_v43  ;;  %v3948_v58 = vpop.eup %3947  ;;  %v2306_v1 = vmul.f32 %v3946_v39, %v2263_v52 }
 0x56a   :  { %v3950_v11 = vpop.eup %3949  ;;  %v2282_v54 = vsub.f32 1.0, %v3948_v58  ;;  %v2266_v2 = vmul.f32 2.0, %v3948_v58 }
 0x56b   :  { %v3952_v22 = vpop.eup %3951  ;;  %v2308_v32 = vmul.f32 %v3950_v11, %v2264_v47  ;;  %v2327_v56 = vsel %vm2247_vm10, %v5481_v57, %v2306_v1 }
 0x56c   :  { %3961 = vrcp.f32 %v2282_v54  ;;  %v2302_v44 = vmul.f32 %v3952_v22, %v2261_v12 }
 0x56d   :  { %v2328_v27 = vsel %vm2248_vm11, %v5489_v60, %v2308_v32 }
 0x56e   :  { %v2362_v63 = vpack.c.bf16 %v2328_v27, %v2327_v56  ;;  %v2325_v59 = vsel %vm2245_vm12, %v5484_v37, %v2302_v44 }
 0x570   :  { %v3954_v4 = vpop.eup %3953 }
 0x571   :  { %v3956_v30 = vpop.eup %3955  ;;  %v2304_v26 = vmul.f32 %v3954_v4, %v2262_v40 }
 0x572   :  { %v3958_v34 = vpop.eup %3957  ;;  %v2314_v10 = vmul.f32 %v3956_v30, %v2267_v6 }
 0x573   :  { %v3960_v53 = vpop.eup %3959  ;;  %v2326_v57 = vsel %vm2246_vm13, %v5492_v41, %v2304_v26  ;;  %v2310_v38 = vmul.f32 %v3958_v34, %v2265_v21 }
 0x574   :  { %v2361_v60 = vpack.c.bf16 %v2326_v57, %v2325_v59  ;;  %v2316_v29 = vmul.f32 %v3960_v53, %v2268_v45  ;;  %v2331_v19 = vsel %vm2251_vm14, %v5496_v51, %v2314_v10 }
 0x575   :  { %v2329_v41 = vsel %vm2249_vm2, %v5500_v55, %v2310_v38 }
 0x576   :  { %v2332_v9 = vsel %vm2252_vm15, %v5506_v48, %v2316_v29  ;;  %3493 = vmatprep.mubr.msk.bf16.mxu0 %vm112_vm0, %v2361_v60  ;;  %v3962_v24 = vpop.eup %3961  ;;  %v5565_v48 = vld [vmem:[%s5883_s12] ss:$0 sm:$0xff] }
 0x577   :  { %v2364_v5 = vpack.c.bf16 %v2332_v9, %v2331_v19  ;;  %3494 = vmatmul.mubr.msk.bf16.gmra.mrb[28].mxu0 %vm112_vm0, %v2362_v63  ;;  %v2312_v37 = vmul.f32 %v3962_v24, %v2266_v2  ;;  %v2353_v24 = vld [vmem:[%s5880_s9] sm:$0x1] }
 0x579   :  { %v2330_v50 = vsel %vm2250_vm3, %v5511_v35, %v2312_v37  ;;  %v2354_v37 = vld [vmem:[%s5881_s10] sm:$0x1] }
 0x57a   :  { %v2363_v51 = vpack.c.bf16 %v2330_v50, %v2329_v41  ;;  %v2565_v41 = vpack.c.bf16 %v2354_v37, %v2354_v37 }
 0x57c   :  { %3497 = vmatprep.mubr.msk.bf16.mxu0 %vm112_vm0, %v2363_v51 }
 0x57f   :  { %3498 = vmatmul.mubr.msk.bf16.gmra.mrb[32].mxu0 %vm112_vm0, %v2364_v5  ;;  %v2496_v5 = vpack.c.bf16 %v2353_v24, %v2353_v24  ;;  %v2344_v24 = vld [vmem:[#allocation2 + $0x58] sm:$0xff] }
 0x580   :  { %3517 = vmatprep.mubr.msk.bf16.mxu0 %vm4055_vm1, %v6094_v33 }
 0x634   :  { %v3487_v42 = vpop.f32.mrb[20].mxu0 }
 0x635   :  { %v2425_v20 = vpop.f32.mrb[21].mxu0  ;;  %v2952_v55 = vmul.f32 %v3487_v42, %v5565_v48 }
 0x636   :  { %v3488_v7 = vpop.f32.mrb[22].mxu0  ;;  %v2950_v46 = vmul.f32 %v5565_v48, %v2425_v20 }
 0x637   :  { %v2489_v36 = vpack.c.bf16 %v3488_v7, %v3487_v42  ;;  %v2953_v35 = vmul.f32 %v3488_v7, %v5565_v48  ;;  %v2428_v28 = vpop.f32.mrb[23].mxu0 }
 0x638   :  { %v2488_v17 = vpack.c.bf16 %v2428_v28, %v2425_v20  ;;  %v2951_v0 = vmul.f32 %v5565_v48, %v2428_v28  ;;  %v6095_v20 = vld [vmem:[#allocation29_spill] sm:$0xff]  ;;  %v2338_v28 = vld [vmem:[#allocation2 + $0x28] sm:$0xff] }
 0x639   :  { %v5571_v13 = vpack.c.bf16 %v2953_v35, %v2952_v55  ;;  %v2505_v52 = vsel %vm2497_vm4, %v2489_v36, 0 }
 0x63a   :  { %v5573_v23 = vpack.c.bf16 %v2951_v0, %v2950_v46  ;;  %v5576_v8 = vsel %vm2497_vm4, %v2488_v17, 0  ;;  %v2337_v46 = vld [vmem:[#allocation2 + $0x20] sm:$0xff]  ;;  %v3144_v17 = vadd.f32 -1.0, %v2338_v28 }
 0x63b   :  { %3502 = vmatpush3.bf16.xpose.msra.mxu0 %v5576_v8  ;;  %v3143_v0 = vadd.f32 -1.0, %v2337_v46  ;;  %v2335_v46 = vld [vmem:[#allocation2 + $0x10] sm:$0xff] }
 0x63c   :  { %v3491_v31 = vpop.f32.mrb[24].mxu0  ;;  %3573 = vmatprep.subr.bf16.mxu1 %v5573_v23  ;;  %3503 = vmatprep.subr.bf16.mxu0 %v6094_v33 }
 0x63d   :  { %v2441_v16 = vpop.f32.mrb[25].mxu0  ;;  %3581 = vmatpush3.bf16.msra.mxu1 %v5573_v23  ;;  %v2956_v61 = vmul.f32 %v3491_v31, %v5565_v48 }
 0x63e   :  { %v3492_v25 = vpop.f32.mrb[26].mxu0  ;;  %3574 = vmatprep.subr.bf16.mxu1 %v5571_v13  ;;  %v2954_v3 = vmul.f32 %v5565_v48, %v2441_v16 }
 0x63f   :  { %v2491_v43 = vpack.c.bf16 %v3492_v25, %v3491_v31  ;;  %v2957_v15 = vmul.f32 %v3492_v25, %v5565_v48  ;;  %v2444_v14 = vpop.f32.mrb[27].mxu0 }
 0x640   :  { %v2490_v18 = vpack.c.bf16 %v2444_v14, %v2441_v16  ;;  %v2955_v49 = vmul.f32 %v5565_v48, %v2444_v14 }
 0x641   :  { %v5587_v62 = vpack.c.bf16 %v2957_v15, %v2956_v61  ;;  %3582 = vmatpush3.bf16.msra.mxu1 %v5571_v13  ;;  %v2511_v6 = vsel %vm2497_vm4, %v2491_v43, 0  ;;  %v2749_v43 = vmul.f32 1e+30, %v3144_v17  ;;  %v2748_v15 = vmul.f32 1e+30, %v3143_v0  ;;  %v2334_v17 = vld [vmem:[#allocation2 + $0x8] sm:$0xff] }
 0x642   :  { %v5590_v39 = vpack.c.bf16 %v2955_v49, %v2954_v3  ;;  %v2508_v1 = vsel %vm2497_vm4, %v2490_v18, 0 }
 0x643   :  { %3504 = vmatpush3.bf16.xpose.msra.mxu0 %v2505_v52 }
 0x644   :  { %3575 = vmatprep.subr.bf16.mxu1 %v5590_v39  ;;  %3505 = vmatprep.subr.bf16.mxu0 %v6094_v33 }
 0x645   :  { %3583 = vmatpush3.bf16.msra.mxu1 %v5590_v39 }
 0x646   :  { %3576 = vmatprep.subr.bf16.mxu1 %v5587_v62 }
 0x649   :  { %3584 = vmatpush3.bf16.msra.mxu1 %v5587_v62 }
 0x64a   :  { %v3495_v58 = vpop.f32.mrb[28].mxu0 }
 0x64b   :  { %v2457_v47 = vpop.f32.mrb[29].mxu0  ;;  %3506 = vmatpush3.bf16.xpose.msra.mxu0 %v2508_v1  ;;  %v2960_v54 = vmul.f32 %v3495_v58, %v5565_v48 }
 0x64c   :  { %v3496_v11 = vpop.f32.mrb[30].mxu0  ;;  %3507 = vmatprep.subr.bf16.mxu0 %v6094_v33  ;;  %v2958_v56 = vmul.f32 %v5565_v48, %v2457_v47 }
 0x64d   :  { %v2493_v22 = vpack.c.bf16 %v3496_v11, %v3495_v58  ;;  %v2961_v32 = vmul.f32 %v3496_v11, %v5565_v48  ;;  %v2460_v12 = vpop.f32.mrb[31].mxu0 }
 0x64e   :  { %v2492_v27 = vpack.c.bf16 %v2460_v12, %v2457_v47  ;;  %v2959_v44 = vmul.f32 %v5565_v48, %v2460_v12 }
 0x64f   :  { %v5604_v63 = vpack.c.bf16 %v2961_v32, %v2960_v54  ;;  %v2517_v38 = vsel %vm2497_vm4, %v2493_v22, 0 }
 0x650   :  { %v5606_v40 = vpack.c.bf16 %v2959_v44, %v2958_v56  ;;  %v2514_v19 = vsel %vm2497_vm4, %v2492_v27, 0 }
 0x652   :  { %v3499_v4 = vpop.f32.mrb[32].mxu0  ;;  %3577 = vmatprep.subr.bf16.mxu1 %v5606_v40 }
 0x653   :  { %v2473_v30 = vpop.f32.mrb[33].mxu0  ;;  %3585 = vmatpush3.bf16.msra.mxu1 %v5606_v40  ;;  %3508 = vmatpush3.bf16.xpose.msra.mxu0 %v2511_v6  ;;  %v2964_v34 = vmul.f32 %v3499_v4, %v5565_v48 }
 0x654   :  { %v3500_v26 = vpop.f32.mrb[34].mxu0  ;;  %3578 = vmatprep.subr.bf16.mxu1 %v5604_v63  ;;  %3509 = vmatprep.subr.bf16.mxu0 %v6094_v33  ;;  %v2962_v59 = vmul.f32 %v5565_v48, %v2473_v30 }
 0x655   :  { %v2495_v10 = vpack.c.bf16 %v3500_v26, %v3499_v4  ;;  %v2965_v45 = vmul.f32 %v3500_v26, %v5565_v48  ;;  %v2476_v53 = vpop.f32.mrb[35].mxu0  ;;  %v2333_v4 = vld [vmem:[#allocation2] sm:$0xff] }
 0x656   :  { %v2494_v57 = vpack.c.bf16 %v2476_v53, %v2473_v30  ;;  %v2963_v60 = vmul.f32 %v5565_v48, %v2476_v53 }
 0x657   :  { %v2973_v21 = vpack.c.bf16 %v2965_v45, %v2964_v34  ;;  %3586 = vmatpush3.bf16.msra.mxu1 %v5604_v63  ;;  %v2523_v2 = vsel %vm2497_vm4, %v2495_v10, 0 }
 0x658   :  { %v2972_v29 = vpack.c.bf16 %v2963_v60, %v2962_v59  ;;  %v2520_v9 = vsel %vm2497_vm4, %v2494_v57, 0  ;;  %v3139_v60 = vadd.f32 -1.0, %v2333_v4 }
 0x65a   :  { %3579 = vmatprep.subr.bf16.mxu1 %v2972_v29 }
 0x65b   :  { %3587 = vmatpush3.bf16.msra.mxu1 %v2972_v29  ;;  %3510 = vmatpush3.bf16.xpose.msra.mxu0 %v2514_v19 }
 0x65c   :  { %3580 = vmatprep.subr.bf16.mxu1 %v2973_v21  ;;  %3511 = vmatprep.subr.bf16.mxu0 %v6094_v33 }
 0x65f   :  { %3588 = vmatpush3.bf16.msra.mxu1 %v2973_v21 }
 0x663   :  { %3512 = vmatpush3.bf16.xpose.msra.mxu0 %v2517_v38 }
 0x664   :  { %3513 = vmatprep.subr.bf16.mxu0 %v6094_v33 }
 0x66b   :  { %3514 = vmatpush3.bf16.xpose.msra.mxu0 %v2520_v9 }
 0x66c   :  { %3515 = vmatprep.subr.bf16.mxu0 %v6094_v33 }
 0x673   :  { %3516 = vmatpush3.bf16.xpose.msra.mxu0 %v2523_v2 }
 0x674   :  { %3521 = vmatprep.subr.bf16.mxu0 %v6094_v33 }
 0x67a   :  { %3518 = vmatmul.mubr.msk.bf16.vlgmr.msra.gmra.mrb[36].mxu0 %vm2497_vm4, %v2496_v5 }
 0x67b   :  { %3522 = vmatpush3.bf16.xpose.msra.mxu0 %v5576_v8  ;;  %3537 = vmatprep.mubr.msk.bf16.mxu0 %vm4055_vm1, %v6094_v33  ;;  %v2339_v8 = vld [vmem:[#allocation2 + $0x30] sm:$0xff] }
 0x67c   :  { %3523 = vmatprep.subr.bf16.mxu0 %v6094_v33  ;;  %v3145_v3 = vadd.f32 -1.0, %v2339_v8 }
 0x67e   :  { %v2750_v32 = vmul.f32 1e+30, %v3145_v3 }
 0x683   :  { %3524 = vmatpush3.bf16.xpose.msra.mxu0 %v2505_v52 }
 0x684   :  { %3525 = vmatprep.subr.bf16.mxu0 %v6094_v33 }
 0x68b   :  { %3526 = vmatpush3.bf16.xpose.msra.mxu0 %v2508_v1 }
 0x68c   :  { %3527 = vmatprep.subr.bf16.mxu0 %v6094_v33 }
 0x693   :  { %3528 = vmatpush3.bf16.xpose.msra.mxu0 %v2511_v6  ;;  %v2342_v6 = vld [vmem:[#allocation2 + $0x48] sm:$0xff] }
 0x694   :  { %3529 = vmatprep.subr.bf16.mxu0 %v6094_v33 }
 0x69b   :  { %3530 = vmatpush3.bf16.xpose.msra.mxu0 %v2514_v19 }
 0x69c   :  { %3531 = vmatprep.subr.bf16.mxu0 %v6094_v33 }
 0x6a3   :  { %3532 = vmatpush3.bf16.xpose.msra.mxu0 %v2517_v38 }
 0x6a4   :  { %3533 = vmatprep.subr.bf16.mxu0 %v6094_v33 }
 0x6ab   :  { %3534 = vmatpush3.bf16.xpose.msra.mxu0 %v2520_v9 }
 0x6ac   :  { %3535 = vmatprep.subr.bf16.mxu0 %v6094_v33 }
 0x6b3   :  { %3536 = vmatpush3.bf16.xpose.msra.mxu0 %v2523_v2  ;;  %v2345_v2 = vld [vmem:[#allocation2 + $0x60] sm:$0xff] }
 0x6b4   :  { %3541 = vmatprep.subr.bf16.mxu0 %v5573_v23 }
 0x6ba   :  { %3538 = vmatmul.mubr.msk.bf16.vlgmr.msra.gmra.mrb[40].mxu0 %vm2497_vm4, %v2565_v41 }
 0x6bb   :  { %3542 = vmatpush3.bf16.msra.mxu0 %v5573_v23  ;;  %v2341_v23 = vld [vmem:[#allocation2 + $0x40] sm:$0xff] }
 0x6bc   :  { %3543 = vmatprep.subr.bf16.mxu0 %v5571_v13  ;;  %v3147_v14 = vadd.f32 -1.0, %v2341_v23 }
 0x6be   :  { %v2752_v22 = vmul.f32 1e+30, %v3147_v14  ;;  %v3140_v14 = vadd.f32 -1.0, %v2334_v17 }
 0x6bf   :  { %3544 = vmatpush3.bf16.msra.mxu0 %v5571_v13 }
 0x6c0   :  { %3545 = vmatprep.subr.bf16.mxu0 %v5590_v39 }
 0x6c3   :  { %3546 = vmatpush3.bf16.msra.mxu0 %v5590_v39  ;;  %v2340_v39 = vld [vmem:[#allocation2 + $0x38] sm:$0xff] }
 0x6c4   :  { %3547 = vmatprep.subr.bf16.mxu0 %v5587_v62  ;;  %v3146_v56 = vadd.f32 -1.0, %v2340_v39  ;;  %v2347_v39 = vld [vmem:[#allocation2 + $0x70] sm:$0xff] }
 0x6c6   :  { %v2751_v57 = vmul.f32 1e+30, %v3146_v56  ;;  %v3153_v56 = vadd.f32 -1.0, %v2347_v39 }
 0x6c7   :  { %3548 = vmatpush3.bf16.msra.mxu0 %v5587_v62  ;;  %v2343_v62 = vld [vmem:[#allocation2 + $0x50] sm:$0xff] }
 0x6c8   :  { %3549 = vmatprep.subr.bf16.mxu0 %v5606_v40  ;;  %v3149_v12 = vadd.f32 -1.0, %v2343_v62 }
 0x6ca   :  { %v2754_v59 = vmul.f32 1e+30, %v3149_v12  ;;  %v2745_v12 = vmul.f32 1e+30, %v3140_v14 }
 0x6cb   :  { %3550 = vmatpush3.bf16.msra.mxu0 %v5606_v40 }
 0x6cc   :  { %3551 = vmatprep.subr.bf16.mxu0 %v5604_v63 }
 0x6cf   :  { %3552 = vmatpush3.bf16.msra.mxu0 %v5604_v63 }
 0x6d0   :  { %3553 = vmatprep.subr.bf16.mxu0 %v2972_v29 }
 0x6d3   :  { %3554 = vmatpush3.bf16.msra.mxu0 %v2972_v29 }
 0x6d4   :  { %3555 = vmatprep.subr.bf16.mxu0 %v2973_v21 }
 0x6d7   :  { %3556 = vmatpush3.bf16.msra.mxu0 %v2973_v21  ;;  %v3148_v21 = vadd.f32 -1.0, %v2342_v6 }
 0x74d   :  { %v2559_v33 = vpop.f32.mrb[36].mxu0 }
 0x74e   :  { %v3519_v50 = vpop.f32.mrb[37].mxu0  ;;  %v5658_v13 = vrot.slane %v2559_v33, %v6095_v20 }
 0x74f   :  { %v2562_v51 = vpop.f32.mrb[38].mxu0 }
 0x750   :  { %v3520_v48 = vpop.f32.mrb[39].mxu0 }
 0x751   :  { %v2744_v48 = vmul.f32 1e+30, %v3139_v60  ;;  %v2758_v60 = vmul.f32 1e+30, %v3153_v56 }
 0x78d   :  { %v2603_v42 = vpop.f32.mrb[40].mxu0 }
 0x78e   :  { %v2612_v7 = vrot.slane %v2603_v42, %v6095_v20  ;;  %v3539_v55 = vpop.f32.mrb[41].mxu0  ;;  %v2753_v42 = vmul.f32 1e+30, %v3148_v21  ;;  %v3151_v20 = vadd.f32 -1.0, %v2345_v2 }
 0x78f   :  { %v2606_v36 = vpop.f32.mrb[42].mxu0 }
 0x790   :  { %2634 = vbcast.lane.b32.xlu0 %v2612_v7, 296  ;;  %2630 = vbcast.lane.b32.xlu1 %v2612_v7, 288  ;;  %v3540_v35 = vpop.f32.mrb[43].mxu0 }
 0x794   :  { %2646 = vbcast.lane.b32.xlu0 %v2612_v7, 320  ;;  %2638 = vbcast.lane.b32.xlu1 %v2612_v7, 304 }
 0x798   :  { %2654 = vbcast.lane.b32.xlu0 %v2612_v7, 336  ;;  %2642 = vbcast.lane.b32.xlu1 %v2612_v7, 312 }
 0x79c   :  { %2614 = vbcast.lane.b32.xlu0 %v2612_v7, 256  ;;  %2650 = vbcast.lane.b32.xlu1 %v2612_v7, 328 }
 0x7a0   :  { %2662 = vbcast.lane.b32.xlu0 %v2612_v7, 352  ;;  %2658 = vbcast.lane.b32.xlu1 %v2612_v7, 344 }
 0x7a4   :  { %2622 = vbcast.lane.b32.xlu0 %v2612_v7, 272  ;;  %2618 = vbcast.lane.b32.xlu1 %v2612_v7, 264 }
 0x7a8   :  { %2670 = vbcast.lane.b32.xlu0 %v2612_v7, 368  ;;  %2666 = vbcast.lane.b32.xlu1 %v2612_v7, 360 }
 0x7ac   :  { %2626 = vbcast.lane.b32.xlu1 %v2612_v7, 280 }
 0x7b0   :  { %2674 = vbcast.lane.b32.xlu1 %v2612_v7, 376  ;;  %v3150_v7 = vadd.f32 -1.0, %v2344_v24 }
 0x802   :  { %v2635_v31 = vpop.permute.xlu0 %2634  ;;  %v2631_v16 = vpop.permute.xlu1 %2630 }
 0x803   :  { %v2685_v25 = vadd.f32 %v5658_v13, %v2635_v31  ;;  %v2684_v61 = vadd.f32 %v5658_v13, %v2631_v16 }
 0x805   :  { %v2701_v18 = vmul.f32 0.2, %v2685_v25  ;;  %v2700_v49 = vmul.f32 0.2, %v2684_v61 }
 0x806   :  { %v2647_v52 = vpop.permute.xlu0 %2646  ;;  %v2639_v58 = vpop.permute.xlu1 %2638 }
 0x807   :  { %v2717_v1 = vmax.f32 %v2685_v25, %v2701_v18  ;;  %v2716_v47 = vmax.f32 %v2684_v61, %v2700_v49  ;;  %v2688_v11 = vadd.f32 %v5658_v13, %v2647_v52  ;;  %v2686_v54 = vadd.f32 %v5658_v13, %v2639_v58  ;;  %v2346_v52 = vld [vmem:[#allocation2 + $0x68] sm:$0xff] }
 0x808   :  { %v2756_v61 = vmul.f32 1e+30, %v3151_v20 }
 0x809   :  { %v2704_v27 = vmul.f32 0.2, %v2688_v11  ;;  %v2702_v44 = vmul.f32 0.2, %v2686_v54  ;;  %v5664_v63 = vadd.f32 %v2749_v43, %v2717_v1  ;;  %v5666_v40 = vadd.f32 %v2748_v15, %v2716_v47 }
 0x80a   :  { %v2655_v30 = vpop.permute.xlu0 %2654  ;;  %v2643_v26 = vpop.permute.xlu1 %2642  ;;  %v2755_v43 = vmul.f32 1e+30, %v3150_v7  ;;  %v3141_v15 = vadd.f32 -1.0, %v2335_v46 }
 0x80b   :  { %v2720_v34 = vmax.f32 %v2688_v11, %v2704_v27  ;;  %v2718_v10 = vmax.f32 %v2686_v54, %v2702_v44  ;;  %v2690_v45 = vadd.f32 %v5658_v13, %v2655_v30  ;;  %v2687_v53 = vadd.f32 %v5658_v13, %v2643_v26  ;;  %2786 = vmax.xlane.f32.xlu1 %v5664_v63  ;;  %v2336_v26 = vld [vmem:[#allocation2 + $0x18] sm:$0xff] }
 0x80c   :  { %2784 = vmax.xlane.f32.xlu0 %v5666_v40  ;;  %v3152_v27 = vadd.f32 -1.0, %v2346_v52 }
 0x80d   :  { %v2706_v29 = vmul.f32 0.2, %v2690_v45  ;;  %v2703_v19 = vmul.f32 0.2, %v2687_v53  ;;  %v5672_v38 = vadd.f32 %v2752_v22, %v2720_v34  ;;  %v5674_v9 = vadd.f32 %v2750_v32, %v2718_v10 }
 0x80e   :  { %v2615_v5 = vpop.permute.xlu0 %2614  ;;  %v2651_v37 = vpop.permute.xlu1 %2650  ;;  %v2746_v32 = vmul.f32 1e+30, %v3141_v15  ;;  %v2757_v21 = vmul.f32 1e+30, %v3152_v27 }
 0x80f   :  { %v2722_v41 = vmax.f32 %v2690_v45, %v2706_v29  ;;  %v2719_v33 = vmax.f32 %v2687_v53, %v2703_v19  ;;  %v2680_v50 = vadd.f32 %v5658_v13, %v2615_v5  ;;  %v2689_v51 = vadd.f32 %v5658_v13, %v2651_v37  ;;  %2792 = vmax.xlane.f32.xlu1 %v5672_v38 }
 0x810   :  { %2788 = vmax.xlane.f32.xlu0 %v5674_v9  ;;  %v3142_v29 = vadd.f32 -1.0, %v2336_v26 }
 0x811   :  { %v2696_v55 = vmul.f32 0.2, %v2680_v50  ;;  %v2705_v36 = vmul.f32 0.2, %v2689_v51  ;;  %v5680_v35 = vadd.f32 %v2754_v59, %v2722_v41  ;;  %v5682_v28 = vadd.f32 %v2751_v57, %v2719_v33  ;;  %v2348_v41 = vld [vmem:[#allocation2 + $0x78] sm:$0xff] }
 0x812   :  { %v2663_v0 = vpop.permute.xlu0 %2662  ;;  %v2659_v23 = vpop.permute.xlu1 %2658 }
 0x813   :  { %v2712_v8 = vmax.f32 %v2680_v50, %v2696_v55  ;;  %v2721_v31 = vmax.f32 %v2689_v51, %v2705_v36  ;;  %v2692_v16 = vadd.f32 %v5658_v13, %v2663_v0  ;;  %v2691_v25 = vadd.f32 %v5658_v13, %v2659_v23  ;;  %2796 = vmax.xlane.f32.xlu1 %v5680_v35 }
 0x814   :  { %2790 = vmax.xlane.f32.xlu0 %v5682_v28  ;;  %v3154_v55 = vadd.f32 -1.0, %v2348_v41 }
 0x815   :  { %v2708_v3 = vmul.f32 0.2, %v2692_v16  ;;  %v2707_v18 = vmul.f32 0.2, %v2691_v25  ;;  %v5688_v49 = vadd.f32 %v2744_v48, %v2712_v8  ;;  %v5690_v62 = vadd.f32 %v2753_v42, %v2721_v31 }
 0x816   :  { %v2623_v58 = vpop.permute.xlu0 %2622  ;;  %v2619_v1 = vpop.permute.xlu1 %2618  ;;  %v2747_v48 = vmul.f32 1e+30, %v3142_v29  ;;  %v2759_v8 = vmul.f32 1e+30, %v3154_v55 }
 0x817   :  { %v2724_v47 = vmax.f32 %v2692_v16, %v2708_v3  ;;  %v2723_v11 = vmax.f32 %v2691_v25, %v2707_v18  ;;  %v2682_v54 = vadd.f32 %v5658_v13, %v2623_v58  ;;  %v2681_v22 = vadd.f32 %v5658_v13, %v2619_v1  ;;  %2776 = vmax.xlane.f32.xlu1 %v5688_v49 }
 0x818   :  { %2794 = vmax.xlane.f32.xlu0 %v5690_v62 }
 0x819   :  { %v2698_v44 = vmul.f32 0.2, %v2682_v54  ;;  %v2697_v4 = vmul.f32 0.2, %v2681_v22  ;;  %v5696_v6 = vadd.f32 %v2756_v61, %v2724_v47  ;;  %v5698_v30 = vadd.f32 %v2755_v43, %v2723_v11 }
 0x81a   :  { %v2671_v34 = vpop.permute.xlu0 %2670  ;;  %v2667_v10 = vpop.permute.xlu1 %2666 }
 0x81b   :  { %v2714_v45 = vmax.f32 %v2682_v54, %v2698_v44  ;;  %v2713_v53 = vmax.f32 %v2681_v22, %v2697_v4  ;;  %v2694_v59 = vadd.f32 %v5658_v13, %v2671_v34  ;;  %v2693_v57 = vadd.f32 %v5658_v13, %v2667_v10  ;;  %2800 = vmax.xlane.f32.xlu1 %v5696_v6 }
 0x81c   :  { %2798 = vmax.xlane.f32.xlu0 %v5698_v30 }
 0x81d   :  { %v2710_v19 = vmul.f32 0.2, %v2694_v59  ;;  %v2709_v2 = vmul.f32 0.2, %v2693_v57  ;;  %v5704_v24 = vadd.f32 %v2746_v32, %v2714_v45  ;;  %v5706_v5 = vadd.f32 %v2745_v12, %v2713_v53 }
 0x81e   :  { %v2627_v37 = vpop.permute.xlu1 %2626 }
 0x81f   :  { %v2726_v33 = vmax.f32 %v2694_v59, %v2710_v19  ;;  %v2725_v50 = vmax.f32 %v2693_v57, %v2709_v2  ;;  %v2683_v51 = vadd.f32 %v5658_v13, %v2627_v37  ;;  %2780 = vmax.xlane.f32.xlu1 %v5704_v24 }
 0x820   :  { %2778 = vmax.xlane.f32.xlu0 %v5706_v5 }
 0x821   :  { %v2699_v42 = vmul.f32 0.2, %v2683_v51  ;;  %v5711_v20 = vadd.f32 %v2758_v60, %v2726_v33  ;;  %v5713_v7 = vadd.f32 %v2757_v21, %v2725_v50 }
 0x822   :  { %v2675_v36 = vpop.permute.xlu1 %2674 }
 0x823   :  { %v2715_v46 = vmax.f32 %v2683_v51, %v2699_v42  ;;  %v2695_v17 = vadd.f32 %v5658_v13, %v2675_v36  ;;  %2804 = vmax.xlane.f32.xlu1 %v5711_v20 }
 0x824   :  { %2802 = vmax.xlane.f32.xlu0 %v5713_v7 }
 0x825   :  { %v2711_v0 = vmul.f32 0.2, %v2695_v17  ;;  %v5718_v23 = vadd.f32 %v2747_v48, %v2715_v46 }
 0x827   :  { %v2727_v31 = vmax.f32 %v2695_v17, %v2711_v0 }
 0x828   :  { %2782 = vmax.xlane.f32.xlu0 %v5718_v23 }
 0x829   :  { %v5721_v16 = vadd.f32 %v2759_v8, %v2727_v31 }
 0x82c   :  { %2806 = vmax.xlane.f32.xlu0 %v5721_v16 }
 0x898   :  { %v2787_v25 = vpop.xlane.xlu1 %2786 }
 0x899   :  { %v2785_v61 = vpop.xlane.xlu0 %2784  ;;  %v2813_v43 = vsub.f32 %v5664_v63, %v2787_v25 }
 0x89a   :  { %v2812_v13 = vsub.f32 %v5666_v40, %v2785_v61 }
 0x89b   :  { %v2834_v15 = vmul.f32 1.442695, %v2813_v43 }
 0x89c   :  { %v2832_v14 = vmul.f32 1.442695, %v2812_v13  ;;  %v2793_v3 = vpop.xlane.xlu1 %2792 }
 0x89d   :  { %3963 = vpow2.f32 %v2834_v15  ;;  %v2789_v18 = vpop.xlane.xlu0 %2788  ;;  %v2816_v39 = vsub.f32 %v5672_v38, %v2793_v3 }
 0x89e   :  { %3965 = vpow2.f32 %v2832_v14  ;;  %v2814_v52 = vsub.f32 %v5674_v9, %v2789_v18 }
 0x89f   :  { %v2840_v47 = vmul.f32 1.442695, %v2816_v39 }
 0x8a0   :  { %v2836_v58 = vmul.f32 1.442695, %v2814_v52  ;;  %v2797_v1 = vpop.xlane.xlu1 %2796 }
 0x8a1   :  { %v2791_v11 = vpop.xlane.xlu0 %2790  ;;  %v2818_v54 = vsub.f32 %v5680_v35, %v2797_v1 }
 0x8a2   :  { %3967 = vpow2.f32 %v2836_v58  ;;  %v2815_v63 = vsub.f32 %v5682_v28, %v2791_v11 }
 0x8a3   :  { %3969 = vpow2.f32 %v2840_v47  ;;  %v2844_v32 = vmul.f32 1.442695, %v2818_v54 }
 0x8a4   :  { %v2838_v40 = vmul.f32 1.442695, %v2815_v63  ;;  %v2777_v22 = vpop.xlane.xlu1 %2776 }
 0x8a5   :  { %v2795_v12 = vpop.xlane.xlu0 %2794  ;;  %v2808_v56 = vsub.f32 %v5688_v49, %v2777_v22 }
 0x8a6   :  { %3971 = vpow2.f32 %v2838_v40  ;;  %v2817_v38 = vsub.f32 %v5690_v62, %v2795_v12 }
 0x8a7   :  { %v5732_v9 = vpop.eup %3963  ;;  %3973 = vpow2.f32 %v2844_v32  ;;  %v2824_v28 = vmul.f32 1.442695, %v2808_v56 }
 0x8a8   :  { %v5734_v27 = vpop.eup %3965  ;;  %v2842_v44 = vmul.f32 1.442695, %v2817_v38  ;;  %2866 = vadd.xlane.f32.xlu0 %v5732_v9  ;;  %v2801_v35 = vpop.xlane.xlu1 %2800 }
 0x8a9   :  { %2864 = vadd.xlane.f32.xlu1 %v5734_v27  ;;  %v2799_v4 = vpop.xlane.xlu0 %2798  ;;  %v2820_v26 = vsub.f32 %v5696_v6, %v2801_v35 }
 0x8aa   :  { %3975 = vpow2.f32 %v2842_v44  ;;  %v2819_v49 = vsub.f32 %v5698_v30, %v2799_v4 }
 0x8ab   :  { %3977 = vpow2.f32 %v2824_v28  ;;  %v2848_v45 = vmul.f32 1.442695, %v2820_v26 }
 0x8ac   :  { %v5740_v34 = vpop.eup %3967  ;;  %v2846_v62 = vmul.f32 1.442695, %v2819_v49  ;;  %v2781_v10 = vpop.xlane.xlu1 %2780 }
 0x8ad   :  { %2868 = vadd.xlane.f32.xlu1 %v5740_v34  ;;  %v2779_v53 = vpop.xlane.xlu0 %2778  ;;  %v2810_v59 = vsub.f32 %v5704_v24, %v2781_v10  ;;  %v5745_v60 = vpop.eup %3969 }
 0x8ae   :  { %3979 = vpow2.f32 %v2846_v62  ;;  %v2809_v57 = vsub.f32 %v5706_v5, %v2779_v53 }
 0x8af   :  { %3981 = vpow2.f32 %v2848_v45  ;;  %v2828_v29 = vmul.f32 1.442695, %v2810_v59 }
 0x8b0   :  { %v5747_v6 = vpop.eup %3971  ;;  %v2826_v21 = vmul.f32 1.442695, %v2809_v57  ;;  %v2805_v30 = vpop.xlane.xlu1 %2804 }
 0x8b1   :  { %v2803_v19 = vpop.xlane.xlu0 %2802  ;;  %2870 = vadd.xlane.f32.xlu0 %v5747_v6  ;;  %2872 = vadd.xlane.f32.xlu1 %v5745_v60  ;;  %v2822_v2 = vsub.f32 %v5711_v20, %v2805_v30  ;;  %v5753_v37 = vpop.eup %3973 }
 0x8b2   :  { %3983 = vpow2.f32 %v2826_v21  ;;  %v2821_v24 = vsub.f32 %v5713_v7, %v2803_v19 }
 0x8b3   :  { %3985 = vpow2.f32 %v2828_v29  ;;  %v2852_v33 = vmul.f32 1.442695, %v2822_v2 }
 0x8b4   :  { %v5755_v5 = vpop.eup %3975  ;;  %v2850_v41 = vmul.f32 1.442695, %v2821_v24 }
 0x8b5   :  { %v2783_v50 = vpop.xlane.xlu0 %2782  ;;  %2874 = vadd.xlane.f32.xlu0 %v5755_v5  ;;  %2876 = vadd.xlane.f32.xlu1 %v5753_v37  ;;  %v5760_v48 = vpop.eup %3977 }
 0x8b6   :  { %3987 = vpow2.f32 %v2850_v41  ;;  %v2811_v51 = vsub.f32 %v5718_v23, %v2783_v50 }
 0x8b7   :  { %3989 = vpow2.f32 %v2852_v33 }
 0x8b8   :  { %v5762_v42 = vpop.eup %3979  ;;  %v2830_v20 = vmul.f32 1.442695, %v2811_v51 }
 0x8b9   :  { %v2807_v7 = vpop.xlane.xlu0 %2806  ;;  %2878 = vadd.xlane.f32.xlu0 %v5762_v42  ;;  %2856 = vadd.xlane.f32.xlu1 %v5760_v48  ;;  %v5767_v36 = vpop.eup %3981 }
 0x8ba   :  { %3991 = vpow2.f32 %v2830_v20  ;;  %v2823_v55 = vsub.f32 %v5721_v16, %v2807_v7 }
 0x8bc   :  { %v5769_v46 = vpop.eup %3983  ;;  %v2854_v17 = vmul.f32 1.442695, %v2823_v55 }
 0x8bd   :  { %2858 = vadd.xlane.f32.xlu0 %v5769_v46  ;;  %2880 = vadd.xlane.f32.xlu1 %v5767_v36  ;;  %v5773_v0 = vpop.eup %3985 }
 0x8be   :  { %3993 = vpow2.f32 %v2854_v17 }
 0x8c0   :  { %v5775_v23 = vpop.eup %3987 }
 0x8c1   :  { %2882 = vadd.xlane.f32.xlu0 %v5775_v23  ;;  %2860 = vadd.xlane.f32.xlu1 %v5773_v0  ;;  %v5779_v8 = vpop.eup %3989 }
 0x8c4   :  { %v5781_v31 = vpop.eup %3991 }
 0x8c5   :  { %2862 = vadd.xlane.f32.xlu0 %v5781_v31  ;;  %2884 = vadd.xlane.f32.xlu1 %v5779_v8 }
 0x8c8   :  { %v5785_v16 = vpop.eup %3993 }
 0x8c9   :  { %2886 = vadd.xlane.f32.xlu0 %v5785_v16 }
 0x935   :  { %v2867_v25 = vpop.xlane.xlu0 %2866 }
 0x936   :  { %v2893_v61 = vmax.f32 %v2867_v25, 1e-20  ;;  %v2865_v43 = vpop.xlane.xlu1 %2864 }
 0x937   :  { %v2892_v13 = vmax.f32 %v2865_v43, 1e-20 }
 0x938   :  { %3995 = vrcp.f32 %v2893_v61 }
 0x939   :  { %3997 = vrcp.f32 %v2892_v13 }
 0x93a   :  { %v2869_v15 = vpop.xlane.xlu1 %2868 }
 0x93b   :  { %v2894_v14 = vmax.f32 %v2869_v15, 1e-20 }
 0x93d   :  { %3999 = vrcp.f32 %v2894_v14 }
 0x93e   :  { %v2871_v3 = vpop.xlane.xlu0 %2870  ;;  %v2873_v18 = vpop.xlane.xlu1 %2872 }
 0x93f   :  { %v2895_v39 = vmax.f32 %v2871_v3, 1e-20  ;;  %v2896_v52 = vmax.f32 %v2873_v18, 1e-20 }
 0x941   :  { %4001 = vrcp.f32 %v2895_v39 }
 0x942   :  { %v3996_v58 = vpop.eup %3995  ;;  %v2875_v1 = vpop.xlane.xlu0 %2874  ;;  %4003 = vrcp.f32 %v2896_v52 }
 0x943   :  { %v2877_v47 = vpop.xlane.xlu1 %2876  ;;  %v3998_v11 = vpop.eup %3997  ;;  %v2897_v54 = vmax.f32 %v2875_v1, 1e-20  ;;  %v2925_v40 = vmul.f32 %v3996_v58, %v5732_v9 }
 0x944   :  { %v2898_v63 = vmax.f32 %v2877_v47, 1e-20  ;;  %v2924_v22 = vmul.f32 %v3998_v11, %v5734_v27 }
 0x945   :  { %4005 = vrcp.f32 %v2897_v54 }
 0x946   :  { %v2879_v32 = vpop.xlane.xlu0 %2878  ;;  %v2938_v56 = vpack.c.bf16 %v2925_v40, %v2924_v22  ;;  %4007 = vrcp.f32 %v2898_v63 }
 0x947   :  { %v2857_v12 = vpop.xlane.xlu1 %2856  ;;  %v2899_v38 = vmax.f32 %v2879_v32, 1e-20  ;;  %v4000_v35 = vpop.eup %3999 }
 0x948   :  { %v2888_v44 = vmax.f32 %v2857_v12, 1e-20  ;;  %3561 = vmatprep.mubr.bf16.mxu1 %v2938_v56  ;;  %v2926_v9 = vmul.f32 %v4000_v35, %v5740_v34 }
 0x949   :  { %4009 = vrcp.f32 %v2899_v38 }
 0x94a   :  { %v2859_v28 = vpop.xlane.xlu0 %2858  ;;  %4011 = vrcp.f32 %v2888_v44 }
 0x94b   :  { %v2881_v4 = vpop.xlane.xlu1 %2880  ;;  %v4002_v26 = vpop.eup %4001  ;;  %v2889_v49 = vmax.f32 %v2859_v28, 1e-20 }
 0x94c   :  { %v2900_v62 = vmax.f32 %v2881_v4, 1e-20  ;;  %v2927_v27 = vmul.f32 %v4002_v26, %v5747_v6  ;;  %v4004_v10 = vpop.eup %4003 }
 0x94d   :  { %4013 = vrcp.f32 %v2889_v49  ;;  %v2928_v29 = vmul.f32 %v4004_v10, %v5745_v60 }
 0x94e   :  { %v2883_v45 = vpop.xlane.xlu0 %2882  ;;  %v2939_v59 = vpack.c.bf16 %v2927_v27, %v2926_v9  ;;  %4015 = vrcp.f32 %v2900_v62 }
 0x94f   :  { %v2861_v53 = vpop.xlane.xlu1 %2860  ;;  %v4006_v57 = vpop.eup %4005  ;;  %v2901_v21 = vmax.f32 %v2883_v45, 1e-20 }
 0x950   :  { %v2890_v30 = vmax.f32 %v2861_v53, 1e-20  ;;  %3562 = vmatmul.mubr.bf16.vlgmr.msra.gmra.mrb[20].mxu1 %v2939_v59  ;;  %v2929_v19 = vmul.f32 %v4006_v57, %v5755_v5  ;;  %v4008_v2 = vpop.eup %4007 }
 0x951   :  { %4017 = vrcp.f32 %v2901_v21  ;;  %v2930_v51 = vmul.f32 %v4008_v2, %v5753_v37 }
 0x952   :  { %v2863_v24 = vpop.xlane.xlu0 %2862  ;;  %v2940_v41 = vpack.c.bf16 %v2929_v19, %v2928_v29  ;;  %4019 = vrcp.f32 %v2890_v30 }
 0x953   :  { %v2885_v34 = vpop.xlane.xlu1 %2884  ;;  %v4010_v6 = vpop.eup %4009  ;;  %v2891_v33 = vmax.f32 %v2863_v24, 1e-20 }
 0x954   :  { %v2902_v50 = vmax.f32 %v2885_v34, 1e-20  ;;  %3565 = vmatprep.mubr.bf16.mxu1 %v2940_v41  ;;  %v2931_v20 = vmul.f32 %v4010_v6, %v5762_v42  ;;  %v4012_v7 = vpop.eup %4011 }
 0x955   :  { %4021 = vrcp.f32 %v2891_v33  ;;  %v2920_v25 = vmul.f32 %v4012_v7, %v5760_v48 }
 0x956   :  { %v2887_v55 = vpop.xlane.xlu0 %2886  ;;  %v2941_v60 = vpack.c.bf16 %v2931_v20, %v2930_v51  ;;  %4023 = vrcp.f32 %v2902_v50 }
 0x957   :  { %v4014_v17 = vpop.eup %4013  ;;  %v2903_v5 = vmax.f32 %v2887_v55, 1e-20 }
 0x958   :  { %3566 = vmatmul.mubr.bf16.gmra.mrb[24].mxu1 %v2941_v60  ;;  %v2921_v61 = vmul.f32 %v4014_v17, %v5769_v46  ;;  %v4016_v43 = vpop.eup %4015 }
 0x959   :  { %4025 = vrcp.f32 %v2903_v5  ;;  %v2932_v37 = vmul.f32 %v4016_v43, %v5767_v36  ;;  %v3156_v36 = vld [vmem:[%s5882_s11] ss:$0 sm:$0xff] }
 0x95a   :  { %v2936_v13 = vpack.c.bf16 %v2921_v61, %v2920_v25 }
 0x95b   :  { %v4018_v15 = vpop.eup %4017 }
 0x95c   :  { %3557 = vmatprep.mubr.bf16.mxu0 %v2936_v13  ;;  %v2933_v42 = vmul.f32 %v4018_v15, %v5775_v23  ;;  %v4020_v14 = vpop.eup %4019 }
 0x95d   :  { %v2922_v39 = vmul.f32 %v4020_v14, %v5773_v0 }
 0x95e   :  { %v2942_v3 = vpack.c.bf16 %v2933_v42, %v2932_v37 }
 0x95f   :  { %v4022_v18 = vpop.eup %4021 }
 0x960   :  { %3569 = vmatprep.mubr.bf16.mxu1 %v2942_v3  ;;  %v2923_v52 = vmul.f32 %v4022_v18, %v5781_v31  ;;  %v4024_v48 = vpop.eup %4023 }
 0x961   :  { %v2934_v1 = vmul.f32 %v4024_v48, %v5779_v8 }
 0x962   :  { %v2937_v58 = vpack.c.bf16 %v2923_v52, %v2922_v39 }
 0x963   :  { %v4026_v46 = vpop.eup %4025 }
 0x964   :  { %3558 = vmatmul.mubr.bf16.vlgmr.msra.gmra.mrb[44].mxu0 %v2937_v58  ;;  %v2935_v47 = vmul.f32 %v4026_v46, %v5785_v16 }
 0x966   :  { %v2943_v11 = vpack.c.bf16 %v2935_v47, %v2934_v1 }
 0x968   :  { %3570 = vmatmul.mubr.bf16.gmra.mrb[28].mxu1 %v2943_v11 }
 0xa23   :  { %v3563_v23 = vpop.f32.mrb[20].mxu1 }
 0xa24   :  { %v3039_v54 = vadd.f32 %v3563_v23, %v3156_v36  ;;  %v3030_v63 = vpop.f32.mrb[21].mxu1 }
 0xa25   :  { %v3031_v0 = vadd.f32 %v3156_v36, %v3030_v63  ;;  %v3564_v40 = vpop.f32.mrb[22].mxu1 }
 0xa26   :  { %3083 = vst.msk [vmem:[%s5884_s13 + $0x30] sm:$0xff] %vm2497_vm4, %v3039_v54  ;;  %v3042_v31 = vadd.f32 %v3564_v40, %v3156_v36  ;;  %v3033_v8 = vpop.f32.mrb[23].mxu1 }
 0xa27   :  { %3081 = vst.msk [vmem:[%s5884_s13 + $0x20] sm:$0xff] %vm2497_vm4, %v3031_v0  ;;  %v3034_v16 = vadd.f32 %v3156_v36, %v3033_v8 }
 0xa28   :  { %3084 = vst.msk [vmem:[%s5884_s13 + $0x38] sm:$0xff] %vm2497_vm4, %v3042_v31 }
 0xa29   :  { %3082 = vst.msk [vmem:[%s5884_s13 + $0x28] sm:$0xff] %vm2497_vm4, %v3034_v16 }
 0xa2b   :  { %v3567_v22 = vpop.f32.mrb[24].mxu1 }
 0xa2c   :  { %v3055_v32 = vadd.f32 %v3567_v22, %v3156_v36  ;;  %v3046_v12 = vpop.f32.mrb[25].mxu1 }
 0xa2d   :  { %v3047_v56 = vadd.f32 %v3156_v36, %v3046_v12  ;;  %v3568_v38 = vpop.f32.mrb[26].mxu1 }
 0xa2e   :  { %3087 = vst.msk [vmem:[%s5884_s13 + $0x50] sm:$0xff] %vm2497_vm4, %v3055_v32  ;;  %v3058_v44 = vadd.f32 %v3568_v38, %v3156_v36  ;;  %v3049_v35 = vpop.f32.mrb[27].mxu1 }
 0xa2f   :  { %3085 = vst.msk [vmem:[%s5884_s13 + $0x40] sm:$0xff] %vm2497_vm4, %v3047_v56  ;;  %v3050_v28 = vadd.f32 %v3156_v36, %v3049_v35 }
 0xa30   :  { %3088 = vst.msk [vmem:[%s5884_s13 + $0x58] sm:$0xff] %vm2497_vm4, %v3058_v44 }
 0xa31   :  { %3086 = vst.msk [vmem:[%s5884_s13 + $0x48] sm:$0xff] %vm2497_vm4, %v3050_v28 }
 0xa37   :  { %v3559_v4 = vpop.f32.mrb[44].mxu0 }
 0xa38   :  { %v3023_v26 = vadd.f32 %v3559_v4, %v3156_v36  ;;  %v3014_v49 = vpop.f32.mrb[45].mxu0 }
 0xa39   :  { %v3015_v62 = vadd.f32 %v3156_v36, %v3014_v49  ;;  %v3560_v9 = vpop.f32.mrb[46].mxu0 }
 0xa3a   :  { %3079 = vst.msk [vmem:[%s5884_s13 + $0x10] sm:$0xff] %vm2497_vm4, %v3023_v26  ;;  %v3026_v27 = vadd.f32 %v3560_v9, %v3156_v36  ;;  %v3017_v10 = vpop.f32.mrb[47].mxu0 }
 0xa3b   :  { %3077 = vst.msk [vmem:[%s5884_s13] sm:$0xff] %vm2497_vm4, %v3015_v62  ;;  %v3018_v45 = vadd.f32 %v3156_v36, %v3017_v10  ;;  %v3571_v53 = vpop.f32.mrb[28].mxu1 }
 0xa3c   :  { %3080 = vst.msk [vmem:[%s5884_s13 + $0x18] sm:$0xff] %vm2497_vm4, %v3026_v27  ;;  %v3071_v59 = vadd.f32 %v3571_v53, %v3156_v36  ;;  %v3062_v57 = vpop.f32.mrb[29].mxu1 }
 0xa3d   :  { %3078 = vst.msk [vmem:[%s5884_s13 + $0x8] sm:$0xff] %vm2497_vm4, %v3018_v45  ;;  %v3063_v21 = vadd.f32 %v3156_v36, %v3062_v57  ;;  %v3572_v30 = vpop.f32.mrb[30].mxu1 }
 0xa3e   :  { %3091 = vst.msk [vmem:[%s5884_s13 + $0x70] sm:$0xff] %vm2497_vm4, %v3071_v59  ;;  %v3074_v29 = vadd.f32 %v3572_v30, %v3156_v36  ;;  %v3065_v19 = vpop.f32.mrb[31].mxu1 }
 0xa3f   :  { %3089 = vst.msk [vmem:[%s5884_s13 + $0x60] sm:$0xff] %vm2497_vm4, %v3063_v21  ;;  %v3066_v2 = vadd.f32 %v3156_v36, %v3065_v19 }
 0xa40   :  { %3092 = vst.msk [vmem:[%s5884_s13 + $0x78] sm:$0xff] %vm2497_vm4, %v3074_v29 }
 0xa41   :  { %3090 = vst.msk [vmem:[%s5884_s13 + $0x68] sm:$0xff] %vm2497_vm4, %v3066_v2 }
 0xa42   :  { %3097 = vsyncpa [#allocation3], 1 }

</bundles_post_ra>
